<compile_context>
chip_gen: v5e
topology: v5e:2x2
jax: 0.10.0
libtpu: 0.0.40
codegen_flags: <defaults>
</compile_context>

<pallas_src>
import functools

import jax
import jax.numpy as jnp
from jax.experimental import pallas as pl
from jax.experimental.pallas import tpu as pltpu

_VMEM_LIMIT = 32 * 1024 * 1024


def _round_up(x, m):
    return ((x + m - 1) // m) * m


def _pick_tile(n, align, cap):
    if n <= cap:
        return _round_up(n, align)
    for t in (cap, cap // 2, cap // 4):
        if n % t == 0:
            return t
    return cap


# ----------------------------------------------------------------------------
# Tiled linear:  (M, K) @ (K, N) + (1, N)   (bf16 MXU operands, f32 accum)
# ----------------------------------------------------------------------------

def _linear_kernel(x_ref, w_ref, b_ref, o_ref, acc_ref, *, n_k):
    k = pl.program_id(2)

    @pl.when(k == 0)
    def _():
        acc_ref[...] = jnp.zeros_like(acc_ref)

    acc_ref[...] += jnp.dot(x_ref[...].astype(jnp.bfloat16),
                            w_ref[...].astype(jnp.bfloat16),
                            preferred_element_type=jnp.float32)

    @pl.when(k == n_k - 1)
    def _():
        o_ref[...] = (acc_ref[...] + b_ref[...]).astype(o_ref.dtype)


def linear(x, w, b, out_dtype=jnp.float32):
    """x: (M, K), w: (K, N) (bf16 preferred), b: (1, N) f32 -> (M, N)."""
    M, K = x.shape
    K2, N = w.shape
    assert K == K2

    tm = _pick_tile(M, 8, 512)
    tn = _pick_tile(N, 128, 512)
    tk = _pick_tile(K, 8, 512)
    Mp, Np, Kp = _round_up(M, tm), _round_up(N, tn), _round_up(K, tk)

    if Mp != M or Kp != K:
        x = jnp.pad(x, ((0, Mp - M), (0, Kp - K)))
    if Kp != K or Np != N:
        w = jnp.pad(w, ((0, Kp - K), (0, Np - N)))
    if Np != N:
        b = jnp.pad(b, ((0, 0), (0, Np - N)))

    n_k = Kp // tk
    out = pl.pallas_call(
        functools.partial(_linear_kernel, n_k=n_k),
        out_shape=jax.ShapeDtypeStruct((Mp, Np), out_dtype),
        grid=(Mp // tm, Np // tn, n_k),
        in_specs=[
            pl.BlockSpec((tm, tk), lambda i, j, k: (i, k)),
            pl.BlockSpec((tk, tn), lambda i, j, k: (k, j)),
            pl.BlockSpec((1, tn), lambda i, j, k: (0, j)),
        ],
        out_specs=pl.BlockSpec((tm, tn), lambda i, j, k: (i, j)),
        scratch_shapes=[pltpu.VMEM((tm, tn), jnp.float32)],
        compiler_params=pltpu.CompilerParams(
            dimension_semantics=("parallel", "parallel", "arbitrary"),
            vmem_limit_bytes=_VMEM_LIMIT),
    )(x, w, b)

    if Mp != M or Np != N:
        out = out[:M, :N]
    return out


# ----------------------------------------------------------------------------
# Fused conv-stem matmul + ReLU + global-average-pool + image projection
# (stand-in image encoder -> GRU initial hidden, all in one kernel)
# ----------------------------------------------------------------------------

def _conv_gap_proj_kernel(p_ref, cw_ref, cb_ref, pw_ref, pb_ref, o_ref, acc_ref,
                          *, n_pt, tp, n_valid, masked):
    pt = pl.program_id(1)

    @pl.when(pt == 0)
    def _():
        acc_ref[...] = jnp.zeros_like(acc_ref)

    x = p_ref[0]                                           # (tp, Kp) bf16
    y = jnp.dot(x, cw_ref[...], preferred_element_type=jnp.float32) + cb_ref[...]
    y = jnp.maximum(y, 0.0)

    if masked:
        # Pad rows only exist in the last patch tile: mask only there.
        @pl.when(pt < n_pt - 1)
        def _():
            acc_ref[...] += jnp.sum(y, axis=0, keepdims=True)

        @pl.when(pt == n_pt - 1)
        def _():
            row = jax.lax.broadcasted_iota(jnp.int32, y.shape, 0) + pt * tp
            acc_ref[...] += jnp.sum(jnp.where(row < n_valid, y, 0.0),
                                    axis=0, keepdims=True)
    else:
        acc_ref[...] += jnp.sum(y, axis=0, keepdims=True)

    @pl.when(pt == n_pt - 1)
    def _():
        feats = acc_ref[...] * (1.0 / n_valid)             # GAP, (1, F) f32
        h0 = jnp.dot(feats.astype(jnp.bfloat16), pw_ref[...],
                     preferred_element_type=jnp.float32) + pb_ref[...]
        o_ref[0] = h0.astype(o_ref.dtype)


def conv_gap_proj(patches, conv_w, conv_b, proj_w, proj_b):
    """patches: (B, P, CKK) bf16 -> h0 (B, Hd) f32 (conv+ReLU+GAP+projection)."""
    B, P, K = patches.shape
    F = conv_w.shape[1]
    Hd = proj_w.shape[1]

    Kp = _round_up(K, 8)
    if Kp != K:
        patches = jnp.pad(patches, ((0, 0), (0, 0), (0, Kp - K)))
        conv_w = jnp.pad(conv_w, ((0, Kp - K), (0, 0)))

    # TODO(synk): could pack several images per grid step (Bt, tp, Kp) to better
    # fill the MXU contraction depth; at current shapes the stem is negligible.
    tp = _round_up(P, 8) if P <= 512 else 512
    Pp = _round_up(P, tp)
    if Pp != P:
        patches = jnp.pad(patches, ((0, 0), (0, Pp - P), (0, 0)))
    n_pt = Pp // tp

    out = pl.pallas_call(
        functools.partial(_conv_gap_proj_kernel, n_pt=n_pt, tp=tp,
                          n_valid=P, masked=(Pp != P)),
        out_shape=jax.ShapeDtypeStruct((B, 1, Hd), jnp.float32),
        grid=(B, n_pt),
        in_specs=[
            pl.BlockSpec((1, tp, Kp), lambda bi, pt: (bi, pt, 0)),
            pl.BlockSpec((Kp, F), lambda bi, pt: (0, 0)),
            pl.BlockSpec((1, F), lambda bi, pt: (0, 0)),
            pl.BlockSpec((F, Hd), lambda bi, pt: (0, 0)),
            pl.BlockSpec((1, Hd), lambda bi, pt: (0, 0)),
        ],
        out_specs=pl.BlockSpec((1, 1, Hd), lambda bi, pt: (bi, 0, 0)),
        scratch_shapes=[pltpu.VMEM((1, F), jnp.float32)],
        compiler_params=pltpu.CompilerParams(
            dimension_semantics=("parallel", "arbitrary"),
            vmem_limit_bytes=_VMEM_LIMIT),
    )(patches, conv_w, conv_b, proj_w, proj_b)
    return out[:, 0, :]


# ----------------------------------------------------------------------------
# GRU recurrence (input transform precomputed; only h @ W_hh per step)
# ----------------------------------------------------------------------------

def _gru_kernel(gi_ref, h0_ref, whh_ref, bhn_ref, out_ref, h_scr, *,
                k_steps, hidden):
    s = pl.program_id(1)                                   # time-chunk axis

    @pl.when(s == 0)
    def _():
        h_scr[...] = h0_ref[...]

    H = hidden
    whh = whh_ref[...]                                     # (H, 3H) bf16, resident
    bhn = bhn_ref[...]                                     # (1, H) f32 (n-gate only)

    def step(i, h):
        gi = gi_ref[i]                                     # (Bt, 3H) bf16
        gh = jnp.dot(h.astype(jnp.bfloat16), whh,
                     preferred_element_type=jnp.float32)
        # PyTorch GRU gate order [r, z, n]; b_hh[r,z] already folded into gi.
        r = jax.nn.sigmoid(gi[:, 0:H].astype(jnp.float32) + gh[:, 0:H])
        z = jax.nn.sigmoid(gi[:, H:2 * H].astype(jnp.float32) + gh[:, H:2 * H])
        n = jnp.tanh(gi[:, 2 * H:3 * H].astype(jnp.float32)
                     + r * (gh[:, 2 * H:3 * H] + bhn))
        h_new = (1.0 - z) * n + z * h
        out_ref[i] = h_new.astype(out_ref.dtype)
        return h_new

    h = jax.lax.fori_loop(0, k_steps, step, h_scr[...], unroll=True)
    h_scr[...] = h


def gru(gi_tbh, h0, w_hh_bf16, b_hh_n):
    """gi_tbh: (Tp, B8, 3H) bf16 precomputed input gates, h0: (B8, H) f32."""
    Tp, B8, H3 = gi_tbh.shape
    H = h0.shape[1]
    assert H3 == 3 * H
    assert Tp % 8 == 0
    k_steps = 8

    # Batch split across TensorCores (v7x megacore); time axis stays sequential.
    Bt = B8 // 2 if (B8 >= 16 and (B8 // 2) % 8 == 0) else B8
    n_bb = B8 // Bt

    # TODO(synk): on v7x, constant-index blocks (W_hh/b_hh/h0) could use
    # pipeline_mode=pl.Buffered(1) to skip double-buffering and save VMEM.
    return pl.pallas_call(
        functools.partial(_gru_kernel, k_steps=k_steps, hidden=H),
        out_shape=jax.ShapeDtypeStruct((Tp, B8, H), jnp.bfloat16),
        grid=(n_bb, Tp // k_steps),
        in_specs=[
            pl.BlockSpec((k_steps, Bt, 3 * H), lambda b, s: (s, b, 0)),  # gi chunk
            pl.BlockSpec((Bt, H), lambda b, s: (b, 0)),                  # h0
            pl.BlockSpec((H, 3 * H), lambda b, s: (0, 0)),               # W_hh bf16
            pl.BlockSpec((1, H), lambda b, s: (0, 0)),                   # b_hh (n)
        ],
        out_specs=pl.BlockSpec((k_steps, Bt, H), lambda b, s: (s, b, 0)),
        scratch_shapes=[pltpu.VMEM((Bt, H), jnp.float32)],
        compiler_params=pltpu.CompilerParams(
            dimension_semantics=("parallel", "arbitrary"),
            vmem_limit_bytes=_VMEM_LIMIT),
    )(gi_tbh, h0, w_hh_bf16, b_hh_n)


# ----------------------------------------------------------------------------
# Output projection: hidden tensor resident in VMEM, grid only over vocab tiles
# (M = T*B8 rows -> full MXU occupancy; W_out streamed exactly once)
# ----------------------------------------------------------------------------

def _out_proj_kernel(h_ref, w_ref, b_ref, o_ref):
    o_ref[...] = (jnp.dot(h_ref[...].astype(jnp.bfloat16),
                          w_ref[...].astype(jnp.bfloat16),
                          preferred_element_type=jnp.float32)
                  + b_ref[...]).astype(o_ref.dtype)


def output_projection(h2d, w, b):
    """h2d: (M, H) bf16 (M = T*B8), w: (H, V) bf16, b: (1, V) -> (M, Vp) f32."""
    M, H = h2d.shape
    V = w.shape[1]
    Vp = _round_up(V, 128)
    w = w.astype(jnp.bfloat16)
    if Vp != V:
        w = jnp.pad(w, ((0, 0), (0, Vp - V)))
        b = jnp.pad(b, ((0, 0), (0, Vp - V)))
    if Vp <= 512:
        tn = Vp
    else:
        tn = 512 if Vp % 512 == 0 else (256 if Vp % 256 == 0 else 128)
    nvt = Vp // tn

    return pl.pallas_call(
        _out_proj_kernel,
        out_shape=jax.ShapeDtypeStruct((M, Vp), jnp.float32),
        grid=(nvt,),
        in_specs=[
            pl.BlockSpec((M, H), lambda j: (0, 0)),   # constant index -> DMA'd once
            pl.BlockSpec((H, tn), lambda j: (0, j)),
            pl.BlockSpec((1, tn), lambda j: (0, j)),
        ],
        out_specs=pl.BlockSpec((M, tn), lambda j: (0, j)),
        compiler_params=pltpu.CompilerParams(
            dimension_semantics=("parallel",),
            vmem_limit_bytes=_VMEM_LIMIT),
    )(h2d, w, b)


# ----------------------------------------------------------------------------
# Glue: im2col, parameters, full forward pass
# ----------------------------------------------------------------------------

def im2col(x, kh, kw, stride):
    """x: (B, C, H, W) -> patches (B, OH*OW, C*kh*kw)."""
    B, C, H, W = x.shape
    OH = (H - kh) // stride + 1
    OW = (W - kw) // stride + 1
    cols = []
    for i in range(kh):
        for j in range(kw):
            cols.append(x[:, :, i:i + stride * OH:stride,
                          j:j + stride * OW:stride])       # (B, C, OH, OW)
    p = jnp.stack(cols, axis=2)                             # (B, C, KK, OH, OW)
    p = p.transpose(0, 3, 4, 1, 2).reshape(B, OH * OW, C * kh * kw)
    return p, OH, OW


def init_params(key, vocab_size, embed_dim, hidden_dim, feat_dim,
                in_ch=3, ksize=3, pad_idx=0):
    ks = jax.random.split(key, 12)

    def dense(k, shape, scale):
        return jax.random.normal(k, shape, jnp.float32) * scale

    ckk = in_ch * ksize * ksize
    params = {
        # stand-in image encoder (conv stem)
        "conv_w": dense(ks[0], (ckk, feat_dim), 0.1),
        "conv_b": jnp.zeros((1, feat_dim), jnp.float32),
        # image_projection: Linear(feat_dim, hidden_dim)
        "img_proj_w": dense(ks[1], (feat_dim, hidden_dim), 0.05),
        "img_proj_b": dense(ks[2], (1, hidden_dim), 0.05),
        # embedding (padding_idx row zeroed, like nn.Embedding(padding_idx=...))
        "embed": dense(ks[3], (vocab_size, embed_dim), 0.1).at[pad_idx].set(0.0),
        # embed_projection: Linear(embed_dim, hidden_dim)
        "emb_proj_w": dense(ks[4], (embed_dim, hidden_dim), 0.05),
        "emb_proj_b": dense(ks[5], (1, hidden_dim), 0.05),
        # GRU weights, pre-transposed to (in, 3H) with PyTorch gate order r,z,n
        "gru_w_ih": dense(ks[6], (hidden_dim, 3 * hidden_dim), 0.05),
        "gru_w_hh": dense(ks[7], (hidden_dim, 3 * hidden_dim), 0.05),
        "gru_b_ih": dense(ks[8], (1, 3 * hidden_dim), 0.05),
        "gru_b_hh": dense(ks[9], (1, 3 * hidden_dim), 0.05),
        # output: Linear(hidden_dim, vocab_size)
        "out_w": dense(ks[10], (hidden_dim, vocab_size), 0.05),
        "out_b": dense(ks[11], (1, vocab_size), 0.05),
    }
    return params


def prepare_params(p):
    """One-time inference prep: weight fusions + bf16 HBM storage for matmul
    operands (accumulation in the kernels stays f32)."""
    H = p["gru_w_hh"].shape[0]
    # embed_projection folded into the GRU input transform:
    #   gi = (emb @ Wp + bp) @ Wih + bih = emb @ (Wp @ Wih) + (bp @ Wih + bih)
    w_gi = p["emb_proj_w"] @ p["gru_w_ih"]                         # (E, 3H) f32
    b_gi = p["emb_proj_b"] @ p["gru_w_ih"] + p["gru_b_ih"]         # (1, 3H)
    # b_hh for the r,z gates is added outside the r*(.) term -> fold into gi bias.
    b_gi = b_gi.at[:, :2 * H].add(p["gru_b_hh"][:, :2 * H])
    return {
        "conv_w": p["conv_w"].astype(jnp.bfloat16),
        "conv_b": p["conv_b"],
        "img_proj_w": p["img_proj_w"].astype(jnp.bfloat16),
        "img_proj_b": p["img_proj_b"],
        "embed": p["embed"],
        "gi_w": w_gi.astype(jnp.bfloat16),
        "gi_b": b_gi,
        "gru_w_hh": p["gru_w_hh"].astype(jnp.bfloat16),
        "gru_b_hh_n": p["gru_b_hh"][:, 2 * H:],
        "out_w": p["out_w"].astype(jnp.bfloat16),
        "out_b": p["out_b"],
    }


@functools.partial(jax.jit, static_argnames=("ksize", "stride"))
def forward(params, images, captions, *, ksize=3, stride=2):
    """Mirrors LightweightCaptioningModel.forward (eval-mode dropout)."""
    B = images.shape[0]
    T = captions.shape[1]
    Hd = params["img_proj_w"].shape[1]
    V = params["out_w"].shape[1]
    # Gate slabs are lane-aligned only if hidden is a multiple of 128.
    # TODO(synk): non-multiple hidden sizes would need gate padding / per-gate W_hh.
    assert Hd % 128 == 0, "hidden_dim must be a multiple of 128"
    B8 = _round_up(B, 8)                      # full sublane occupancy in the GRU
    Tp = _round_up(T, 8)                      # GRU always runs 8-step chunks

    # --- image encoder (stand-in) + image projection, fused ------------------
    patches, _, _ = im2col(images, ksize, ksize, stride)
    patches = patches.astype(jnp.bfloat16)
    h0 = conv_gap_proj(patches, params["conv_w"], params["conv_b"],
                       params["img_proj_w"], params["img_proj_b"])   # (B, Hd) f32
    if B8 != B:
        h0 = jnp.pad(h0, ((0, B8 - B), (0, 0)))

    # --- caption path (time-major; W_ih hoisted out of the recurrence) -------
    caps = captions if B8 == B else jnp.pad(captions, ((0, B8 - B), (0, 0)))
    caps_t = caps.T                                          # (T, B8) tiny int32 op
    if Tp != T:
        caps_t = jnp.pad(caps_t, ((0, Tp - T), (0, 0)))      # pad token 0
    emb = jnp.take(params["embed"], caps_t, axis=0).astype(jnp.bfloat16)  # (Tp,B8,E)
    E = emb.shape[-1]
    gi = linear(emb.reshape(Tp * B8, E), params["gi_w"], params["gi_b"],
                out_dtype=jnp.bfloat16)                      # (Tp*B8, 3Hd) bf16
    gi = gi.reshape(Tp, B8, 3 * Hd)

    # --- GRU recurrence (only h @ W_hh per step) ------------------------------
    out_tbh = gru(gi, h0, params["gru_w_hh"], params["gru_b_hh_n"])  # (Tp,B8,Hd) bf16

    # --- output projection: flatten to M = T*B8 rows, h resident in VMEM ------
    h2d = out_tbh[:T].reshape(T * B8, Hd)
    logits2d = output_projection(h2d, params["out_w"], params["out_b"])  # (T*B8, Vp)
    logits = logits2d.reshape(T, B8, -1)[:, :B, :V].transpose(1, 0, 2)
    return logits                                            # (B, T, V) f32


if __name__ == "__main__":
    key = jax.random.PRNGKey(0)
    B, C, S = 2, 3, 16          # batch, image channels, spatial
    T = 8                       # caption length
    vocab_size, embed_dim, hidden_dim, feat_dim = 1000, 64, 128, 128

    kp, ki, kc = jax.random.split(key, 3)
    raw_params = init_params(kp, vocab_size, embed_dim, hidden_dim, feat_dim,
                             in_ch=C, ksize=3, pad_idx=0)
    params = prepare_params(raw_params)
    images = jax.random.normal(ki, (B, C, S, S), jnp.float32)
    captions = jax.random.randint(kc, (B, T), 0, vocab_size, dtype=jnp.int32)

    logits = forward(params, images, captions)
    jax.block_until_ready(logits)
    assert logits.shape == (B, T, vocab_size), logits.shape
    assert logits.dtype == jnp.float32
    print("KERNEL_OK")
</pallas_src>

<mosaic_0001>
module attributes {stable_mosaic.version = 11 : i64} {
  func.func @_conv_gap_proj_kernel(%arg0: i32, %arg1: i32, %arg2: memref<1x56x32xbf16, #tpu.memory_space<vmem>>, %arg3: memref<32x128xbf16, #tpu.memory_space<vmem>>, %arg4: memref<1x128xf32, #tpu.memory_space<vmem>>, %arg5: memref<128x128xbf16, #tpu.memory_space<vmem>>, %arg6: memref<1x128xf32, #tpu.memory_space<vmem>>, %arg7: memref<1x1x128xf32, #tpu.memory_space<vmem>>, %arg8: memref<1x128xf32, #tpu.memory_space<vmem>>) attributes {dimension_semantics = [#tpu.dimension_semantics<parallel>, #tpu.dimension_semantics<arbitrary>], iteration_bounds = array<i64: 2, 1>, scalar_prefetch = 0 : i64, scratch_operands = 1 : i64, tpu.core_type = #tpu.core_type<tc>, window_params = [{transform_indices = @transform_0, window_bounds = array<i64: 1, 56, 32>}, {pipeline_mode = #tpu.pipeline_mode<synchronous>, transform_indices = @transform_1, window_bounds = array<i64: 32, 128>}, {pipeline_mode = #tpu.pipeline_mode<synchronous>, transform_indices = @transform_2, window_bounds = array<i64: 1, 128>}, {pipeline_mode = #tpu.pipeline_mode<synchronous>, transform_indices = @transform_3, window_bounds = array<i64: 128, 128>}, {pipeline_mode = #tpu.pipeline_mode<synchronous>, transform_indices = @transform_4, window_bounds = array<i64: 1, 128>}, {transform_indices = @transform_5, window_bounds = array<i64: 1, 1, 128>}]} {
    %c0_i32 = arith.constant 0 : i32
    %0 = arith.cmpi eq, %arg1, %c0_i32 : i32
    %1 = arith.extui %0 : i1 to i32
    %c0_i32_0 = arith.constant 0 : i32
    %2 = arith.cmpi ne, %1, %c0_i32_0 : i32
    scf.if %2 {
      %cst_14 = arith.constant 0.000000e+00 : f32
      %21 = vector.broadcast %cst_14 : f32 to vector<1x128xf32>
      %c0_15 = arith.constant 0 : index
      %c0_16 = arith.constant 0 : index
      %22 = vector.load %arg8[%c0_15, %c0_16] : memref<1x128xf32, #tpu.memory_space<vmem>>, vector<1x128xf32>
      tpu.vector_store %arg8[%c0_15, %c0_16], %21 {strides = array<i32>} : memref<1x128xf32, #tpu.memory_space<vmem>>, vector<1x128xf32>,
    } else {
    }
    %c0 = arith.constant 0 : index
    %c0_1 = arith.constant 0 : index
    %c0_2 = arith.constant 0 : index
    %3 = vector.load %arg2[%c0, %c0_1, %c0_2] : memref<1x56x32xbf16, #tpu.memory_space<vmem>>, vector<1x56x32xbf16>
    %4 = vector.shape_cast %3 : vector<1x56x32xbf16> to vector<56x32xbf16>
    %c0_3 = arith.constant 0 : index
    %c0_4 = arith.constant 0 : index
    %5 = vector.load %arg3[%c0_3, %c0_4] : memref<32x128xbf16, #tpu.memory_space<vmem>>, vector<32x128xbf16>
    %cst = arith.constant dense<0.000000e+00> : vector<56x128xf32>
    %6 = tpu.matmul %4, %5, %cst {dimension_numbers = #tpu.dot_dimension_numbers<[1], [0], [0], [1], [0, 0, 1, 1], [], []>} : vector<56x32xbf16>, vector<32x128xbf16>, vector<56x128xf32> -> vector<56x128xf32>
    %c0_5 = arith.constant 0 : index
    %c0_6 = arith.constant 0 : index
    %7 = vector.load %arg4[%c0_5, %c0_6] : memref<1x128xf32, #tpu.memory_space<vmem>>, vector<1x128xf32>
    %8 = vector.broadcast %7 : vector<1x128xf32> to vector<56x128xf32>
    %9 = arith.addf %6, %8 : vector<56x128xf32>
    %cst_7 = arith.constant 0.000000e+00 : f32
    %10 = vector.broadcast %cst_7 : f32 to vector<56x128xf32>
    %11 = arith.maximumf %9, %10 : vector<56x128xf32>
    %c0_i32_8 = arith.constant 0 : i32
    %12 = arith.cmpi slt, %arg1, %c0_i32_8 : i32
    %13 = arith.extui %12 : i1 to i32
    %c0_i32_9 = arith.constant 0 : i32
    %14 = arith.cmpi ne, %13, %c0_i32_9 : i32
    scf.if %14 {
      %c0_14 = arith.constant 0 : index
      %c0_15 = arith.constant 0 : index
      %21 = vector.load %arg8[%c0_14, %c0_15] : memref<1x128xf32, #tpu.memory_space<vmem>>, vector<1x128xf32>
      %cst_16 = arith.constant dense<0.000000e+00> : vector<128xf32>
      %22 = vector.multi_reduction <add>, %11, %cst_16 [0] : vector<56x128xf32> to vector<128xf32>
      %23 = vector.shape_cast %22 : vector<128xf32> to vector<1x128xf32>
      %24 = arith.addf %21, %23 : vector<1x128xf32>
      %c0_17 = arith.constant 0 : index
      %c0_18 = arith.constant 0 : index
      %25 = vector.load %arg8[%c0_17, %c0_18] : memref<1x128xf32, #tpu.memory_space<vmem>>, vector<1x128xf32>
      tpu.vector_store %arg8[%c0_17, %c0_18], %24 {strides = array<i32>} : memref<1x128xf32, #tpu.memory_space<vmem>>, vector<1x128xf32>,
    } else {
    }
    %c0_i32_10 = arith.constant 0 : i32
    %15 = arith.cmpi eq, %arg1, %c0_i32_10 : i32
    %16 = arith.extui %15 : i1 to i32
    %c0_i32_11 = arith.constant 0 : i32
    %17 = arith.cmpi ne, %16, %c0_i32_11 : i32
    scf.if %17 {
      %21 = tpu.iota {dimensions = array<i32: 0>} : vector<56x128xi32>
      %c56_i32 = arith.constant 56 : i32
      %22 = arith.muli %arg1, %c56_i32 : i32
      %23 = vector.broadcast %22 : i32 to vector<56x128xi32>
      %24 = arith.addi %21, %23 : vector<56x128xi32>
      %c0_14 = arith.constant 0 : index
      %c0_15 = arith.constant 0 : index
      %25 = vector.load %arg8[%c0_14, %c0_15] : memref<1x128xf32, #tpu.memory_space<vmem>>, vector<1x128xf32>
      %c49_i32 = arith.constant 49 : i32
      %26 = vector.broadcast %c49_i32 : i32 to vector<56x128xi32>
      %27 = arith.cmpi slt, %24, %26 : vector<56x128xi32>
      %cst_16 = arith.constant 0.000000e+00 : f32
      %28 = vector.broadcast %cst_16 : f32 to vector<56x128xf32>
      %29 = arith.select %27, %11, %28 : vector<56x128xi1>, vector<56x128xf32>
      %cst_17 = arith.constant dense<0.000000e+00> : vector<128xf32>
      %30 = vector.multi_reduction <add>, %29, %cst_17 [0] : vector<56x128xf32> to vector<128xf32>
      %31 = vector.shape_cast %30 : vector<128xf32> to vector<1x128xf32>
      %32 = arith.addf %25, %31 : vector<1x128xf32>
      %c0_18 = arith.constant 0 : index
      %c0_19 = arith.constant 0 : index
      %33 = vector.load %arg8[%c0_18, %c0_19] : memref<1x128xf32, #tpu.memory_space<vmem>>, vector<1x128xf32>
      tpu.vector_store %arg8[%c0_18, %c0_19], %32 {strides = array<i32>} : memref<1x128xf32, #tpu.memory_space<vmem>>, vector<1x128xf32>,
    } else {
    }
    %c0_i32_12 = arith.constant 0 : i32
    %18 = arith.cmpi eq, %arg1, %c0_i32_12 : i32
    %19 = arith.extui %18 : i1 to i32
    %c0_i32_13 = arith.constant 0 : i32
    %20 = arith.cmpi ne, %19, %c0_i32_13 : i32
    scf.if %20 {
      %c0_14 = arith.constant 0 : index
      %c0_15 = arith.constant 0 : index
      %21 = vector.load %arg8[%c0_14, %c0_15] : memref<1x128xf32, #tpu.memory_space<vmem>>, vector<1x128xf32>
      %cst_16 = arith.constant 0.0204081628 : f32
      %22 = vector.broadcast %cst_16 : f32 to vector<1x128xf32>
      %23 = arith.mulf %21, %22 : vector<1x128xf32>
      %24 = arith.truncf %23 : vector<1x128xf32> to vector<1x128xbf16>
      %c0_17 = arith.constant 0 : index
      %c0_18 = arith.constant 0 : index
      %25 = vector.load %arg5[%c0_17, %c0_18] : memref<128x128xbf16, #tpu.memory_space<vmem>>, vector<128x128xbf16>
      %cst_19 = arith.constant dense<0.000000e+00> : vector<1x128xf32>
      %26 = tpu.matmul %24, %25, %cst_19 {dimension_numbers = #tpu.dot_dimension_numbers<[1], [0], [0], [1], [0, 0, 1, 1], [], []>} : vector<1x128xbf16>, vector<128x128xbf16>, vector<1x128xf32> -> vector<1x128xf32>
      %c0_20 = arith.constant 0 : index
      %c0_21 = arith.constant 0 : index
      %27 = vector.load %arg6[%c0_20, %c0_21] : memref<1x128xf32, #tpu.memory_space<vmem>>, vector<1x128xf32>
      %28 = arith.addf %26, %27 : vector<1x128xf32>
      %c0_22 = arith.constant 0 : index
      %c0_23 = arith.constant 0 : index
      %c0_24 = arith.constant 0 : index
      %29 = vector.load %arg7[%c0_22, %c0_23, %c0_24] : memref<1x1x128xf32, #tpu.memory_space<vmem>>, vector<1x1x128xf32>
      %30 = vector.shape_cast %29 : vector<1x1x128xf32> to vector<1x128xf32>
      %31 = vector.shape_cast %28 : vector<1x128xf32> to vector<1x1x128xf32>
      tpu.vector_store %arg7[%c0_22, %c0_23, %c0_24], %31 {strides = array<i32>} : memref<1x1x128xf32, #tpu.memory_space<vmem>>, vector<1x1x128xf32>,
    } else {
    }
    return
  }
  func.func @transform_0(%arg0: i32, %arg1: i32) -> (i32, i32, i32) {
    %c0_i32 = arith.constant 0 : i32
    %c0_i32_0 = arith.constant 0 : i32
    return %arg0, %arg1, %c0_i32 : i32, i32, i32
  }
  func.func @transform_1(%arg0: i32, %arg1: i32) -> (i32, i32) {
    %c0_i32 = arith.constant 0 : i32
    %c0_i32_0 = arith.constant 0 : i32
    %c0_i32_1 = arith.constant 0 : i32
    return %c0_i32, %c0_i32_0 : i32, i32
  }
  func.func @transform_2(%arg0: i32, %arg1: i32) -> (i32, i32) {
    %c0_i32 = arith.constant 0 : i32
    %c0_i32_0 = arith.constant 0 : i32
    %c0_i32_1 = arith.constant 0 : i32
    return %c0_i32, %c0_i32_0 : i32, i32
  }
  func.func @transform_3(%arg0: i32, %arg1: i32) -> (i32, i32) {
    %c0_i32 = arith.constant 0 : i32
    %c0_i32_0 = arith.constant 0 : i32
    %c0_i32_1 = arith.constant 0 : i32
    return %c0_i32, %c0_i32_0 : i32, i32
  }
  func.func @transform_4(%arg0: i32, %arg1: i32) -> (i32, i32) {
    %c0_i32 = arith.constant 0 : i32
    %c0_i32_0 = arith.constant 0 : i32
    %c0_i32_1 = arith.constant 0 : i32
    return %c0_i32, %c0_i32_0 : i32, i32
  }
  func.func @transform_5(%arg0: i32, %arg1: i32) -> (i32, i32, i32) {
    %c0_i32 = arith.constant 0 : i32
    %c0_i32_0 = arith.constant 0 : i32
    %c0_i32_1 = arith.constant 0 : i32
    return %arg0, %c0_i32, %c0_i32_0 : i32, i32, i32
  }
}

module attributes {stable_mosaic.version = 11 : i64} {
  func.func @_linear_kernel(%arg0: i32, %arg1: i32, %arg2: i32, %arg3: memref<64x64xbf16, #tpu.memory_space<vmem>>, %arg4: memref<64x384xbf16, #tpu.memory_space<vmem>>, %arg5: memref<1x384xf32, #tpu.memory_space<vmem>>, %arg6: memref<64x384xbf16, #tpu.memory_space<vmem>>, %arg7: memref<64x384xf32, #tpu.memory_space<vmem>>) attributes {dimension_semantics = [#tpu.dimension_semantics<parallel>, #tpu.dimension_semantics<parallel>, #tpu.dimension_semantics<arbitrary>], iteration_bounds = array<i64: 1, 1, 1>, scalar_prefetch = 0 : i64, scratch_operands = 1 : i64, tpu.core_type = #tpu.core_type<tc>, window_params = [{transform_indices = @transform_0, window_bounds = array<i64: 64, 64>}, {transform_indices = @transform_1, window_bounds = array<i64: 64, 384>}, {transform_indices = @transform_2, window_bounds = array<i64: 1, 384>}, {transform_indices = @transform_3, window_bounds = array<i64: 64, 384>}]} {
    %c0_i32 = arith.constant 0 : i32
    %0 = arith.cmpi eq, %arg2, %c0_i32 : i32
    %1 = arith.extui %0 : i1 to i32
    %c0_i32_0 = arith.constant 0 : i32
    %2 = arith.cmpi ne, %1, %c0_i32_0 : i32
    scf.if %2 {
      %cst_10 = arith.constant 0.000000e+00 : f32
      %12 = vector.broadcast %cst_10 : f32 to vector<64x384xf32>
      %c0_11 = arith.constant 0 : index
      %c0_12 = arith.constant 0 : index
      %13 = vector.load %arg7[%c0_11, %c0_12] : memref<64x384xf32, #tpu.memory_space<vmem>>, vector<64x384xf32>
      tpu.vector_store %arg7[%c0_11, %c0_12], %12 {strides = array<i32>} : memref<64x384xf32, #tpu.memory_space<vmem>>, vector<64x384xf32>,
    } else {
    }
    %c0 = arith.constant 0 : index
    %c0_1 = arith.constant 0 : index
    %3 = vector.load %arg7[%c0, %c0_1] : memref<64x384xf32, #tpu.memory_space<vmem>>, vector<64x384xf32>
    %c0_2 = arith.constant 0 : index
    %c0_3 = arith.constant 0 : index
    %4 = vector.load %arg3[%c0_2, %c0_3] : memref<64x64xbf16, #tpu.memory_space<vmem>>, vector<64x64xbf16>
    %c0_4 = arith.constant 0 : index
    %c0_5 = arith.constant 0 : index
    %5 = vector.load %arg4[%c0_4, %c0_5] : memref<64x384xbf16, #tpu.memory_space<vmem>>, vector<64x384xbf16>
    %cst = arith.constant dense<0.000000e+00> : vector<64x384xf32>
    %6 = tpu.matmul %4, %5, %cst {dimension_numbers = #tpu.dot_dimension_numbers<[1], [0], [0], [1], [0, 0, 1, 1], [], []>} : vector<64x64xbf16>, vector<64x384xbf16>, vector<64x384xf32> -> vector<64x384xf32>
    %7 = arith.addf %3, %6 : vector<64x384xf32>
    %c0_6 = arith.constant 0 : index
    %c0_7 = arith.constant 0 : index
    %8 = vector.load %arg7[%c0_6, %c0_7] : memref<64x384xf32, #tpu.memory_space<vmem>>, vector<64x384xf32>
    tpu.vector_store %arg7[%c0_6, %c0_7], %7 {strides = array<i32>} : memref<64x384xf32, #tpu.memory_space<vmem>>, vector<64x384xf32>,
    %c0_i32_8 = arith.constant 0 : i32
    %9 = arith.cmpi eq, %arg2, %c0_i32_8 : i32
    %10 = arith.extui %9 : i1 to i32
    %c0_i32_9 = arith.constant 0 : i32
    %11 = arith.cmpi ne, %10, %c0_i32_9 : i32
    scf.if %11 {
      %c0_10 = arith.constant 0 : index
      %c0_11 = arith.constant 0 : index
      %12 = vector.load %arg7[%c0_10, %c0_11] : memref<64x384xf32, #tpu.memory_space<vmem>>, vector<64x384xf32>
      %c0_12 = arith.constant 0 : index
      %c0_13 = arith.constant 0 : index
      %13 = vector.load %arg5[%c0_12, %c0_13] : memref<1x384xf32, #tpu.memory_space<vmem>>, vector<1x384xf32>
      %14 = vector.broadcast %13 : vector<1x384xf32> to vector<64x384xf32>
      %15 = arith.addf %12, %14 : vector<64x384xf32>
      %16 = arith.truncf %15 : vector<64x384xf32> to vector<64x384xbf16>
      %c0_14 = arith.constant 0 : index
      %c0_15 = arith.constant 0 : index
      %17 = vector.load %arg6[%c0_14, %c0_15] : memref<64x384xbf16, #tpu.memory_space<vmem>>, vector<64x384xbf16>
      tpu.vector_store %arg6[%c0_14, %c0_15], %16 {strides = array<i32>} : memref<64x384xbf16, #tpu.memory_space<vmem>>, vector<64x384xbf16>,
    } else {
    }
    return
  }
  func.func @transform_0(%arg0: i32, %arg1: i32, %arg2: i32) -> (i32, i32) {
    %c0_i32 = arith.constant 0 : i32
    return %arg0, %arg2 : i32, i32
  }
  func.func @transform_1(%arg0: i32, %arg1: i32, %arg2: i32) -> (i32, i32) {
    %c0_i32 = arith.constant 0 : i32
    return %arg2, %arg1 : i32, i32
  }
  func.func @transform_2(%arg0: i32, %arg1: i32, %arg2: i32) -> (i32, i32) {
    %c0_i32 = arith.constant 0 : i32
    %c0_i32_0 = arith.constant 0 : i32
    return %c0_i32, %arg1 : i32, i32
  }
  func.func @transform_3(%arg0: i32, %arg1: i32, %arg2: i32) -> (i32, i32) {
    %c0_i32 = arith.constant 0 : i32
    return %arg0, %arg1 : i32, i32
  }
}

module attributes {stable_mosaic.version = 11 : i64} {
  func.func @_gru_kernel(%arg0: i32, %arg1: i32, %arg2: memref<8x8x384xbf16, #tpu.memory_space<vmem>>, %arg3: memref<8x128xf32, #tpu.memory_space<vmem>>, %arg4: memref<128x384xbf16, #tpu.memory_space<vmem>>, %arg5: memref<1x128xf32, #tpu.memory_space<vmem>>, %arg6: memref<8x8x128xbf16, #tpu.memory_space<vmem>>, %arg7: memref<8x128xf32, #tpu.memory_space<vmem>>) attributes {dimension_semantics = [#tpu.dimension_semantics<parallel>, #tpu.dimension_semantics<arbitrary>], iteration_bounds = array<i64: 1, 1>, scalar_prefetch = 0 : i64, scratch_operands = 1 : i64, tpu.core_type = #tpu.core_type<tc>, window_params = [{transform_indices = @transform_0, window_bounds = array<i64: 8, 8, 384>}, {transform_indices = @transform_1, window_bounds = array<i64: 8, 128>}, {pipeline_mode = #tpu.pipeline_mode<synchronous>, transform_indices = @transform_2, window_bounds = array<i64: 128, 384>}, {pipeline_mode = #tpu.pipeline_mode<synchronous>, transform_indices = @transform_3, window_bounds = array<i64: 1, 128>}, {transform_indices = @transform_4, window_bounds = array<i64: 8, 8, 128>}]} {
    %c0_i32 = arith.constant 0 : i32
    %0 = arith.cmpi eq, %arg1, %c0_i32 : i32
    %1 = arith.extui %0 : i1 to i32
    %c0_i32_0 = arith.constant 0 : i32
    %2 = arith.cmpi ne, %1, %c0_i32_0 : i32
    scf.if %2 {
      %c0_72 = arith.constant 0 : index
      %c0_73 = arith.constant 0 : index
      %335 = vector.load %arg3[%c0_72, %c0_73] : memref<8x128xf32, #tpu.memory_space<vmem>>, vector<8x128xf32>
      %c0_74 = arith.constant 0 : index
      %c0_75 = arith.constant 0 : index
      %336 = vector.load %arg7[%c0_74, %c0_75] : memref<8x128xf32, #tpu.memory_space<vmem>>, vector<8x128xf32>
      tpu.vector_store %arg7[%c0_74, %c0_75], %335 {strides = array<i32>} : memref<8x128xf32, #tpu.memory_space<vmem>>, vector<8x128xf32>,
    } else {
    }
    %c0 = arith.constant 0 : index
    %c0_1 = arith.constant 0 : index
    %3 = vector.load %arg4[%c0, %c0_1] : memref<128x384xbf16, #tpu.memory_space<vmem>>, vector<128x384xbf16>
    %c0_2 = arith.constant 0 : index
    %c0_3 = arith.constant 0 : index
    %4 = vector.load %arg5[%c0_2, %c0_3] : memref<1x128xf32, #tpu.memory_space<vmem>>, vector<1x128xf32>
    %c0_4 = arith.constant 0 : index
    %c0_5 = arith.constant 0 : index
    %5 = vector.load %arg7[%c0_4, %c0_5] : memref<8x128xf32, #tpu.memory_space<vmem>>, vector<8x128xf32>
    %c0_i32_6 = arith.constant 0 : i32
    %6 = arith.index_cast %c0_i32_6 : i32 to index
    %c0_7 = arith.constant 0 : index
    %c0_8 = arith.constant 0 : index
    %7 = vector.load %arg2[%6, %c0_7, %c0_8] : memref<8x8x384xbf16, #tpu.memory_space<vmem>>, vector<1x8x384xbf16>
    %8 = vector.shape_cast %7 : vector<1x8x384xbf16> to vector<8x384xbf16>
    %9 = arith.truncf %5 : vector<8x128xf32> to vector<8x128xbf16>
    %cst = arith.constant dense<0.000000e+00> : vector<8x384xf32>
    %10 = tpu.matmul %9, %3, %cst {dimension_numbers = #tpu.dot_dimension_numbers<[1], [0], [0], [1], [0, 0, 1, 1], [], []>} : vector<8x128xbf16>, vector<128x384xbf16>, vector<8x384xf32> -> vector<8x384xf32>
    %11 = vector.extract_strided_slice %8 {offsets = [0, 0], sizes = [8, 128], strides = [1, 1]} : vector<8x384xbf16> to vector<8x128xbf16>
    %12 = arith.extf %11 : vector<8x128xbf16> to vector<8x128xf32>
    %13 = vector.extract_strided_slice %10 {offsets = [0, 0], sizes = [8, 128], strides = [1, 1]} : vector<8x384xf32> to vector<8x128xf32>
    %14 = arith.addf %12, %13 : vector<8x128xf32>
    %15 = arith.negf %14 : vector<8x128xf32>
    %16 = math.exp %15 : vector<8x128xf32>
    %cst_9 = arith.constant 1.000000e+00 : f32
    %17 = vector.broadcast %cst_9 : f32 to vector<8x128xf32>
    %18 = arith.addf %17, %16 : vector<8x128xf32>
    %19 = arith.divf %17, %18 : vector<8x128xf32>
    %20 = vector.extract_strided_slice %8 {offsets = [0, 128], sizes = [8, 128], strides = [1, 1]} : vector<8x384xbf16> to vector<8x128xbf16>
    %21 = arith.extf %20 : vector<8x128xbf16> to vector<8x128xf32>
    %22 = vector.extract_strided_slice %10 {offsets = [0, 128], sizes = [8, 128], strides = [1, 1]} : vector<8x384xf32> to vector<8x128xf32>
    %23 = arith.addf %21, %22 : vector<8x128xf32>
    %24 = arith.negf %23 : vector<8x128xf32>
    %25 = math.exp %24 : vector<8x128xf32>
    %cst_10 = arith.constant 1.000000e+00 : f32
    %26 = vector.broadcast %cst_10 : f32 to vector<8x128xf32>
    %27 = arith.addf %26, %25 : vector<8x128xf32>
    %28 = arith.divf %26, %27 : vector<8x128xf32>
    %29 = vector.extract_strided_slice %8 {offsets = [0, 256], sizes = [8, 128], strides = [1, 1]} : vector<8x384xbf16> to vector<8x128xbf16>
    %30 = arith.extf %29 : vector<8x128xbf16> to vector<8x128xf32>
    %31 = vector.extract_strided_slice %10 {offsets = [0, 256], sizes = [8, 128], strides = [1, 1]} : vector<8x384xf32> to vector<8x128xf32>
    %32 = vector.broadcast %4 : vector<1x128xf32> to vector<8x128xf32>
    %33 = arith.addf %31, %32 : vector<8x128xf32>
    %34 = arith.mulf %19, %33 : vector<8x128xf32>
    %35 = arith.addf %30, %34 : vector<8x128xf32>
    %36 = math.tanh %35 : vector<8x128xf32>
    %cst_11 = arith.constant 1.000000e+00 : f32
    %37 = vector.broadcast %cst_11 : f32 to vector<8x128xf32>
    %38 = arith.subf %37, %28 : vector<8x128xf32>
    %39 = arith.mulf %38, %36 : vector<8x128xf32>
    %40 = arith.mulf %28, %5 : vector<8x128xf32>
    %41 = arith.addf %39, %40 : vector<8x128xf32>
    %42 = arith.truncf %41 : vector<8x128xf32> to vector<8x128xbf16>
    %43 = arith.index_cast %c0_i32_6 : i32 to index
    %c0_12 = arith.constant 0 : index
    %c0_13 = arith.constant 0 : index
    %44 = vector.load %arg6[%43, %c0_12, %c0_13] : memref<8x8x128xbf16, #tpu.memory_space<vmem>>, vector<1x8x128xbf16>
    %45 = vector.shape_cast %44 : vector<1x8x128xbf16> to vector<8x128xbf16>
    %46 = vector.shape_cast %42 : vector<8x128xbf16> to vector<1x8x128xbf16>
    tpu.vector_store %arg6[%43, %c0_12, %c0_13], %46 {strides = array<i32>} : memref<8x8x128xbf16, #tpu.memory_space<vmem>>, vector<1x8x128xbf16>,
    %c1_i32 = arith.constant 1 : i32
    %47 = arith.index_cast %c1_i32 : i32 to index
    %c0_14 = arith.constant 0 : index
    %c0_15 = arith.constant 0 : index
    %48 = vector.load %arg2[%47, %c0_14, %c0_15] : memref<8x8x384xbf16, #tpu.memory_space<vmem>>, vector<1x8x384xbf16>
    %49 = vector.shape_cast %48 : vector<1x8x384xbf16> to vector<8x384xbf16>
    %50 = arith.truncf %41 : vector<8x128xf32> to vector<8x128xbf16>
    %cst_16 = arith.constant dense<0.000000e+00> : vector<8x384xf32>
    %51 = tpu.matmul %50, %3, %cst_16 {dimension_numbers = #tpu.dot_dimension_numbers<[1], [0], [0], [1], [0, 0, 1, 1], [], []>} : vector<8x128xbf16>, vector<128x384xbf16>, vector<8x384xf32> -> vector<8x384xf32>
    %52 = vector.extract_strided_slice %49 {offsets = [0, 0], sizes = [8, 128], strides = [1, 1]} : vector<8x384xbf16> to vector<8x128xbf16>
    %53 = arith.extf %52 : vector<8x128xbf16> to vector<8x128xf32>
    %54 = vector.extract_strided_slice %51 {offsets = [0, 0], sizes = [8, 128], strides = [1, 1]} : vector<8x384xf32> to vector<8x128xf32>
    %55 = arith.addf %53, %54 : vector<8x128xf32>
    %56 = arith.negf %55 : vector<8x128xf32>
    %57 = math.exp %56 : vector<8x128xf32>
    %cst_17 = arith.constant 1.000000e+00 : f32
    %58 = vector.broadcast %cst_17 : f32 to vector<8x128xf32>
    %59 = arith.addf %58, %57 : vector<8x128xf32>
    %60 = arith.divf %58, %59 : vector<8x128xf32>
    %61 = vector.extract_strided_slice %49 {offsets = [0, 128], sizes = [8, 128], strides = [1, 1]} : vector<8x384xbf16> to vector<8x128xbf16>
    %62 = arith.extf %61 : vector<8x128xbf16> to vector<8x128xf32>
    %63 = vector.extract_strided_slice %51 {offsets = [0, 128], sizes = [8, 128], strides = [1, 1]} : vector<8x384xf32> to vector<8x128xf32>
    %64 = arith.addf %62, %63 : vector<8x128xf32>
    %65 = arith.negf %64 : vector<8x128xf32>
    %66 = math.exp %65 : vector<8x128xf32>
    %cst_18 = arith.constant 1.000000e+00 : f32
    %67 = vector.broadcast %cst_18 : f32 to vector<8x128xf32>
    %68 = arith.addf %67, %66 : vector<8x128xf32>
    %69 = arith.divf %67, %68 : vector<8x128xf32>
    %70 = vector.extract_strided_slice %49 {offsets = [0, 256], sizes = [8, 128], strides = [1, 1]} : vector<8x384xbf16> to vector<8x128xbf16>
    %71 = arith.extf %70 : vector<8x128xbf16> to vector<8x128xf32>
    %72 = vector.extract_strided_slice %51 {offsets = [0, 256], sizes = [8, 128], strides = [1, 1]} : vector<8x384xf32> to vector<8x128xf32>
    %73 = vector.broadcast %4 : vector<1x128xf32> to vector<8x128xf32>
    %74 = arith.addf %72, %73 : vector<8x128xf32>
    %75 = arith.mulf %60, %74 : vector<8x128xf32>
    %76 = arith.addf %71, %75 : vector<8x128xf32>
    %77 = math.tanh %76 : vector<8x128xf32>
    %cst_19 = arith.constant 1.000000e+00 : f32
    %78 = vector.broadcast %cst_19 : f32 to vector<8x128xf32>
    %79 = arith.subf %78, %69 : vector<8x128xf32>
    %80 = arith.mulf %79, %77 : vector<8x128xf32>
    %81 = arith.mulf %69, %41 : vector<8x128xf32>
    %82 = arith.addf %80, %81 : vector<8x128xf32>
    %83 = arith.truncf %82 : vector<8x128xf32> to vector<8x128xbf16>
    %84 = arith.index_cast %c1_i32 : i32 to index
    %c0_20 = arith.constant 0 : index
    %c0_21 = arith.constant 0 : index
    %85 = vector.load %arg6[%84, %c0_20, %c0_21] : memref<8x8x128xbf16, #tpu.memory_space<vmem>>, vector<1x8x128xbf16>
    %86 = vector.shape_cast %85 : vector<1x8x128xbf16> to vector<8x128xbf16>
    %87 = vector.shape_cast %83 : vector<8x128xbf16> to vector<1x8x128xbf16>
    tpu.vector_store %arg6[%84, %c0_20, %c0_21], %87 {strides = array<i32>} : memref<8x8x128xbf16, #tpu.memory_space<vmem>>, vector<1x8x128xbf16>,
    %c2_i32 = arith.constant 2 : i32
    %88 = arith.index_cast %c2_i32 : i32 to index
    %c0_22 = arith.constant 0 : index
    %c0_23 = arith.constant 0 : index
    %89 = vector.load %arg2[%88, %c0_22, %c0_23] : memref<8x8x384xbf16, #tpu.memory_space<vmem>>, vector<1x8x384xbf16>
    %90 = vector.shape_cast %89 : vector<1x8x384xbf16> to vector<8x384xbf16>
    %91 = arith.truncf %82 : vector<8x128xf32> to vector<8x128xbf16>
    %cst_24 = arith.constant dense<0.000000e+00> : vector<8x384xf32>
    %92 = tpu.matmul %91, %3, %cst_24 {dimension_numbers = #tpu.dot_dimension_numbers<[1], [0], [0], [1], [0, 0, 1, 1], [], []>} : vector<8x128xbf16>, vector<128x384xbf16>, vector<8x384xf32> -> vector<8x384xf32>
    %93 = vector.extract_strided_slice %90 {offsets = [0, 0], sizes = [8, 128], strides = [1, 1]} : vector<8x384xbf16> to vector<8x128xbf16>
    %94 = arith.extf %93 : vector<8x128xbf16> to vector<8x128xf32>
    %95 = vector.extract_strided_slice %92 {offsets = [0, 0], sizes = [8, 128], strides = [1, 1]} : vector<8x384xf32> to vector<8x128xf32>
    %96 = arith.addf %94, %95 : vector<8x128xf32>
    %97 = arith.negf %96 : vector<8x128xf32>
    %98 = math.exp %97 : vector<8x128xf32>
    %cst_25 = arith.constant 1.000000e+00 : f32
    %99 = vector.broadcast %cst_25 : f32 to vector<8x128xf32>
    %100 = arith.addf %99, %98 : vector<8x128xf32>
    %101 = arith.divf %99, %100 : vector<8x128xf32>
    %102 = vector.extract_strided_slice %90 {offsets = [0, 128], sizes = [8, 128], strides = [1, 1]} : vector<8x384xbf16> to vector<8x128xbf16>
    %103 = arith.extf %102 : vector<8x128xbf16> to vector<8x128xf32>
    %104 = vector.extract_strided_slice %92 {offsets = [0, 128], sizes = [8, 128], strides = [1, 1]} : vector<8x384xf32> to vector<8x128xf32>
    %105 = arith.addf %103, %104 : vector<8x128xf32>
    %106 = arith.negf %105 : vector<8x128xf32>
    %107 = math.exp %106 : vector<8x128xf32>
    %cst_26 = arith.constant 1.000000e+00 : f32
    %108 = vector.broadcast %cst_26 : f32 to vector<8x128xf32>
    %109 = arith.addf %108, %107 : vector<8x128xf32>
    %110 = arith.divf %108, %109 : vector<8x128xf32>
    %111 = vector.extract_strided_slice %90 {offsets = [0, 256], sizes = [8, 128], strides = [1, 1]} : vector<8x384xbf16> to vector<8x128xbf16>
    %112 = arith.extf %111 : vector<8x128xbf16> to vector<8x128xf32>
    %113 = vector.extract_strided_slice %92 {offsets = [0, 256], sizes = [8, 128], strides = [1, 1]} : vector<8x384xf32> to vector<8x128xf32>
    %114 = vector.broadcast %4 : vector<1x128xf32> to vector<8x128xf32>
    %115 = arith.addf %113, %114 : vector<8x128xf32>
    %116 = arith.mulf %101, %115 : vector<8x128xf32>
    %117 = arith.addf %112, %116 : vector<8x128xf32>
    %118 = math.tanh %117 : vector<8x128xf32>
    %cst_27 = arith.constant 1.000000e+00 : f32
    %119 = vector.broadcast %cst_27 : f32 to vector<8x128xf32>
    %120 = arith.subf %119, %110 : vector<8x128xf32>
    %121 = arith.mulf %120, %118 : vector<8x128xf32>
    %122 = arith.mulf %110, %82 : vector<8x128xf32>
    %123 = arith.addf %121, %122 : vector<8x128xf32>
    %124 = arith.truncf %123 : vector<8x128xf32> to vector<8x128xbf16>
    %125 = arith.index_cast %c2_i32 : i32 to index
    %c0_28 = arith.constant 0 : index
    %c0_29 = arith.constant 0 : index
    %126 = vector.load %arg6[%125, %c0_28, %c0_29] : memref<8x8x128xbf16, #tpu.memory_space<vmem>>, vector<1x8x128xbf16>
    %127 = vector.shape_cast %126 : vector<1x8x128xbf16> to vector<8x128xbf16>
    %128 = vector.shape_cast %124 : vector<8x128xbf16> to vector<1x8x128xbf16>
    tpu.vector_store %arg6[%125, %c0_28, %c0_29], %128 {strides = array<i32>} : memref<8x8x128xbf16, #tpu.memory_space<vmem>>, vector<1x8x128xbf16>,
    %c3_i32 = arith.constant 3 : i32
    %129 = arith.index_cast %c3_i32 : i32 to index
    %c0_30 = arith.constant 0 : index
    %c0_31 = arith.constant 0 : index
    %130 = vector.load %arg2[%129, %c0_30, %c0_31] : memref<8x8x384xbf16, #tpu.memory_space<vmem>>, vector<1x8x384xbf16>
    %131 = vector.shape_cast %130 : vector<1x8x384xbf16> to vector<8x384xbf16>
    %132 = arith.truncf %123 : vector<8x128xf32> to vector<8x128xbf16>
    %cst_32 = arith.constant dense<0.000000e+00> : vector<8x384xf32>
    %133 = tpu.matmul %132, %3, %cst_32 {dimension_numbers = #tpu.dot_dimension_numbers<[1], [0], [0], [1], [0, 0, 1, 1], [], []>} : vector<8x128xbf16>, vector<128x384xbf16>, vector<8x384xf32> -> vector<8x384xf32>
    %134 = vector.extract_strided_slice %131 {offsets = [0, 0], sizes = [8, 128], strides = [1, 1]} : vector<8x384xbf16> to vector<8x128xbf16>
    %135 = arith.extf %134 : vector<8x128xbf16> to vector<8x128xf32>
    %136 = vector.extract_strided_slice %133 {offsets = [0, 0], sizes = [8, 128], strides = [1, 1]} : vector<8x384xf32> to vector<8x128xf32>
    %137 = arith.addf %135, %136 : vector<8x128xf32>
    %138 = arith.negf %137 : vector<8x128xf32>
    %139 = math.exp %138 : vector<8x128xf32>
    %cst_33 = arith.constant 1.000000e+00 : f32
    %140 = vector.broadcast %cst_33 : f32 to vector<8x128xf32>
    %141 = arith.addf %140, %139 : vector<8x128xf32>
    %142 = arith.divf %140, %141 : vector<8x128xf32>
    %143 = vector.extract_strided_slice %131 {offsets = [0, 128], sizes = [8, 128], strides = [1, 1]} : vector<8x384xbf16> to vector<8x128xbf16>
    %144 = arith.extf %143 : vector<8x128xbf16> to vector<8x128xf32>
    %145 = vector.extract_strided_slice %133 {offsets = [0, 128], sizes = [8, 128], strides = [1, 1]} : vector<8x384xf32> to vector<8x128xf32>
    %146 = arith.addf %144, %145 : vector<8x128xf32>
    %147 = arith.negf %146 : vector<8x128xf32>
    %148 = math.exp %147 : vector<8x128xf32>
    %cst_34 = arith.constant 1.000000e+00 : f32
    %149 = vector.broadcast %cst_34 : f32 to vector<8x128xf32>
    %150 = arith.addf %149, %148 : vector<8x128xf32>
    %151 = arith.divf %149, %150 : vector<8x128xf32>
    %152 = vector.extract_strided_slice %131 {offsets = [0, 256], sizes = [8, 128], strides = [1, 1]} : vector<8x384xbf16> to vector<8x128xbf16>
    %153 = arith.extf %152 : vector<8x128xbf16> to vector<8x128xf32>
    %154 = vector.extract_strided_slice %133 {offsets = [0, 256], sizes = [8, 128], strides = [1, 1]} : vector<8x384xf32> to vector<8x128xf32>
    %155 = vector.broadcast %4 : vector<1x128xf32> to vector<8x128xf32>
    %156 = arith.addf %154, %155 : vector<8x128xf32>
    %157 = arith.mulf %142, %156 : vector<8x128xf32>
    %158 = arith.addf %153, %157 : vector<8x128xf32>
    %159 = math.tanh %158 : vector<8x128xf32>
    %cst_35 = arith.constant 1.000000e+00 : f32
    %160 = vector.broadcast %cst_35 : f32 to vector<8x128xf32>
    %161 = arith.subf %160, %151 : vector<8x128xf32>
    %162 = arith.mulf %161, %159 : vector<8x128xf32>
    %163 = arith.mulf %151, %123 : vector<8x128xf32>
    %164 = arith.addf %162, %163 : vector<8x128xf32>
    %165 = arith.truncf %164 : vector<8x128xf32> to vector<8x128xbf16>
    %166 = arith.index_cast %c3_i32 : i32 to index
    %c0_36 = arith.constant 0 : index
    %c0_37 = arith.constant 0 : index
    %167 = vector.load %arg6[%166, %c0_36, %c0_37] : memref<8x8x128xbf16, #tpu.memory_space<vmem>>, vector<1x8x128xbf16>
    %168 = vector.shape_cast %167 : vector<1x8x128xbf16> to vector<8x128xbf16>
    %169 = vector.shape_cast %165 : vector<8x128xbf16> to vector<1x8x128xbf16>
    tpu.vector_store %arg6[%166, %c0_36, %c0_37], %169 {strides = array<i32>} : memref<8x8x128xbf16, #tpu.memory_space<vmem>>, vector<1x8x128xbf16>,
    %c4_i32 = arith.constant 4 : i32
    %170 = arith.index_cast %c4_i32 : i32 to index
    %c0_38 = arith.constant 0 : index
    %c0_39 = arith.constant 0 : index
    %171 = vector.load %arg2[%170, %c0_38, %c0_39] : memref<8x8x384xbf16, #tpu.memory_space<vmem>>, vector<1x8x384xbf16>
    %172 = vector.shape_cast %171 : vector<1x8x384xbf16> to vector<8x384xbf16>
    %173 = arith.truncf %164 : vector<8x128xf32> to vector<8x128xbf16>
    %cst_40 = arith.constant dense<0.000000e+00> : vector<8x384xf32>
    %174 = tpu.matmul %173, %3, %cst_40 {dimension_numbers = #tpu.dot_dimension_numbers<[1], [0], [0], [1], [0, 0, 1, 1], [], []>} : vector<8x128xbf16>, vector<128x384xbf16>, vector<8x384xf32> -> vector<8x384xf32>
    %175 = vector.extract_strided_slice %172 {offsets = [0, 0], sizes = [8, 128], strides = [1, 1]} : vector<8x384xbf16> to vector<8x128xbf16>
    %176 = arith.extf %175 : vector<8x128xbf16> to vector<8x128xf32>
    %177 = vector.extract_strided_slice %174 {offsets = [0, 0], sizes = [8, 128], strides = [1, 1]} : vector<8x384xf32> to vector<8x128xf32>
    %178 = arith.addf %176, %177 : vector<8x128xf32>
    %179 = arith.negf %178 : vector<8x128xf32>
    %180 = math.exp %179 : vector<8x128xf32>
    %cst_41 = arith.constant 1.000000e+00 : f32
    %181 = vector.broadcast %cst_41 : f32 to vector<8x128xf32>
    %182 = arith.addf %181, %180 : vector<8x128xf32>
    %183 = arith.divf %181, %182 : vector<8x128xf32>
    %184 = vector.extract_strided_slice %172 {offsets = [0, 128], sizes = [8, 128], strides = [1, 1]} : vector<8x384xbf16> to vector<8x128xbf16>
    %185 = arith.extf %184 : vector<8x128xbf16> to vector<8x128xf32>
    %186 = vector.extract_strided_slice %174 {offsets = [0, 128], sizes = [8, 128], strides = [1, 1]} : vector<8x384xf32> to vector<8x128xf32>
    %187 = arith.addf %185, %186 : vector<8x128xf32>
    %188 = arith.negf %187 : vector<8x128xf32>
    %189 = math.exp %188 : vector<8x128xf32>
    %cst_42 = arith.constant 1.000000e+00 : f32
    %190 = vector.broadcast %cst_42 : f32 to vector<8x128xf32>
    %191 = arith.addf %190, %189 : vector<8x128xf32>
    %192 = arith.divf %190, %191 : vector<8x128xf32>
    %193 = vector.extract_strided_slice %172 {offsets = [0, 256], sizes = [8, 128], strides = [1, 1]} : vector<8x384xbf16> to vector<8x128xbf16>
    %194 = arith.extf %193 : vector<8x128xbf16> to vector<8x128xf32>
    %195 = vector.extract_strided_slice %174 {offsets = [0, 256], sizes = [8, 128], strides = [1, 1]} : vector<8x384xf32> to vector<8x128xf32>
    %196 = vector.broadcast %4 : vector<1x128xf32> to vector<8x128xf32>
    %197 = arith.addf %195, %196 : vector<8x128xf32>
    %198 = arith.mulf %183, %197 : vector<8x128xf32>
    %199 = arith.addf %194, %198 : vector<8x128xf32>
    %200 = math.tanh %199 : vector<8x128xf32>
    %cst_43 = arith.constant 1.000000e+00 : f32
    %201 = vector.broadcast %cst_43 : f32 to vector<8x128xf32>
    %202 = arith.subf %201, %192 : vector<8x128xf32>
    %203 = arith.mulf %202, %200 : vector<8x128xf32>
    %204 = arith.mulf %192, %164 : vector<8x128xf32>
    %205 = arith.addf %203, %204 : vector<8x128xf32>
    %206 = arith.truncf %205 : vector<8x128xf32> to vector<8x128xbf16>
    %207 = arith.index_cast %c4_i32 : i32 to index
    %c0_44 = arith.constant 0 : index
    %c0_45 = arith.constant 0 : index
    %208 = vector.load %arg6[%207, %c0_44, %c0_45] : memref<8x8x128xbf16, #tpu.memory_space<vmem>>, vector<1x8x128xbf16>
    %209 = vector.shape_cast %208 : vector<1x8x128xbf16> to vector<8x128xbf16>
    %210 = vector.shape_cast %206 : vector<8x128xbf16> to vector<1x8x128xbf16>
    tpu.vector_store %arg6[%207, %c0_44, %c0_45], %210 {strides = array<i32>} : memref<8x8x128xbf16, #tpu.memory_space<vmem>>, vector<1x8x128xbf16>,
    %c5_i32 = arith.constant 5 : i32
    %211 = arith.index_cast %c5_i32 : i32 to index
    %c0_46 = arith.constant 0 : index
    %c0_47 = arith.constant 0 : index
    %212 = vector.load %arg2[%211, %c0_46, %c0_47] : memref<8x8x384xbf16, #tpu.memory_space<vmem>>, vector<1x8x384xbf16>
    %213 = vector.shape_cast %212 : vector<1x8x384xbf16> to vector<8x384xbf16>
    %214 = arith.truncf %205 : vector<8x128xf32> to vector<8x128xbf16>
    %cst_48 = arith.constant dense<0.000000e+00> : vector<8x384xf32>
    %215 = tpu.matmul %214, %3, %cst_48 {dimension_numbers = #tpu.dot_dimension_numbers<[1], [0], [0], [1], [0, 0, 1, 1], [], []>} : vector<8x128xbf16>, vector<128x384xbf16>, vector<8x384xf32> -> vector<8x384xf32>
    %216 = vector.extract_strided_slice %213 {offsets = [0, 0], sizes = [8, 128], strides = [1, 1]} : vector<8x384xbf16> to vector<8x128xbf16>
    %217 = arith.extf %216 : vector<8x128xbf16> to vector<8x128xf32>
    %218 = vector.extract_strided_slice %215 {offsets = [0, 0], sizes = [8, 128], strides = [1, 1]} : vector<8x384xf32> to vector<8x128xf32>
    %219 = arith.addf %217, %218 : vector<8x128xf32>
    %220 = arith.negf %219 : vector<8x128xf32>
    %221 = math.exp %220 : vector<8x128xf32>
    %cst_49 = arith.constant 1.000000e+00 : f32
    %222 = vector.broadcast %cst_49 : f32 to vector<8x128xf32>
    %223 = arith.addf %222, %221 : vector<8x128xf32>
    %224 = arith.divf %222, %223 : vector<8x128xf32>
    %225 = vector.extract_strided_slice %213 {offsets = [0, 128], sizes = [8, 128], strides = [1, 1]} : vector<8x384xbf16> to vector<8x128xbf16>
    %226 = arith.extf %225 : vector<8x128xbf16> to vector<8x128xf32>
    %227 = vector.extract_strided_slice %215 {offsets = [0, 128], sizes = [8, 128], strides = [1, 1]} : vector<8x384xf32> to vector<8x128xf32>
    %228 = arith.addf %226, %227 : vector<8x128xf32>
    %229 = arith.negf %228 : vector<8x128xf32>
    %230 = math.exp %229 : vector<8x128xf32>
    %cst_50 = arith.constant 1.000000e+00 : f32
    %231 = vector.broadcast %cst_50 : f32 to vector<8x128xf32>
    %232 = arith.addf %231, %230 : vector<8x128xf32>
    %233 = arith.divf %231, %232 : vector<8x128xf32>
    %234 = vector.extract_strided_slice %213 {offsets = [0, 256], sizes = [8, 128], strides = [1, 1]} : vector<8x384xbf16> to vector<8x128xbf16>
    %235 = arith.extf %234 : vector<8x128xbf16> to vector<8x128xf32>
    %236 = vector.extract_strided_slice %215 {offsets = [0, 256], sizes = [8, 128], strides = [1, 1]} : vector<8x384xf32> to vector<8x128xf32>
    %237 = vector.broadcast %4 : vector<1x128xf32> to vector<8x128xf32>
    %238 = arith.addf %236, %237 : vector<8x128xf32>
    %239 = arith.mulf %224, %238 : vector<8x128xf32>
    %240 = arith.addf %235, %239 : vector<8x128xf32>
    %241 = math.tanh %240 : vector<8x128xf32>
    %cst_51 = arith.constant 1.000000e+00 : f32
    %242 = vector.broadcast %cst_51 : f32 to vector<8x128xf32>
    %243 = arith.subf %242, %233 : vector<8x128xf32>
    %244 = arith.mulf %243, %241 : vector<8x128xf32>
    %245 = arith.mulf %233, %205 : vector<8x128xf32>
    %246 = arith.addf %244, %245 : vector<8x128xf32>
    %247 = arith.truncf %246 : vector<8x128xf32> to vector<8x128xbf16>
    %248 = arith.index_cast %c5_i32 : i32 to index
    %c0_52 = arith.constant 0 : index
    %c0_53 = arith.constant 0 : index
    %249 = vector.load %arg6[%248, %c0_52, %c0_53] : memref<8x8x128xbf16, #tpu.memory_space<vmem>>, vector<1x8x128xbf16>
    %250 = vector.shape_cast %249 : vector<1x8x128xbf16> to vector<8x128xbf16>
    %251 = vector.shape_cast %247 : vector<8x128xbf16> to vector<1x8x128xbf16>
    tpu.vector_store %arg6[%248, %c0_52, %c0_53], %251 {strides = array<i32>} : memref<8x8x128xbf16, #tpu.memory_space<vmem>>, vector<1x8x128xbf16>,
    %c6_i32 = arith.constant 6 : i32
    %252 = arith.index_cast %c6_i32 : i32 to index
    %c0_54 = arith.constant 0 : index
    %c0_55 = arith.constant 0 : index
    %253 = vector.load %arg2[%252, %c0_54, %c0_55] : memref<8x8x384xbf16, #tpu.memory_space<vmem>>, vector<1x8x384xbf16>
    %254 = vector.shape_cast %253 : vector<1x8x384xbf16> to vector<8x384xbf16>
    %255 = arith.truncf %246 : vector<8x128xf32> to vector<8x128xbf16>
    %cst_56 = arith.constant dense<0.000000e+00> : vector<8x384xf32>
    %256 = tpu.matmul %255, %3, %cst_56 {dimension_numbers = #tpu.dot_dimension_numbers<[1], [0], [0], [1], [0, 0, 1, 1], [], []>} : vector<8x128xbf16>, vector<128x384xbf16>, vector<8x384xf32> -> vector<8x384xf32>
    %257 = vector.extract_strided_slice %254 {offsets = [0, 0], sizes = [8, 128], strides = [1, 1]} : vector<8x384xbf16> to vector<8x128xbf16>
    %258 = arith.extf %257 : vector<8x128xbf16> to vector<8x128xf32>
    %259 = vector.extract_strided_slice %256 {offsets = [0, 0], sizes = [8, 128], strides = [1, 1]} : vector<8x384xf32> to vector<8x128xf32>
    %260 = arith.addf %258, %259 : vector<8x128xf32>
    %261 = arith.negf %260 : vector<8x128xf32>
    %262 = math.exp %261 : vector<8x128xf32>
    %cst_57 = arith.constant 1.000000e+00 : f32
    %263 = vector.broadcast %cst_57 : f32 to vector<8x128xf32>
    %264 = arith.addf %263, %262 : vector<8x128xf32>
    %265 = arith.divf %263, %264 : vector<8x128xf32>
    %266 = vector.extract_strided_slice %254 {offsets = [0, 128], sizes = [8, 128], strides = [1, 1]} : vector<8x384xbf16> to vector<8x128xbf16>
    %267 = arith.extf %266 : vector<8x128xbf16> to vector<8x128xf32>
    %268 = vector.extract_strided_slice %256 {offsets = [0, 128], sizes = [8, 128], strides = [1, 1]} : vector<8x384xf32> to vector<8x128xf32>
    %269 = arith.addf %267, %268 : vector<8x128xf32>
    %270 = arith.negf %269 : vector<8x128xf32>
    %271 = math.exp %270 : vector<8x128xf32>
    %cst_58 = arith.constant 1.000000e+00 : f32
    %272 = vector.broadcast %cst_58 : f32 to vector<8x128xf32>
    %273 = arith.addf %272, %271 : vector<8x128xf32>
    %274 = arith.divf %272, %273 : vector<8x128xf32>
    %275 = vector.extract_strided_slice %254 {offsets = [0, 256], sizes = [8, 128], strides = [1, 1]} : vector<8x384xbf16> to vector<8x128xbf16>
    %276 = arith.extf %275 : vector<8x128xbf16> to vector<8x128xf32>
    %277 = vector.extract_strided_slice %256 {offsets = [0, 256], sizes = [8, 128], strides = [1, 1]} : vector<8x384xf32> to vector<8x128xf32>
    %278 = vector.broadcast %4 : vector<1x128xf32> to vector<8x128xf32>
    %279 = arith.addf %277, %278 : vector<8x128xf32>
    %280 = arith.mulf %265, %279 : vector<8x128xf32>
    %281 = arith.addf %276, %280 : vector<8x128xf32>
    %282 = math.tanh %281 : vector<8x128xf32>
    %cst_59 = arith.constant 1.000000e+00 : f32
    %283 = vector.broadcast %cst_59 : f32 to vector<8x128xf32>
    %284 = arith.subf %283, %274 : vector<8x128xf32>
    %285 = arith.mulf %284, %282 : vector<8x128xf32>
    %286 = arith.mulf %274, %246 : vector<8x128xf32>
    %287 = arith.addf %285, %286 : vector<8x128xf32>
    %288 = arith.truncf %287 : vector<8x128xf32> to vector<8x128xbf16>
    %289 = arith.index_cast %c6_i32 : i32 to index
    %c0_60 = arith.constant 0 : index
    %c0_61 = arith.constant 0 : index
    %290 = vector.load %arg6[%289, %c0_60, %c0_61] : memref<8x8x128xbf16, #tpu.memory_space<vmem>>, vector<1x8x128xbf16>
    %291 = vector.shape_cast %290 : vector<1x8x128xbf16> to vector<8x128xbf16>
    %292 = vector.shape_cast %288 : vector<8x128xbf16> to vector<1x8x128xbf16>
    tpu.vector_store %arg6[%289, %c0_60, %c0_61], %292 {strides = array<i32>} : memref<8x8x128xbf16, #tpu.memory_space<vmem>>, vector<1x8x128xbf16>,
    %c7_i32 = arith.constant 7 : i32
    %293 = arith.index_cast %c7_i32 : i32 to index
    %c0_62 = arith.constant 0 : index
    %c0_63 = arith.constant 0 : index
    %294 = vector.load %arg2[%293, %c0_62, %c0_63] : memref<8x8x384xbf16, #tpu.memory_space<vmem>>, vector<1x8x384xbf16>
    %295 = vector.shape_cast %294 : vector<1x8x384xbf16> to vector<8x384xbf16>
    %296 = arith.truncf %287 : vector<8x128xf32> to vector<8x128xbf16>
    %cst_64 = arith.constant dense<0.000000e+00> : vector<8x384xf32>
    %297 = tpu.matmul %296, %3, %cst_64 {dimension_numbers = #tpu.dot_dimension_numbers<[1], [0], [0], [1], [0, 0, 1, 1], [], []>} : vector<8x128xbf16>, vector<128x384xbf16>, vector<8x384xf32> -> vector<8x384xf32>
    %298 = vector.extract_strided_slice %295 {offsets = [0, 0], sizes = [8, 128], strides = [1, 1]} : vector<8x384xbf16> to vector<8x128xbf16>
    %299 = arith.extf %298 : vector<8x128xbf16> to vector<8x128xf32>
    %300 = vector.extract_strided_slice %297 {offsets = [0, 0], sizes = [8, 128], strides = [1, 1]} : vector<8x384xf32> to vector<8x128xf32>
    %301 = arith.addf %299, %300 : vector<8x128xf32>
    %302 = arith.negf %301 : vector<8x128xf32>
    %303 = math.exp %302 : vector<8x128xf32>
    %cst_65 = arith.constant 1.000000e+00 : f32
    %304 = vector.broadcast %cst_65 : f32 to vector<8x128xf32>
    %305 = arith.addf %304, %303 : vector<8x128xf32>
    %306 = arith.divf %304, %305 : vector<8x128xf32>
    %307 = vector.extract_strided_slice %295 {offsets = [0, 128], sizes = [8, 128], strides = [1, 1]} : vector<8x384xbf16> to vector<8x128xbf16>
    %308 = arith.extf %307 : vector<8x128xbf16> to vector<8x128xf32>
    %309 = vector.extract_strided_slice %297 {offsets = [0, 128], sizes = [8, 128], strides = [1, 1]} : vector<8x384xf32> to vector<8x128xf32>
    %310 = arith.addf %308, %309 : vector<8x128xf32>
    %311 = arith.negf %310 : vector<8x128xf32>
    %312 = math.exp %311 : vector<8x128xf32>
    %cst_66 = arith.constant 1.000000e+00 : f32
    %313 = vector.broadcast %cst_66 : f32 to vector<8x128xf32>
    %314 = arith.addf %313, %312 : vector<8x128xf32>
    %315 = arith.divf %313, %314 : vector<8x128xf32>
    %316 = vector.extract_strided_slice %295 {offsets = [0, 256], sizes = [8, 128], strides = [1, 1]} : vector<8x384xbf16> to vector<8x128xbf16>
    %317 = arith.extf %316 : vector<8x128xbf16> to vector<8x128xf32>
    %318 = vector.extract_strided_slice %297 {offsets = [0, 256], sizes = [8, 128], strides = [1, 1]} : vector<8x384xf32> to vector<8x128xf32>
    %319 = vector.broadcast %4 : vector<1x128xf32> to vector<8x128xf32>
    %320 = arith.addf %318, %319 : vector<8x128xf32>
    %321 = arith.mulf %306, %320 : vector<8x128xf32>
    %322 = arith.addf %317, %321 : vector<8x128xf32>
    %323 = math.tanh %322 : vector<8x128xf32>
    %cst_67 = arith.constant 1.000000e+00 : f32
    %324 = vector.broadcast %cst_67 : f32 to vector<8x128xf32>
    %325 = arith.subf %324, %315 : vector<8x128xf32>
    %326 = arith.mulf %325, %323 : vector<8x128xf32>
    %327 = arith.mulf %315, %287 : vector<8x128xf32>
    %328 = arith.addf %326, %327 : vector<8x128xf32>
    %329 = arith.truncf %328 : vector<8x128xf32> to vector<8x128xbf16>
    %330 = arith.index_cast %c7_i32 : i32 to index
    %c0_68 = arith.constant 0 : index
    %c0_69 = arith.constant 0 : index
    %331 = vector.load %arg6[%330, %c0_68, %c0_69] : memref<8x8x128xbf16, #tpu.memory_space<vmem>>, vector<1x8x128xbf16>
    %332 = vector.shape_cast %331 : vector<1x8x128xbf16> to vector<8x128xbf16>
    %333 = vector.shape_cast %329 : vector<8x128xbf16> to vector<1x8x128xbf16>
    tpu.vector_store %arg6[%330, %c0_68, %c0_69], %333 {strides = array<i32>} : memref<8x8x128xbf16, #tpu.memory_space<vmem>>, vector<1x8x128xbf16>,
    %c8_i32 = arith.constant 8 : i32
    %c0_70 = arith.constant 0 : index
    %c0_71 = arith.constant 0 : index
    %334 = vector.load %arg7[%c0_70, %c0_71] : memref<8x128xf32, #tpu.memory_space<vmem>>, vector<8x128xf32>
    tpu.vector_store %arg7[%c0_70, %c0_71], %328 {strides = array<i32>} : memref<8x128xf32, #tpu.memory_space<vmem>>, vector<8x128xf32>,
    return
  }
  func.func @transform_0(%arg0: i32, %arg1: i32) -> (i32, i32, i32) {
    %c0_i32 = arith.constant 0 : i32
    %c0_i32_0 = arith.constant 0 : i32
    return %arg1, %arg0, %c0_i32 : i32, i32, i32
  }
  func.func @transform_1(%arg0: i32, %arg1: i32) -> (i32, i32) {
    %c0_i32 = arith.constant 0 : i32
    %c0_i32_0 = arith.constant 0 : i32
    return %arg0, %c0_i32 : i32, i32
  }
  func.func @transform_2(%arg0: i32, %arg1: i32) -> (i32, i32) {
    %c0_i32 = arith.constant 0 : i32
    %c0_i32_0 = arith.constant 0 : i32
    %c0_i32_1 = arith.constant 0 : i32
    return %c0_i32, %c0_i32_0 : i32, i32
  }
  func.func @transform_3(%arg0: i32, %arg1: i32) -> (i32, i32) {
    %c0_i32 = arith.constant 0 : i32
    %c0_i32_0 = arith.constant 0 : i32
    %c0_i32_1 = arith.constant 0 : i32
    return %c0_i32, %c0_i32_0 : i32, i32
  }
  func.func @transform_4(%arg0: i32, %arg1: i32) -> (i32, i32, i32) {
    %c0_i32 = arith.constant 0 : i32
    %c0_i32_0 = arith.constant 0 : i32
    return %arg1, %arg0, %c0_i32 : i32, i32, i32
  }
}

module attributes {stable_mosaic.version = 11 : i64} {
  func.func @_out_proj_kernel(%arg0: i32, %arg1: memref<64x128xbf16, #tpu.memory_space<vmem>>, %arg2: memref<128x512xbf16, #tpu.memory_space<vmem>>, %arg3: memref<1x512xf32, #tpu.memory_space<vmem>>, %arg4: memref<64x512xf32, #tpu.memory_space<vmem>>) attributes {dimension_semantics = [#tpu.dimension_semantics<parallel>], iteration_bounds = array<i64: 2>, scalar_prefetch = 0 : i64, scratch_operands = 0 : i64, tpu.core_type = #tpu.core_type<tc>, window_params = [{pipeline_mode = #tpu.pipeline_mode<synchronous>, transform_indices = @transform_0, window_bounds = array<i64: 64, 128>}, {transform_indices = @transform_1, window_bounds = array<i64: 128, 512>}, {transform_indices = @transform_2, window_bounds = array<i64: 1, 512>}, {transform_indices = @transform_3, window_bounds = array<i64: 64, 512>}]} {
    %c0 = arith.constant 0 : index
    %c0_0 = arith.constant 0 : index
    %0 = vector.load %arg1[%c0, %c0_0] : memref<64x128xbf16, #tpu.memory_space<vmem>>, vector<64x128xbf16>
    %c0_1 = arith.constant 0 : index
    %c0_2 = arith.constant 0 : index
    %1 = vector.load %arg2[%c0_1, %c0_2] : memref<128x512xbf16, #tpu.memory_space<vmem>>, vector<128x512xbf16>
    %cst = arith.constant dense<0.000000e+00> : vector<64x512xf32>
    %2 = tpu.matmul %0, %1, %cst {dimension_numbers = #tpu.dot_dimension_numbers<[1], [0], [0], [1], [0, 0, 1, 1], [], []>} : vector<64x128xbf16>, vector<128x512xbf16>, vector<64x512xf32> -> vector<64x512xf32>
    %c0_3 = arith.constant 0 : index
    %c0_4 = arith.constant 0 : index
    %3 = vector.load %arg3[%c0_3, %c0_4] : memref<1x512xf32, #tpu.memory_space<vmem>>, vector<1x512xf32>
    %4 = vector.broadcast %3 : vector<1x512xf32> to vector<64x512xf32>
    %5 = arith.addf %2, %4 : vector<64x512xf32>
    %c0_5 = arith.constant 0 : index
    %c0_6 = arith.constant 0 : index
    %6 = vector.load %arg4[%c0_5, %c0_6] : memref<64x512xf32, #tpu.memory_space<vmem>>, vector<64x512xf32>
    tpu.vector_store %arg4[%c0_5, %c0_6], %5 {strides = array<i32>} : memref<64x512xf32, #tpu.memory_space<vmem>>, vector<64x512xf32>,
    return
  }
  func.func @transform_0(%arg0: i32) -> (i32, i32) {
    %c0_i32 = arith.constant 0 : i32
    %c0_i32_0 = arith.constant 0 : i32
    %c0_i32_1 = arith.constant 0 : i32
    return %c0_i32, %c0_i32_0 : i32, i32
  }
  func.func @transform_1(%arg0: i32) -> (i32, i32) {
    %c0_i32 = arith.constant 0 : i32
    %c0_i32_0 = arith.constant 0 : i32
    return %c0_i32, %arg0 : i32, i32
  }
  func.func @transform_2(%arg0: i32) -> (i32, i32) {
    %c0_i32 = arith.constant 0 : i32
    %c0_i32_0 = arith.constant 0 : i32
    return %c0_i32, %arg0 : i32, i32
  }
  func.func @transform_3(%arg0: i32) -> (i32, i32) {
    %c0_i32 = arith.constant 0 : i32
    %c0_i32_0 = arith.constant 0 : i32
    return %c0_i32, %arg0 : i32, i32
  }
}

</mosaic_0001>

<bundles_post_ra>
// kernel: forward.4
= control target key start
LH: loop header
LB: loop body
LE: loop exit
PB: predicated region body
PF: predicated region fallthrough
CT: control target
= control target key end

     0   :  { %s720_s18 = smov 0   ;;  %s722_s19 = smov 0   ;;  %s793_s0 = inlined_call_operand.vmem [shape: bf16[2,56,32], index: 0, kind: input, shape index: {}]   ;;  %s794_s1 = inlined_call_operand.vmem [shape: bf16[32,128], index: 1, kind: input, shape index: {}]   ;;  %s795_s2 = inlined_call_operand.vmem [shape: f32[1,128], index: 2, kind: input, shape index: {}]   ;;  %s796_s3 = inlined_call_operand.vmem [shape: bf16[128,128], index: 3, kind: input, shape index: {}]   ;;  %s797_s4 = inlined_call_operand.vmem [shape: f32[1,128], index: 4, kind: input, shape index: {}]   ;;  %s798_s5 = inlined_call_operand.vmem [shape: f32[2,1,128], index: 5, kind: output, shape index: {}]  }
   0x1   :  { %s724_s20 = smov 0  }
   0x2 LB: > { %s27_s21 = sadd.s32 1, %s683_s19  ;;  %p563_p0 = scmp.ge.s32.totalorder %s687_s20, 1  ;;  %s687_s20 = sphi %s724_s20, %s15_s20   ;;  %s683_s19 = sphi %s722_s19, %s800_s19   ;;  %s679_s18 = sphi %s720_s18, %s799_s18  }
   0x3   : > { %p29_p1 = scmp.ge.s32.totalorder %s27_s21, 2  ;;  %p206_p2 = scmp.lt.s32.totalorder %s687_s20, 3 }
   0x5   : > { %s802_s21 = smov (%p29_p1, %s27_s21), 0  ;;  %p207_p3 = pnand %p563_p0, %p206_p2 }
   0x6   : > { %p237_p4 = scmp.lt.s32.totalorder (!%p207_p3), %s679_s18, 1 }
   0x7   : > { %210 = sbr.rel (%p207_p3) target bundleno = 342 (0x156), region = 40 }
   0xc   : > { %v627_v0 = vld [vmem:[%s794_s1 + $0x8] sm:$0xff]  ;;  %v626_v1 = vld [vmem:[%s794_s1] sm:$0xff]  ;;  %s804_s18 = smov (!%p237_p4, %s679_s18), 1  ;;  %vm300_vm0 = vcmask 261120   ;;  %v689_v8 = vmov 0.0   ;;  %v635_v9 = vld [vmem:[%s796_s3 + $0x38] sm:$0xff]  ;;  %v370_v21 = vlaneseq }
   0xd   : > { %319 = vmatpush.bf16.msra.mxu0 %v627_v0  ;;  %636 = vmatpush.bf16.msra.mxu2 %v627_v0  ;;  %s638_s26 = smul.u32 28, %s804_s18  ;;  %254 = vst [vmem:[#allocation2] sm:$0x1] %v689_v8  ;;  %v634_v11 = vld [vmem:[%s796_s3 + $0x30] sm:$0xff]  ;;  %v633_v13 = vld [vmem:[%s796_s3 + $0x28] sm:$0xff]  ;;  %v632_v15 = vld [vmem:[%s796_s3 + $0x20] sm:$0xff]  ;;  %s248_s6 = scalar_lea.vmem %s798_s5, %s804_s18 }
   0xe   : > { %484 = vmatpush.bf16.msra.mxu1 %v635_v9  ;;  %v631_v17 = vld [vmem:[%s796_s3 + $0x18] sm:$0xff]  ;;  %v664_v18 = vld [vmem:[%s795_s2] ss:$0 sm:$0xff]  ;;  %v630_v22 = vld [vmem:[%s796_s3 + $0x10] sm:$0xff]  ;;  %v371_v27 = vshrl.u32 %v370_v21, 7 }
   0xf   : > { %s244_s29 = scalar_lea.vmem %s793_s0, %s638_s26  ;;  %v629_v25 = vld [vmem:[%s796_s3 + $0x8] sm:$0xff]  ;;  %v628_v33 = vld [vmem:[%s796_s3] sm:$0xff] }
  0x10   : > { %v623_v2 = vld [vmem:[%s244_s29] sm:$0xff]  ;;  %v625_v3 = vld [vmem:[%s244_s29 + $0x10] sm:$0xff]  ;;  %v261_v4 = vld [vmem:[%s244_s29 + $0x18] sm:$0xf]  ;;  %v377_v36 = vadd.s32 48, %v371_v27 }
  0x11   : > { %320 = vmatpush.bf16.msra.mxu0 %v626_v1  ;;  %637 = vmatpush.bf16.msra.mxu2 %v626_v1  ;;  %v283_v5 = vunpack.c.l.b16 %v261_v4  ;;  %v624_v6 = vld [vmem:[%s244_s29 + $0x8] sm:$0xff]  ;;  %v435_v61 = vld [vmem:[%s797_s4] sm:$0x1] }
  0x12   : > { %485 = vmatpush.bf16.msra.mxu1 %v634_v11  ;;  %vm394_vm1 = vcmp.lt.s32.totalorder %v377_v36, 49 }
  0x13   : > { %v287_v7 = vpack.c.b16 %v283_v5, %v283_v5 }
  0x14   : > { %585 = vmatmul.msk.bf16.vlgmr.msra.gmra.mxu0 %vm300_vm0, %v623_v2  ;;  %587 = vmatmul.msk.bf16.vlgmr.msra.gmra.mxu2 %vm300_vm0, %v625_v3  ;;  %v387_v55 = vld [vmem:[#allocation2] sm:$0x1] }
  0x16   : > { %486 = vmatpush.bf16.msra.mxu1 %v633_v13 }
  0x1a   : > { %487 = vmatpush.bf16.msra.mxu1 %v632_v15 }
  0x1e   : > { %488 = vmatpush.bf16.msra.mxu1 %v631_v17 }
  0x22   : > { %489 = vmatpush.bf16.msra.mxu1 %v630_v22 }
  0x24   : > { %586 = vmatmul.msk.bf16.gmra.mxu0 %vm300_vm0, %v624_v6  ;;  %588 = vmatmul.msk.bf16.gmra.mxu2 %vm300_vm0, %v287_v7 }
  0x26   : > { %490 = vmatpush.bf16.msra.mxu1 %v629_v25 }
  0x2a   : > { %491 = vmatpush.bf16.msra.mxu1 %v628_v33 }
  0x91   : > { %v322_v10 = vpop.f32.mrf.mxu0 }
  0x92   : > { %v323_v23 = vadd.f32 %v664_v18, %v322_v10 }
  0x94   : > { %v341_v29 = vmax.f32 %v323_v23, 0.0 }
  0x97   : > { %v332_v12 = vpop.f32.mrf.mxu2 }
  0x98   : > { %v333_v34 = vadd.f32 %v664_v18, %v332_v12 }
  0x99   : > { %v324_v14 = vpop.f32.mrf.mxu0 }
  0x9a   : > { %v325_v20 = vadd.f32 %v664_v18, %v324_v14  ;;  %v345_v42 = vmax.f32 %v333_v34, 0.0 }
  0x9c   : > { %v342_v26 = vmax.f32 %v325_v20, 0.0 }
  0x9e   : > { %v402_v35 = vadd.f32 %v342_v26, %v341_v29 }
  0x9f   : > { %v334_v16 = vpop.f32.mrf.mxu2 }
  0xa0   : > { %v335_v38 = vadd.f32 %v664_v18, %v334_v16 }
  0xa1   : > { %v327_v19 = vpop.f32.mrf.mxu0 }
  0xa2   : > { %v328_v24 = vadd.f32 %v664_v18, %v327_v19  ;;  %v346_v45 = vmax.f32 %v335_v38, 0.0 }
  0xa4   : > { %v343_v30 = vmax.f32 %v328_v24, 0.0 }
  0xa6   : > { %v403_v39 = vadd.f32 %v402_v35, %v343_v30 }
  0xa7   : > { %v337_v28 = vpop.f32.mrf.mxu2 }
  0xa8   : > { %v338_v31 = vadd.f32 %v664_v18, %v337_v28 }
  0xa9   : > { %v329_v32 = vpop.f32.mrf.mxu0 }
  0xaa   : > { %v330_v37 = vadd.f32 %v664_v18, %v329_v32  ;;  %v347_v41 = vmax.f32 %v338_v31, 0.0 }
  0xac   : > { %v344_v40 = vmax.f32 %v330_v37, 0.0  ;;  %v401_v47 = vsel %vm394_vm1, %v347_v41, 0.0 }
  0xae   : > { %v404_v43 = vadd.f32 %v403_v39, %v344_v40 }
  0xaf   : > { %v339_v44 = vpop.f32.mrf.mxu2 }
  0xb0   : > { %v405_v46 = vadd.f32 %v404_v43, %v345_v42 }
  0xb2   : > { %v406_v48 = vadd.f32 %v405_v46, %v346_v45 }
  0xb4   : > { %v407_v49 = vadd.f32 %v406_v48, %v401_v47 }
  0xb6   : > { %v408_v50 = vrot.slane %v407_v49, 4 }
  0xb8   : > { %v409_v51 = vadd.f32 %v408_v50, %v407_v49 }
  0xba   : > { %v410_v52 = vrot.slane %v409_v51, 2 }
  0xbc   : > { %v411_v53 = vadd.f32 %v410_v52, %v409_v51 }
  0xbe   : > { %v412_v54 = vrot.slane %v411_v53, 1 }
  0xc0   : > { %v413_v56 = vadd.f32 %v412_v54, %v411_v53 }
  0xc2   : > { %v414_v57 = vadd.f32 %v413_v56, %v387_v55 }
  0xc4   : > { %415 = vst [vmem:[#allocation2] sm:$0x1] %v414_v57 }
  0xcb   : > { %v416_v58 = vld [vmem:[#allocation2] sm:$0x1] }
  0xcc   : > { %v417_v59 = vmul.f32 0.020408163, %v416_v58 }
  0xce   : > { %v418_v60 = vpack.c.bf16 %v417_v59, %v417_v59 }
  0xd0   : > { %492 = vmatmul.bf16.vlgmr.msra.gmra.mxu1 %v418_v60 }
 0x14d   : > { %v493_v62 = vpop.f32.mrf.mxu1 }
 0x14e   : > { %v494_v63 = vadd.f32 %v493_v62, %v435_v61 }
 0x150   : > { %497 = vst [vmem:[%s248_s6] sm:$0x1] %v494_v63 }
 0x155   : > { %v495_v0 = vpop.f32.mrf.mxu1 }
 0x156 PF: > { %s15_s20 = sadd.s32 1, %s687_s20   ;;  %s799_s18 = smov %s683_s19 }
 0x157   : > { %p12_p5 = scmp.ge.s32.totalorder %s15_s20, 4   ;;  %s800_s19 = smov %s802_s21 }
 0x159   :  { %14 = sbr.rel (!%p12_p5) target bundleno = 2 (0x2), region = 82 }

// kernel: forward.5
= control target key start
LH: loop header
LB: loop body
LE: loop exit
PB: predicated region body
PF: predicated region fallthrough
CT: control target
= control target key end

     0   :  { %vm175_vm0 = vcmask 523264   ;;  %s719_s1 = inlined_call_operand.vmem [shape: bf16[64,384], index: 1, kind: input, shape index: {}]   ;;  %s720_s0 = inlined_call_operand.vmem [shape: bf16[64,64], index: 0, kind: input, shape index: {}]   ;;  %s721_s2 = inlined_call_operand.vmem [shape: f32[1,384], index: 2, kind: input, shape index: {}]   ;;  %s722_s3 = inlined_call_operand.vmem [shape: bf16[64,384], index: 3, kind: output, shape index: {}]  }
   0x1   :  { %v472_v0 = vld [vmem:[%s719_s1 + $0x48] sm:$0xf]  ;;  %v508_v1 = vld [vmem:[%s719_s1 + $0x50] sm:$0xf0]  ;;  %v507_v2 = vld [vmem:[%s719_s1 + $0x4c] sm:$0xf] }
   0x2   :  { %v473_v3 = vor.u32 %v508_v1, %v472_v0  ;;  %v474_v4 = vld [vmem:[%s719_s1 + $0x54] sm:$0xf0]  ;;  %v480_v5 = vld [vmem:[%s719_s1 + $0x50] sm:$0xf]  ;;  %v509_v6 = vld [vmem:[%s719_s1 + $0x58] sm:$0xf0] }
   0x3   :  { %v477_v7 = vor.u32 %v507_v2, %v474_v4  ;;  %v481_v8 = vor.u32 %v509_v6, %v480_v5  ;;  %v460_v9 = vld [vmem:[%s719_s1 + $0x30] sm:$0xf]  ;;  %v505_v10 = vld [vmem:[%s719_s1 + $0x38] sm:$0xf0]  ;;  %v504_v11 = vld [vmem:[%s719_s1 + $0x34] sm:$0xf] }
   0x4   :  { %192 = vmatpush.bf16.msra.mxu0 %v473_v3  ;;  %510 = vmatpush.bf16.msra.mxu3 %v473_v3  ;;  %v461_v12 = vor.u32 %v505_v10, %v460_v9  ;;  %v462_v13 = vld [vmem:[%s719_s1 + $0x3c] sm:$0xf0]  ;;  %v468_v14 = vld [vmem:[%s719_s1 + $0x38] sm:$0xf]  ;;  %v506_v15 = vld [vmem:[%s719_s1 + $0x40] sm:$0xf0] }
   0x5   :  { %514 = vmatpush.bf16.msra.mxu1 %v477_v7  ;;  %518 = vmatpush.bf16.msra.mxu2 %v481_v8  ;;  %v465_v16 = vor.u32 %v504_v11, %v462_v13  ;;  %v469_v17 = vor.u32 %v506_v15, %v468_v14  ;;  %v448_v18 = vld [vmem:[%s719_s1 + $0x18] sm:$0xf]  ;;  %v502_v19 = vld [vmem:[%s719_s1 + $0x20] sm:$0xf0]  ;;  %v501_v20 = vld [vmem:[%s719_s1 + $0x1c] sm:$0xf] }
   0x6   :  { %v450_v21 = vld [vmem:[%s719_s1 + $0x24] sm:$0xf0]  ;;  %v456_v22 = vld [vmem:[%s719_s1 + $0x20] sm:$0xf]  ;;  %v503_v23 = vld [vmem:[%s719_s1 + $0x28] sm:$0xf0]  ;;  %v449_v24 = vor.u32 %v502_v19, %v448_v18 }
   0x7   :  { %v453_v25 = vor.u32 %v501_v20, %v450_v21  ;;  %v457_v26 = vor.u32 %v503_v23, %v456_v22  ;;  %v436_v27 = vld [vmem:[%s719_s1] sm:$0xf]  ;;  %v499_v28 = vld [vmem:[%s719_s1 + $0x8] sm:$0xf0]  ;;  %v498_v29 = vld [vmem:[%s719_s1 + $0x4] sm:$0xf] }
   0x8   :  { %193 = vmatpush.bf16.msra.mxu0 %v461_v12  ;;  %511 = vmatpush.bf16.msra.mxu3 %v461_v12  ;;  %v438_v30 = vld [vmem:[%s719_s1 + $0xc] sm:$0xf0]  ;;  %v444_v31 = vld [vmem:[%s719_s1 + $0x8] sm:$0xf]  ;;  %v500_v32 = vld [vmem:[%s719_s1 + $0x10] sm:$0xf0]  ;;  %v437_v33 = vor.u32 %v499_v28, %v436_v27 }
   0x9   :  { %515 = vmatpush.bf16.msra.mxu1 %v465_v16  ;;  %519 = vmatpush.bf16.msra.mxu2 %v469_v17  ;;  %v441_v34 = vor.u32 %v498_v29, %v438_v30  ;;  %v445_v35 = vor.u32 %v500_v32, %v444_v31  ;;  %v494_v36 = vld [vmem:[%s720_s0] sm:$0xff]  ;;  %v495_v37 = vld [vmem:[%s720_s0 + $0x8] sm:$0xff]  ;;  %v496_v38 = vld [vmem:[%s720_s0 + $0x10] sm:$0xff] }
   0xa   :  { %v497_v39 = vld [vmem:[%s720_s0 + $0x18] sm:$0xff]  ;;  %v350_v40 = vld [vmem:[%s721_s2] sm:$0x7] }
   0xb   :  { %v641_v43 = vperm.slane %v350_v40, 1  ;;  %v643_v44 = vperm.slane %v350_v40, 0  ;;  %v645_v45 = vperm.slane %v350_v40, 2 }
   0xc   :  { %194 = vmatpush.bf16.msra.mxu0 %v449_v24  ;;  %512 = vmatpush.bf16.msra.mxu3 %v449_v24 }
   0xd   :  { %516 = vmatpush.bf16.msra.mxu1 %v453_v25  ;;  %520 = vmatpush.bf16.msra.mxu2 %v457_v26 }
  0x10   :  { %195 = vmatpush.bf16.msra.mxu0 %v437_v33  ;;  %513 = vmatpush.bf16.msra.mxu3 %v437_v33 }
  0x11   :  { %517 = vmatpush.bf16.msra.mxu1 %v441_v34  ;;  %521 = vmatpush.bf16.msra.mxu2 %v445_v35 }
  0x13   :  { %482 = vmatmul.msk.bf16.vlgmr.msra.gmra.mxu0 %vm175_vm0, %v494_v36  ;;  %483 = vmatmul.msk.bf16.vlgmr.msra.gmra.mxu3 %vm175_vm0, %v495_v37 }
  0x14   :  { %221 = vmatpush.bf16.msrb.mxu0 %v477_v7  ;;  %487 = vmatmul.msk.bf16.vlgmr.msra.gmra.mxu1 %vm175_vm0, %v495_v37 }
  0x15   :  { %491 = vmatmul.msk.bf16.vlgmr.msra.gmra.mxu2 %vm175_vm0, %v495_v37 }
  0x18   :  { %222 = vmatpush.bf16.msrb.mxu0 %v465_v16 }
  0x1c   :  { %223 = vmatpush.bf16.msrb.mxu0 %v453_v25 }
  0x20   :  { %224 = vmatpush.bf16.msrb.mxu0 %v441_v34 }
  0x23   :  { %484 = vmatmul.msk.bf16.gmra.mxu3 %vm175_vm0, %v496_v38  ;;  %486 = vmatmul.msk.bf16.vlgmr.msrb.gmra.mxu0 %vm175_vm0, %v494_v36 }
  0x24   :  { %250 = vmatpush.bf16.msra.mxu0 %v481_v8  ;;  %488 = vmatmul.msk.bf16.gmra.mxu1 %vm175_vm0, %v496_v38 }
  0x25   :  { %492 = vmatmul.msk.bf16.gmra.mxu2 %vm175_vm0, %v496_v38 }
  0x28   :  { %251 = vmatpush.bf16.msra.mxu0 %v469_v17 }
  0x2c   :  { %252 = vmatpush.bf16.msra.mxu0 %v457_v26 }
  0x30   :  { %253 = vmatpush.bf16.msra.mxu0 %v445_v35 }
  0x33   :  { %485 = vmatmul.msk.bf16.gmra.mxu3 %vm175_vm0, %v497_v39  ;;  %490 = vmatmul.msk.bf16.vlgmr.msra.gmra.mxu0 %vm175_vm0, %v494_v36 }
  0x34   :  { %489 = vmatmul.msk.bf16.gmra.mxu1 %vm175_vm0, %v497_v39 }
  0x35   :  { %493 = vmatmul.msk.bf16.gmra.mxu2 %vm175_vm0, %v497_v39 }
  0x90   :  { %v197_v41 = vpop.f32.mrf.mxu0 }
  0x91   :  { %v231_v42 = vpop.f32.mrf.mxu1  ;;  %v358_v61 = vadd.f32 %v643_v44, %v197_v41 }
  0x92   :  { %v365_v46 = vadd.f32 %v641_v43, %v231_v42 }
  0x96   :  { %v202_v47 = vpop.f32.mrf.mxu3 }
  0x97   :  { %v364_v48 = vadd.f32 %v643_v44, %v202_v47 }
  0x98   :  { %v260_v49 = vpop.f32.mrf.mxu2  ;;  %v199_v51 = vpop.f32.mrf.mxu0 }
  0x99   :  { %v366_v50 = vadd.f32 %v645_v45, %v260_v49  ;;  %v386_v52 = vpack.c.bf16 %v365_v46, %v364_v48  ;;  %v233_v53 = vpop.f32.mrf.mxu1  ;;  %v361_v9 = vadd.f32 %v643_v44, %v199_v51 }
  0x9a   :  { %v368_v56 = vadd.f32 %v641_v43, %v233_v53 }
  0x9b   :  { %v387_v54 = vpack.c.bf16 %v366_v50, %v366_v50  ;;  %402 = vst [vmem:[%s722_s3 + $0x18] sm:$0xff] %v386_v52 }
  0x9d   :  { %403 = vst [vmem:[%s722_s3 + $0x20] sm:$0xf] %v387_v54 }
  0x9e   :  { %v204_v55 = vpop.f32.mrf.mxu3 }
  0x9f   :  { %v367_v57 = vadd.f32 %v643_v44, %v204_v55 }
  0xa0   :  { %v262_v58 = vpop.f32.mrf.mxu2  ;;  %v226_v60 = vpop.f32.mrf.mxu0 }
  0xa1   :  { %v369_v59 = vadd.f32 %v645_v45, %v262_v58  ;;  %v388_v62 = vpack.c.bf16 %v368_v56, %v367_v57  ;;  %v359_v63 = vadd.f32 %v641_v43, %v226_v60  ;;  %v236_v0 = vpop.f32.mrf.mxu1 }
  0xa2   :  { %v371_v3 = vadd.f32 %v641_v43, %v236_v0 }
  0xa3   :  { %v389_v1 = vpack.c.bf16 %v369_v59, %v369_v59  ;;  %404 = vst [vmem:[%s722_s3 + $0x24] sm:$0xff] %v388_v62  ;;  %v382_v2 = vpack.c.bf16 %v359_v63, %v358_v61 }
  0xa5   :  { %405 = vst [vmem:[%s722_s3 + $0x2c] sm:$0xf] %v389_v1 }
  0xa6   :  { %398 = vst [vmem:[%s722_s3] sm:$0xff] %v382_v2  ;;  %v207_v4 = vpop.f32.mrf.mxu3 }
  0xa7   :  { %v370_v5 = vadd.f32 %v643_v44, %v207_v4 }
  0xa8   :  { %v265_v6 = vpop.f32.mrf.mxu2  ;;  %v228_v8 = vpop.f32.mrf.mxu0 }
  0xa9   :  { %v372_v7 = vadd.f32 %v645_v45, %v265_v6  ;;  %v390_v10 = vpack.c.bf16 %v371_v3, %v370_v5  ;;  %v362_v11 = vadd.f32 %v641_v43, %v228_v8  ;;  %v238_v12 = vpop.f32.mrf.mxu1 }
  0xaa   :  { %v374_v16 = vadd.f32 %v641_v43, %v238_v12 }
  0xab   :  { %v391_v13 = vpack.c.bf16 %v372_v7, %v372_v7  ;;  %406 = vst [vmem:[%s722_s3 + $0x30] sm:$0xff] %v390_v10  ;;  %v384_v14 = vpack.c.bf16 %v362_v11, %v361_v9 }
  0xad   :  { %407 = vst [vmem:[%s722_s3 + $0x38] sm:$0xf] %v391_v13 }
  0xae   :  { %400 = vst [vmem:[%s722_s3 + $0xc] sm:$0xff] %v384_v14  ;;  %v209_v15 = vpop.f32.mrf.mxu3 }
  0xaf   :  { %v373_v17 = vadd.f32 %v643_v44, %v209_v15 }
  0xb0   :  { %v267_v18 = vpop.f32.mrf.mxu2  ;;  %v255_v20 = vpop.f32.mrf.mxu0 }
  0xb1   :  { %v375_v19 = vadd.f32 %v645_v45, %v267_v18  ;;  %v392_v21 = vpack.c.bf16 %v374_v16, %v373_v17  ;;  %v360_v22 = vadd.f32 %v645_v45, %v255_v20  ;;  %v241_v24 = vpop.f32.mrf.mxu1 }
  0xb2   :  { %v377_v26 = vadd.f32 %v641_v43, %v241_v24 }
  0xb3   :  { %v393_v23 = vpack.c.bf16 %v375_v19, %v375_v19  ;;  %408 = vst [vmem:[%s722_s3 + $0x3c] sm:$0xff] %v392_v21  ;;  %v383_v25 = vpack.c.bf16 %v360_v22, %v360_v22 }
  0xb5   :  { %409 = vst [vmem:[%s722_s3 + $0x44] sm:$0xf] %v393_v23 }
  0xb6   :  { %399 = vst [vmem:[%s722_s3 + $0x8] sm:$0xf] %v383_v25  ;;  %v212_v27 = vpop.f32.mrf.mxu3 }
  0xb7   :  { %v376_v28 = vadd.f32 %v643_v44, %v212_v27 }
  0xb8   :  { %v270_v29 = vpop.f32.mrf.mxu2  ;;  %v257_v31 = vpop.f32.mrf.mxu0 }
  0xb9   :  { %v378_v30 = vadd.f32 %v645_v45, %v270_v29  ;;  %v394_v32 = vpack.c.bf16 %v377_v26, %v376_v28  ;;  %v363_v33 = vadd.f32 %v645_v45, %v257_v31  ;;  %v243_v36 = vpop.f32.mrf.mxu1 }
  0xba   :  { %v380_v38 = vadd.f32 %v641_v43, %v243_v36 }
  0xbb   :  { %v395_v34 = vpack.c.bf16 %v378_v30, %v378_v30  ;;  %410 = vst [vmem:[%s722_s3 + $0x48] sm:$0xff] %v394_v32  ;;  %v385_v35 = vpack.c.bf16 %v363_v33, %v363_v33 }
  0xbd   :  { %411 = vst [vmem:[%s722_s3 + $0x50] sm:$0xf] %v395_v34 }
  0xbe   :  { %401 = vst [vmem:[%s722_s3 + $0x14] sm:$0xf] %v385_v35  ;;  %v214_v37 = vpop.f32.mrf.mxu3 }
  0xbf   :  { %v379_v39 = vadd.f32 %v643_v44, %v214_v37 }
  0xc0   :  { %v272_v40 = vpop.f32.mrf.mxu2 }
  0xc1   :  { %v381_v41 = vadd.f32 %v645_v45, %v272_v40  ;;  %v396_v42 = vpack.c.bf16 %v380_v38, %v379_v39 }
  0xc3   :  { %v397_v46 = vpack.c.bf16 %v381_v41, %v381_v41  ;;  %412 = vst [vmem:[%s722_s3 + $0x54] sm:$0xff] %v396_v42 }
  0xc5   :  { %413 = vst [vmem:[%s722_s3 + $0x5c] sm:$0xf] %v397_v46 }

// kernel: forward.7
= control target key start
LH: loop header
LB: loop body
LE: loop exit
PB: predicated region body
PF: predicated region fallthrough
CT: control target
= control target key end

     0   :  { %s1070_s12 = smov 0   ;;  %s1072_s13 = smov 0   ;;  %s1424_s0 = inlined_call_operand.vmem [shape: bf16[64,128], index: 0, kind: input, shape index: {}]   ;;  %s1425_s1 = inlined_call_operand.vmem [shape: bf16[128,1024], index: 1, kind: input, shape index: {}]   ;;  %s1426_s2 = inlined_call_operand.vmem [shape: f32[1,1024], index: 2, kind: input, shape index: {}]   ;;  %s1427_s3 = inlined_call_operand.vmem [shape: f32[64,1024], index: 3, kind: output, shape index: {}]  }
   0x1   :  { %s1074_s14 = smov 0  }
   0x2 LB: > { %s1086_s15 = sadd.s32 4294967295, %s1048_s14   ;;  %s1089_s16 = sadd.s32 1, %s1048_s14   ;;  %s1048_s14 = sphi %s1074_s14, %s1431_s14   ;;  %s1044_s13 = sphi %s1072_s13, %s1430_s13   ;;  %s1040_s12 = sphi %s1070_s12, %s1429_s12  }
   0x3   : > { %s38_s17 = ssub.s32 %s1048_s14, %s1089_s16  ;;  %s41_s18 = sadd.s32 1, %s1044_s13 }
   0x4   : > { %p39_p0 = scmp.eq.s32.totalorder %s38_s17, 0  ;;  %p48_p1 = scmp.ne.s32.totalorder %s1044_s13, %s1040_s12 }
   0x5   : > { %p49_p2 = scmp.eq.s32.totalorder %s1048_s14, 0  ;;  %p104_p3 = scmp.eq.s32.totalorder %s1086_s15, 1 }
   0x6   : > { %s1099_s19 = scalar_select %p39_p0, %s1044_s13, %s41_s18  }
   0x7   : > { %p50_p4 = por %p49_p2, %p48_p1  ;;  %p1101_p5 = por %p104_p3, %p48_p1 }
   0x8   : > { %p807_p6 = scmp.ge.s32.totalorder %s1048_s14, 2 }
   0xa   : > { %129 = sbr.rel (%p807_p6) target bundleno = 51 (0x33), region = 20 }
   0xf   : > { %132 = sbr.rel (!%p50_p4) target bundleno = 51 (0x33), region = 24  ;;  %s134_s21 = sand.u32 (%p50_p4), 1, %s1044_s13  }
  0x10   : > { %s964_s22 = sshll.u32 (%p50_p4), %s1048_s14, 4  ;;  %s808_s23 = sshll.u32 (%p50_p4), %s134_s21, 8 }
  0x11   : > { %s1111_s26 = scalar_lea.vmem (%p50_p4), %s1425_s1, %s964_s22  ;;  %s1116_s27 = scalar_lea.vmem (%p50_p4), [#allocation2], %s808_s23 }
  0x12   : > { %v152_v0 = vld [vmem:[%s1111_s26] sm:$0xff] (%p50_p4)  ;;  %v154_v1 = vld [vmem:[%s1111_s26 + $0x8] sm:$0xff] (%p50_p4) }
  0x13   : > { %v156_v2 = vld [vmem:[%s1111_s26 + $0x20] sm:$0xff] (%p50_p4)  ;;  %153 = vst [vmem:[%s1116_s27] sm:$0xff] (%p50_p4), %v152_v0  ;;  %v158_v3 = vld [vmem:[%s1111_s26 + $0x28] sm:$0xff] (%p50_p4) }
  0x14   : > { %155 = vst [vmem:[%s1116_s27 + $0x8] sm:$0xff] %v154_v1  ;;  %v160_v4 = vld [vmem:[%s1111_s26 + $0x40] sm:$0xff]  ;;  %v162_v5 = vld [vmem:[%s1111_s26 + $0x48] sm:$0xff] }
  0x15   : > { %157 = vst [vmem:[%s1116_s27 + $0x10] sm:$0xff] %v156_v2  ;;  %v164_v6 = vld [vmem:[%s1111_s26 + $0x60] sm:$0xff]  ;;  %v166_v7 = vld [vmem:[%s1111_s26 + $0x68] sm:$0xff] }
  0x16   : > { %159 = vst [vmem:[%s1116_s27 + $0x18] sm:$0xff] %v158_v3  ;;  %v168_v8 = vld [vmem:[%s1111_s26 + $0x80] sm:$0xff]  ;;  %v170_v9 = vld [vmem:[%s1111_s26 + $0x88] sm:$0xff] }
  0x17   : > { %161 = vst [vmem:[%s1116_s27 + $0x20] sm:$0xff] %v160_v4  ;;  %v172_v10 = vld [vmem:[%s1111_s26 + $0xa0] sm:$0xff]  ;;  %v174_v11 = vld [vmem:[%s1111_s26 + $0xa8] sm:$0xff] }
  0x18   : > { %163 = vst [vmem:[%s1116_s27 + $0x28] sm:$0xff] %v162_v5  ;;  %v176_v12 = vld [vmem:[%s1111_s26 + $0xc0] sm:$0xff]  ;;  %v178_v13 = vld [vmem:[%s1111_s26 + $0xc8] sm:$0xff] }
  0x19   : > { %165 = vst [vmem:[%s1116_s27 + $0x30] sm:$0xff] %v164_v6  ;;  %v180_v14 = vld [vmem:[%s1111_s26 + $0xe0] sm:$0xff]  ;;  %v182_v15 = vld [vmem:[%s1111_s26 + $0xe8] sm:$0xff] }
  0x1a   : > { %167 = vst [vmem:[%s1116_s27 + $0x38] sm:$0xff] %v166_v7  ;;  %v184_v16 = vld [vmem:[%s1111_s26 + $0x100] sm:$0xff]  ;;  %v186_v17 = vld [vmem:[%s1111_s26 + $0x108] sm:$0xff] }
  0x1b   : > { %169 = vst [vmem:[%s1116_s27 + $0x40] sm:$0xff] %v168_v8  ;;  %v188_v18 = vld [vmem:[%s1111_s26 + $0x120] sm:$0xff]  ;;  %v190_v19 = vld [vmem:[%s1111_s26 + $0x128] sm:$0xff] }
  0x1c   : > { %171 = vst [vmem:[%s1116_s27 + $0x48] sm:$0xff] %v170_v9  ;;  %v192_v20 = vld [vmem:[%s1111_s26 + $0x140] sm:$0xff]  ;;  %v194_v21 = vld [vmem:[%s1111_s26 + $0x148] sm:$0xff] }
  0x1d   : > { %173 = vst [vmem:[%s1116_s27 + $0x50] sm:$0xff] %v172_v10  ;;  %v196_v22 = vld [vmem:[%s1111_s26 + $0x160] sm:$0xff]  ;;  %v198_v23 = vld [vmem:[%s1111_s26 + $0x168] sm:$0xff] }
  0x1e   : > { %175 = vst [vmem:[%s1116_s27 + $0x58] sm:$0xff] %v174_v11  ;;  %v200_v24 = vld [vmem:[%s1111_s26 + $0x180] sm:$0xff]  ;;  %v202_v25 = vld [vmem:[%s1111_s26 + $0x188] sm:$0xff] }
  0x1f   : > { %177 = vst [vmem:[%s1116_s27 + $0x60] sm:$0xff] %v176_v12  ;;  %v204_v26 = vld [vmem:[%s1111_s26 + $0x1a0] sm:$0xff]  ;;  %v206_v27 = vld [vmem:[%s1111_s26 + $0x1a8] sm:$0xff] }
  0x20   : > { %179 = vst [vmem:[%s1116_s27 + $0x68] sm:$0xff] %v178_v13  ;;  %v208_v28 = vld [vmem:[%s1111_s26 + $0x1c0] sm:$0xff]  ;;  %v210_v29 = vld [vmem:[%s1111_s26 + $0x1c8] sm:$0xff] }
  0x21   : > { %181 = vst [vmem:[%s1116_s27 + $0x70] sm:$0xff] %v180_v14  ;;  %v212_v30 = vld [vmem:[%s1111_s26 + $0x1e0] sm:$0xff]  ;;  %v214_v31 = vld [vmem:[%s1111_s26 + $0x1e8] sm:$0xff] }
  0x22   : > { %183 = vst [vmem:[%s1116_s27 + $0x78] sm:$0xff] %v182_v15 }
  0x23   : > { %185 = vst [vmem:[%s1116_s27 + $0x80] sm:$0xff] %v184_v16 }
  0x24   : > { %187 = vst [vmem:[%s1116_s27 + $0x88] sm:$0xff] %v186_v17 }
  0x25   : > { %189 = vst [vmem:[%s1116_s27 + $0x90] sm:$0xff] %v188_v18 }
  0x26   : > { %191 = vst [vmem:[%s1116_s27 + $0x98] sm:$0xff] %v190_v19 }
  0x27   : > { %193 = vst [vmem:[%s1116_s27 + $0xa0] sm:$0xff] %v192_v20 }
  0x28   : > { %195 = vst [vmem:[%s1116_s27 + $0xa8] sm:$0xff] %v194_v21 }
  0x29   : > { %197 = vst [vmem:[%s1116_s27 + $0xb0] sm:$0xff] %v196_v22 }
  0x2a   : > { %199 = vst [vmem:[%s1116_s27 + $0xb8] sm:$0xff] %v198_v23 }
  0x2b   : > { %201 = vst [vmem:[%s1116_s27 + $0xc0] sm:$0xff] %v200_v24 }
  0x2c   : > { %203 = vst [vmem:[%s1116_s27 + $0xc8] sm:$0xff] %v202_v25 }
  0x2d   : > { %205 = vst [vmem:[%s1116_s27 + $0xd0] sm:$0xff] %v204_v26 }
  0x2e   : > { %207 = vst [vmem:[%s1116_s27 + $0xd8] sm:$0xff] %v206_v27 }
  0x2f   : > { %209 = vst [vmem:[%s1116_s27 + $0xe0] sm:$0xff] %v208_v28 }
  0x30   : > { %211 = vst [vmem:[%s1116_s27 + $0xe8] sm:$0xff] %v210_v29 }
  0x31   : > { %213 = vst [vmem:[%s1116_s27 + $0xf0] sm:$0xff] %v212_v30 }
  0x32   : > { %215 = vst [vmem:[%s1116_s27 + $0xf8] sm:$0xff] %v214_v31 }
  0x33 PF: > { %p811_p7 = scmp.ge.s32.totalorder %s1048_s14, 1  ;;  %p228_p8 = scmp.lt.s32.totalorder %s1048_s14, 3 }
  0x35   : > { %p229_p9 = pnand %p811_p7, %p228_p8 }
  0x36   : > { %s235_s28 = sand.u32 (!%p229_p9), 1, %s1040_s12   ;;  %s814_s12 = sshll.u32 (!%p229_p9), %s1086_s15, 2 }
  0x37   : > { %232 = sbr.rel (%p229_p9) target bundleno = 297 (0x129), region = 51  ;;  %s1182_s29 = sshll.u32 (!%p229_p9), %s235_s28, 8 }
  0x38   : > { %s1185_s30 = scalar_lea.vmem (!%p229_p9), [#allocation2], %s1182_s29  ;;  %p263_p10 = scmp.lt.s32.totalorder (!%p229_p9), %s814_s12, 7 }
  0x39   : > { %s1274_s21 = scalar_lea.vmem (!%p229_p9), [#allocation3], %s1182_s29 }
  0x3c   : > { %v945_v32 = vld [vmem:[%s1185_s30 + $0xe0] sm:$0xf]  ;;  %v999_v33 = vld [vmem:[%s1185_s30 + $0xec] sm:$0xf0]  ;;  %v997_v34 = vld [vmem:[%s1185_s30 + $0xe4] sm:$0xf] }
  0x3d   : > { %v946_v35 = vor.u32 %v999_v33, %v945_v32  ;;  %v947_v36 = vld [vmem:[%s1185_s30 + $0xf0] sm:$0xf0]  ;;  %v953_v37 = vld [vmem:[%s1185_s30 + $0xe8] sm:$0xf]  ;;  %v1000_v38 = vld [vmem:[%s1185_s30 + $0xf4] sm:$0xf0] }
  0x3e   : > { %v950_v39 = vor.u32 %v997_v34, %v947_v36  ;;  %v954_v40 = vor.u32 %v1000_v38, %v953_v37  ;;  %v998_v41 = vld [vmem:[%s1185_s30 + $0xec] sm:$0xf]  ;;  %v955_v42 = vld [vmem:[%s1185_s30 + $0xf8] sm:$0xf0]  ;;  %v929_v43 = vld [vmem:[%s1185_s30 + $0xc0] sm:$0xf] }
  0x3f   : > { %502 = vmatpush.bf16.msra.mxu0 %v946_v35  ;;  %v958_v44 = vor.u32 %v998_v41, %v955_v42  ;;  %v995_v45 = vld [vmem:[%s1185_s30 + $0xcc] sm:$0xf0]  ;;  %v993_v46 = vld [vmem:[%s1185_s30 + $0xc4] sm:$0xf]  ;;  %v931_v47 = vld [vmem:[%s1185_s30 + $0xd0] sm:$0xf0] }
  0x40   : > { %531 = vmatpush.bf16.msra.mxu1 %v950_v39  ;;  %560 = vmatpush.bf16.msra.mxu2 %v954_v40  ;;  %v930_v48 = vor.u32 %v995_v45, %v929_v43  ;;  %v934_v49 = vor.u32 %v993_v46, %v931_v47  ;;  %v937_v50 = vld [vmem:[%s1185_s30 + $0xc8] sm:$0xf]  ;;  %v996_v51 = vld [vmem:[%s1185_s30 + $0xd4] sm:$0xf0]  ;;  %v994_v52 = vld [vmem:[%s1185_s30 + $0xcc] sm:$0xf] }
  0x41   : > { %589 = vmatpush.bf16.msra.mxu3 %v958_v44  ;;  %v938_v53 = vor.u32 %v996_v51, %v937_v50  ;;  %v939_v54 = vld [vmem:[%s1185_s30 + $0xd8] sm:$0xf0]  ;;  %v913_v55 = vld [vmem:[%s1185_s30 + $0xa0] sm:$0xf]  ;;  %v991_v56 = vld [vmem:[%s1185_s30 + $0xac] sm:$0xf0] }
  0x42   : > { %v942_v57 = vor.u32 %v994_v52, %v939_v54  ;;  %v989_v58 = vld [vmem:[%s1185_s30 + $0xa4] sm:$0xf]  ;;  %v915_v59 = vld [vmem:[%s1185_s30 + $0xb0] sm:$0xf0]  ;;  %v921_v60 = vld [vmem:[%s1185_s30 + $0xa8] sm:$0xf]  ;;  %v914_v61 = vor.u32 %v991_v56, %v913_v55 }
  0x43   : > { %503 = vmatpush.bf16.msra.mxu0 %v930_v48  ;;  %v992_v62 = vld [vmem:[%s1185_s30 + $0xb4] sm:$0xf0]  ;;  %v990_v63 = vld [vmem:[%s1185_s30 + $0xac] sm:$0xf]  ;;  %v923_v0 = vld [vmem:[%s1185_s30 + $0xb8] sm:$0xf0]  ;;  %v918_v1 = vor.u32 %v989_v58, %v915_v59 }
  0x44   : > { %532 = vmatpush.bf16.msra.mxu1 %v934_v49  ;;  %561 = vmatpush.bf16.msra.mxu2 %v938_v53  ;;  %v922_v2 = vor.u32 %v992_v62, %v921_v60  ;;  %v897_v3 = vld [vmem:[%s1185_s30 + $0x80] sm:$0xf]  ;;  %v987_v4 = vld [vmem:[%s1185_s30 + $0x8c] sm:$0xf0]  ;;  %v985_v5 = vld [vmem:[%s1185_s30 + $0x84] sm:$0xf]  ;;  %v926_v6 = vor.u32 %v990_v63, %v923_v0 }
  0x45   : > { %590 = vmatpush.bf16.msra.mxu3 %v942_v57  ;;  %v899_v7 = vld [vmem:[%s1185_s30 + $0x90] sm:$0xf0]  ;;  %v905_v8 = vld [vmem:[%s1185_s30 + $0x88] sm:$0xf]  ;;  %v988_v9 = vld [vmem:[%s1185_s30 + $0x94] sm:$0xf0]  ;;  %v898_v12 = vor.u32 %v987_v4, %v897_v3 }
  0x46   : > { %v986_v10 = vld [vmem:[%s1185_s30 + $0x8c] sm:$0xf]  ;;  %v907_v11 = vld [vmem:[%s1185_s30 + $0x98] sm:$0xf0]  ;;  %v902_v13 = vor.u32 %v985_v5, %v899_v7  ;;  %v906_v14 = vor.u32 %v988_v9, %v905_v8  ;;  %v881_v15 = vld [vmem:[%s1185_s30 + $0x60] sm:$0xf] }
  0x47   : > { %504 = vmatpush.bf16.msra.mxu0 %v914_v61  ;;  %v983_v16 = vld [vmem:[%s1185_s30 + $0x6c] sm:$0xf0]  ;;  %v981_v17 = vld [vmem:[%s1185_s30 + $0x64] sm:$0xf]  ;;  %v910_v18 = vor.u32 %v986_v10, %v907_v11  ;;  %v883_v19 = vld [vmem:[%s1185_s30 + $0x70] sm:$0xf0] }
  0x48   : > { %533 = vmatpush.bf16.msra.mxu1 %v918_v1  ;;  %562 = vmatpush.bf16.msra.mxu2 %v922_v2  ;;  %v889_v20 = vld [vmem:[%s1185_s30 + $0x68] sm:$0xf]  ;;  %v984_v21 = vld [vmem:[%s1185_s30 + $0x74] sm:$0xf0]  ;;  %v982_v22 = vld [vmem:[%s1185_s30 + $0x6c] sm:$0xf]  ;;  %v882_v24 = vor.u32 %v983_v16, %v881_v15  ;;  %v886_v25 = vor.u32 %v981_v17, %v883_v19 }
  0x49   : > { %591 = vmatpush.bf16.msra.mxu3 %v926_v6  ;;  %v891_v23 = vld [vmem:[%s1185_s30 + $0x78] sm:$0xf0]  ;;  %v890_v26 = vor.u32 %v984_v21, %v889_v20  ;;  %v865_v27 = vld [vmem:[%s1185_s30 + $0x40] sm:$0xf]  ;;  %v979_v28 = vld [vmem:[%s1185_s30 + $0x4c] sm:$0xf0] }
  0x4a   : > { %v977_v29 = vld [vmem:[%s1185_s30 + $0x44] sm:$0xf]  ;;  %v894_v30 = vor.u32 %v982_v22, %v891_v23  ;;  %v867_v31 = vld [vmem:[%s1185_s30 + $0x50] sm:$0xf0]  ;;  %v873_v32 = vld [vmem:[%s1185_s30 + $0x48] sm:$0xf]  ;;  %v866_v36 = vor.u32 %v979_v28, %v865_v27 }
  0x4b   : > { %505 = vmatpush.bf16.msra.mxu0 %v898_v12  ;;  %v980_v33 = vld [vmem:[%s1185_s30 + $0x54] sm:$0xf0]  ;;  %v978_v34 = vld [vmem:[%s1185_s30 + $0x4c] sm:$0xf]  ;;  %v875_v35 = vld [vmem:[%s1185_s30 + $0x58] sm:$0xf0]  ;;  %v870_v37 = vor.u32 %v977_v29, %v867_v31 }
  0x4c   : > { %534 = vmatpush.bf16.msra.mxu1 %v902_v13  ;;  %563 = vmatpush.bf16.msra.mxu2 %v906_v14  ;;  %v874_v38 = vor.u32 %v980_v33, %v873_v32  ;;  %v849_v39 = vld [vmem:[%s1185_s30 + $0x20] sm:$0xf]  ;;  %v975_v40 = vld [vmem:[%s1185_s30 + $0x2c] sm:$0xf0]  ;;  %v973_v41 = vld [vmem:[%s1185_s30 + $0x24] sm:$0xf]  ;;  %v878_v42 = vor.u32 %v978_v34, %v875_v35 }
  0x4d   : > { %592 = vmatpush.bf16.msra.mxu3 %v910_v18  ;;  %v851_v43 = vld [vmem:[%s1185_s30 + $0x30] sm:$0xf0]  ;;  %v857_v44 = vld [vmem:[%s1185_s30 + $0x28] sm:$0xf]  ;;  %v976_v45 = vld [vmem:[%s1185_s30 + $0x34] sm:$0xf0]  ;;  %v850_v48 = vor.u32 %v975_v40, %v849_v39 }
  0x4e   : > { %v974_v46 = vld [vmem:[%s1185_s30 + $0x2c] sm:$0xf]  ;;  %v859_v47 = vld [vmem:[%s1185_s30 + $0x38] sm:$0xf0]  ;;  %v854_v49 = vor.u32 %v973_v41, %v851_v43  ;;  %v858_v50 = vor.u32 %v976_v45, %v857_v44  ;;  %v833_v51 = vld [vmem:[%s1185_s30] sm:$0xf] }
  0x4f   : > { %506 = vmatpush.bf16.msra.mxu0 %v882_v24  ;;  %v971_v52 = vld [vmem:[%s1185_s30 + $0xc] sm:$0xf0]  ;;  %v969_v53 = vld [vmem:[%s1185_s30 + $0x4] sm:$0xf]  ;;  %v862_v54 = vor.u32 %v974_v46, %v859_v47  ;;  %v835_v55 = vld [vmem:[%s1185_s30 + $0x10] sm:$0xf0] }
  0x50   : > { %535 = vmatpush.bf16.msra.mxu1 %v886_v25  ;;  %564 = vmatpush.bf16.msra.mxu2 %v890_v26  ;;  %v841_v56 = vld [vmem:[%s1185_s30 + $0x8] sm:$0xf]  ;;  %v972_v57 = vld [vmem:[%s1185_s30 + $0x14] sm:$0xf0]  ;;  %v970_v58 = vld [vmem:[%s1185_s30 + $0xc] sm:$0xf]  ;;  %v834_v60 = vor.u32 %v971_v52, %v833_v51  ;;  %v838_v61 = vor.u32 %v969_v53, %v835_v55 }
  0x51   : > { %593 = vmatpush.bf16.msra.mxu3 %v894_v30  ;;  %v843_v59 = vld [vmem:[%s1185_s30 + $0x18] sm:$0xf0]  ;;  %v842_v62 = vor.u32 %v972_v57, %v841_v56  ;;  %v965_v0 = vld [vmem:[%s1424_s0] sm:$0xff]  ;;  %v966_v1 = vld [vmem:[%s1424_s0 + $0x8] sm:$0xff]  ;;  %s1433_s12 = smov (!%p263_p10, %s814_s12), 7  ;;  %s1001_s22 = sshll.u32 (%p1101_p5), %s1086_s15, 5 }
  0x52   : > { %v846_v63 = vor.u32 %v970_v58, %v843_v59  ;;  %v967_v2 = vld [vmem:[%s1424_s0 + $0x10] sm:$0xff]  ;;  %v968_v3 = vld [vmem:[%s1424_s0 + $0x18] sm:$0xff]  ;;  %s265_s18 = scalar_lea.vmem %s1426_s2, %s1433_s12  ;;  %s1350_s25 = scalar_lea.vmem (%p1101_p5), %s1427_s3, %s1001_s22 }
  0x53   : > { %507 = vmatpush.bf16.msra.mxu0 %v866_v36  ;;  %v308_v4 = vld [vmem:[%s265_s18] sm:$0xf] }
  0x54   : > { %536 = vmatpush.bf16.msra.mxu1 %v870_v37  ;;  %565 = vmatpush.bf16.msra.mxu2 %v874_v38  ;;  %v1267_v5 = vperm.slane %v308_v4, 0  ;;  %v1269_v6 = vperm.slane %v308_v4, 1  ;;  %v1278_v11 = vperm.slane %v308_v4, 2  ;;  %v1280_v12 = vperm.slane %v308_v4, 3 }
  0x55   : > { %594 = vmatpush.bf16.msra.mxu3 %v878_v42 }
  0x57   : > { %508 = vmatpush.bf16.msra.mxu0 %v850_v48 }
  0x58   : > { %537 = vmatpush.bf16.msra.mxu1 %v854_v49  ;;  %566 = vmatpush.bf16.msra.mxu2 %v858_v50 }
  0x59   : > { %595 = vmatpush.bf16.msra.mxu3 %v862_v54 }
  0x5b   : > { %509 = vmatpush.bf16.msra.mxu0 %v834_v60 }
  0x5c   : > { %538 = vmatpush.bf16.msra.mxu1 %v838_v61  ;;  %567 = vmatpush.bf16.msra.mxu2 %v842_v62 }
  0x5d   : > { %596 = vmatpush.bf16.msra.mxu3 %v846_v63 }
  0x5e   : > { %510 = vmatmul.bf16.vlgmr.msra.gmra.mxu0 %v965_v0 }
  0x5f   : > { %539 = vmatmul.bf16.vlgmr.msra.gmra.mxu1 %v965_v0  ;;  %568 = vmatmul.bf16.vlgmr.msra.gmra.mxu2 %v965_v0 }
  0x60   : > { %597 = vmatmul.bf16.vlgmr.msra.gmra.mxu3 %v965_v0 }
  0x6e   : > { %515 = vmatmul.bf16.gmra.mxu0 %v966_v1 }
  0x6f   : > { %544 = vmatmul.bf16.gmra.mxu1 %v966_v1  ;;  %573 = vmatmul.bf16.gmra.mxu2 %v966_v1 }
  0x70   : > { %602 = vmatmul.bf16.gmra.mxu3 %v966_v1 }
  0x7e   : > { %520 = vmatmul.bf16.gmra.mxu0 %v967_v2 }
  0x7f   : > { %549 = vmatmul.bf16.gmra.mxu1 %v967_v2  ;;  %578 = vmatmul.bf16.gmra.mxu2 %v967_v2 }
  0x80   : > { %607 = vmatmul.bf16.gmra.mxu3 %v967_v2 }
  0x8e   : > { %525 = vmatmul.bf16.gmra.mxu0 %v968_v3 }
  0x8f   : > { %554 = vmatmul.bf16.gmra.mxu1 %v968_v3  ;;  %583 = vmatmul.bf16.gmra.mxu2 %v968_v3 }
  0x90   : > { %612 = vmatmul.bf16.gmra.mxu3 %v968_v3 }
  0xdb   : > { %v511_v7 = vpop.f32.mrf.mxu0 }
  0xdc   : > { %v512_v8 = vadd.f32 %v511_v7, %v1267_v5  ;;  %v540_v9 = vpop.f32.mrf.mxu1 }
  0xdd   : > { %v541_v10 = vadd.f32 %v540_v9, %v1269_v6 }
  0xde   : > { %618 = vst [vmem:[%s1274_s21] sm:$0xff] %v512_v8 }
  0xdf   : > { %619 = vst [vmem:[%s1274_s21 + $0x8] sm:$0xff] %v541_v10 }
  0xe2   : > { %v569_v13 = vpop.f32.mrf.mxu2 }
  0xe3   : > { %v570_v14 = vadd.f32 %v569_v13, %v1278_v11  ;;  %v598_v15 = vpop.f32.mrf.mxu3  ;;  %v513_v16 = vpop.f32.mrf.mxu0 }
  0xe4   : > { %v599_v17 = vadd.f32 %v598_v15, %v1280_v12  ;;  %v514_v18 = vadd.f32 %v513_v16, %v1267_v5  ;;  %v542_v19 = vpop.f32.mrf.mxu1 }
  0xe5   : > { %620 = vst [vmem:[%s1274_s21 + $0x10] sm:$0xff] %v570_v14  ;;  %v543_v20 = vadd.f32 %v542_v19, %v1269_v6 }
  0xe6   : > { %621 = vst [vmem:[%s1274_s21 + $0x18] sm:$0xff] %v599_v17 }
  0xe7   : > { %622 = vst [vmem:[%s1274_s21 + $0x20] sm:$0xff] %v514_v18 }
  0xe8   : > { %623 = vst [vmem:[%s1274_s21 + $0x28] sm:$0xff] %v543_v20 }
  0xea   : > { %v571_v21 = vpop.f32.mrf.mxu2 }
  0xeb   : > { %v572_v22 = vadd.f32 %v571_v21, %v1278_v11  ;;  %v600_v23 = vpop.f32.mrf.mxu3  ;;  %v516_v24 = vpop.f32.mrf.mxu0 }
  0xec   : > { %v601_v25 = vadd.f32 %v600_v23, %v1280_v12  ;;  %v517_v26 = vadd.f32 %v516_v24, %v1267_v5  ;;  %v545_v27 = vpop.f32.mrf.mxu1 }
  0xed   : > { %624 = vst [vmem:[%s1274_s21 + $0x30] sm:$0xff] %v572_v22  ;;  %v546_v28 = vadd.f32 %v545_v27, %v1269_v6 }
  0xee   : > { %625 = vst [vmem:[%s1274_s21 + $0x38] sm:$0xff] %v601_v25  ;;  %v680_v13 = vld [vmem:[%s1274_s21 + $0x20] sm:$0xff] (%p1101_p5) }
  0xef   : > { %626 = vst [vmem:[%s1274_s21 + $0x40] sm:$0xff] %v517_v26  ;;  %v682_v14 = vld [vmem:[%s1274_s21 + $0x28] sm:$0xff] (%p1101_p5) }
  0xf0   : > { %627 = vst [vmem:[%s1274_s21 + $0x48] sm:$0xff] %v546_v28 }
  0xf1   : > { %681 = vst [vmem:[%s1350_s25 + $0x40] sm:$0xff] (%p1101_p5), %v680_v13 }
  0xf2   : > { %v574_v29 = vpop.f32.mrf.mxu2  ;;  %683 = vst [vmem:[%s1350_s25 + $0x48] sm:$0xff] (%p1101_p5), %v682_v14 }
  0xf3   : > { %v575_v30 = vadd.f32 %v574_v29, %v1278_v11  ;;  %v603_v31 = vpop.f32.mrf.mxu3  ;;  %v518_v32 = vpop.f32.mrf.mxu0 }
  0xf4   : > { %v604_v33 = vadd.f32 %v603_v31, %v1280_v12  ;;  %v519_v34 = vadd.f32 %v518_v32, %v1267_v5  ;;  %v547_v35 = vpop.f32.mrf.mxu1  ;;  %v684_v15 = vld [vmem:[%s1274_s21 + $0x30] sm:$0xff] (%p1101_p5) }
  0xf5   : > { %628 = vst [vmem:[%s1274_s21 + $0x50] sm:$0xff] %v575_v30  ;;  %v548_v36 = vadd.f32 %v547_v35, %v1269_v6  ;;  %v686_v16 = vld [vmem:[%s1274_s21 + $0x38] sm:$0xff] (%p1101_p5) }
  0xf6   : > { %629 = vst [vmem:[%s1274_s21 + $0x58] sm:$0xff] %v604_v33  ;;  %v688_v17 = vld [vmem:[%s1274_s21 + $0x40] sm:$0xff] (%p1101_p5) }
  0xf7   : > { %630 = vst [vmem:[%s1274_s21 + $0x60] sm:$0xff] %v519_v34  ;;  %v690_v18 = vld [vmem:[%s1274_s21 + $0x48] sm:$0xff] (%p1101_p5) }
  0xf8   : > { %631 = vst [vmem:[%s1274_s21 + $0x68] sm:$0xff] %v548_v36 }
  0xf9   : > { %685 = vst [vmem:[%s1350_s25 + $0x50] sm:$0xff] (%p1101_p5), %v684_v15 }
  0xfa   : > { %v576_v37 = vpop.f32.mrf.mxu2  ;;  %687 = vst [vmem:[%s1350_s25 + $0x58] sm:$0xff] (%p1101_p5), %v686_v16 }
  0xfb   : > { %v577_v38 = vadd.f32 %v576_v37, %v1278_v11  ;;  %v605_v39 = vpop.f32.mrf.mxu3  ;;  %v521_v40 = vpop.f32.mrf.mxu0  ;;  %689 = vst [vmem:[%s1350_s25 + $0x80] sm:$0xff] (%p1101_p5), %v688_v17 }
  0xfc   : > { %v606_v41 = vadd.f32 %v605_v39, %v1280_v12  ;;  %v522_v42 = vadd.f32 %v521_v40, %v1267_v5  ;;  %v550_v43 = vpop.f32.mrf.mxu1  ;;  %v692_v19 = vld [vmem:[%s1274_s21 + $0x50] sm:$0xff] (%p1101_p5)  ;;  %691 = vst [vmem:[%s1350_s25 + $0x88] sm:$0xff] (%p1101_p5), %v690_v18 }
  0xfd   : > { %632 = vst [vmem:[%s1274_s21 + $0x70] sm:$0xff] %v577_v38  ;;  %v551_v44 = vadd.f32 %v550_v43, %v1269_v6  ;;  %v694_v20 = vld [vmem:[%s1274_s21 + $0x58] sm:$0xff] (%p1101_p5) }
  0xfe   : > { %633 = vst [vmem:[%s1274_s21 + $0x78] sm:$0xff] %v606_v41  ;;  %v696_v21 = vld [vmem:[%s1274_s21 + $0x60] sm:$0xff] (%p1101_p5) }
  0xff   : > { %634 = vst [vmem:[%s1274_s21 + $0x80] sm:$0xff] %v522_v42  ;;  %v698_v22 = vld [vmem:[%s1274_s21 + $0x68] sm:$0xff] (%p1101_p5) }
 0x100   : > { %635 = vst [vmem:[%s1274_s21 + $0x88] sm:$0xff] %v551_v44 }
 0x101   : > { %693 = vst [vmem:[%s1350_s25 + $0x90] sm:$0xff] (%p1101_p5), %v692_v19 }
 0x102   : > { %v579_v45 = vpop.f32.mrf.mxu2  ;;  %695 = vst [vmem:[%s1350_s25 + $0x98] sm:$0xff] (%p1101_p5), %v694_v20 }
 0x103   : > { %v580_v46 = vadd.f32 %v579_v45, %v1278_v11  ;;  %v608_v47 = vpop.f32.mrf.mxu3  ;;  %v523_v48 = vpop.f32.mrf.mxu0  ;;  %697 = vst [vmem:[%s1350_s25 + $0xc0] sm:$0xff] (%p1101_p5), %v696_v21 }
 0x104   : > { %v609_v49 = vadd.f32 %v608_v47, %v1280_v12  ;;  %v524_v50 = vadd.f32 %v523_v48, %v1267_v5  ;;  %v552_v51 = vpop.f32.mrf.mxu1  ;;  %v700_v23 = vld [vmem:[%s1274_s21 + $0x70] sm:$0xff] (%p1101_p5)  ;;  %699 = vst [vmem:[%s1350_s25 + $0xc8] sm:$0xff] (%p1101_p5), %v698_v22 }
 0x105   : > { %636 = vst [vmem:[%s1274_s21 + $0x90] sm:$0xff] %v580_v46  ;;  %v553_v52 = vadd.f32 %v552_v51, %v1269_v6  ;;  %v702_v24 = vld [vmem:[%s1274_s21 + $0x78] sm:$0xff] (%p1101_p5) }
 0x106   : > { %637 = vst [vmem:[%s1274_s21 + $0x98] sm:$0xff] %v609_v49  ;;  %v704_v25 = vld [vmem:[%s1274_s21 + $0x80] sm:$0xff] (%p1101_p5) }
 0x107   : > { %638 = vst [vmem:[%s1274_s21 + $0xa0] sm:$0xff] %v524_v50  ;;  %v706_v26 = vld [vmem:[%s1274_s21 + $0x88] sm:$0xff] (%p1101_p5) }
 0x108   : > { %639 = vst [vmem:[%s1274_s21 + $0xa8] sm:$0xff] %v553_v52 }
 0x109   : > { %701 = vst [vmem:[%s1350_s25 + $0xd0] sm:$0xff] (%p1101_p5), %v700_v23 }
 0x10a   : > { %v581_v53 = vpop.f32.mrf.mxu2  ;;  %703 = vst [vmem:[%s1350_s25 + $0xd8] sm:$0xff] (%p1101_p5), %v702_v24 }
 0x10b   : > { %v582_v54 = vadd.f32 %v581_v53, %v1278_v11  ;;  %v610_v55 = vpop.f32.mrf.mxu3  ;;  %v526_v56 = vpop.f32.mrf.mxu0  ;;  %705 = vst [vmem:[%s1350_s25 + $0x100] sm:$0xff] (%p1101_p5), %v704_v25 }
 0x10c   : > { %v611_v57 = vadd.f32 %v610_v55, %v1280_v12  ;;  %v527_v58 = vadd.f32 %v526_v56, %v1267_v5  ;;  %v555_v59 = vpop.f32.mrf.mxu1  ;;  %v708_v27 = vld [vmem:[%s1274_s21 + $0x90] sm:$0xff] (%p1101_p5)  ;;  %707 = vst [vmem:[%s1350_s25 + $0x108] sm:$0xff] (%p1101_p5), %v706_v26 }
 0x10d   : > { %640 = vst [vmem:[%s1274_s21 + $0xb0] sm:$0xff] %v582_v54  ;;  %v556_v60 = vadd.f32 %v555_v59, %v1269_v6  ;;  %v710_v28 = vld [vmem:[%s1274_s21 + $0x98] sm:$0xff] (%p1101_p5) }
 0x10e   : > { %641 = vst [vmem:[%s1274_s21 + $0xb8] sm:$0xff] %v611_v57  ;;  %v712_v29 = vld [vmem:[%s1274_s21 + $0xa0] sm:$0xff] (%p1101_p5) }
 0x10f   : > { %642 = vst [vmem:[%s1274_s21 + $0xc0] sm:$0xff] %v527_v58  ;;  %v714_v30 = vld [vmem:[%s1274_s21 + $0xa8] sm:$0xff] (%p1101_p5) }
 0x110   : > { %643 = vst [vmem:[%s1274_s21 + $0xc8] sm:$0xff] %v556_v60 }
 0x111   : > { %709 = vst [vmem:[%s1350_s25 + $0x110] sm:$0xff] (%p1101_p5), %v708_v27 }
 0x112   : > { %v584_v61 = vpop.f32.mrf.mxu2  ;;  %711 = vst [vmem:[%s1350_s25 + $0x118] sm:$0xff] (%p1101_p5), %v710_v28 }
 0x113   : > { %v585_v62 = vadd.f32 %v584_v61, %v1278_v11  ;;  %v613_v63 = vpop.f32.mrf.mxu3  ;;  %v528_v0 = vpop.f32.mrf.mxu0  ;;  %713 = vst [vmem:[%s1350_s25 + $0x140] sm:$0xff] (%p1101_p5), %v712_v29 }
 0x114   : > { %v614_v1 = vadd.f32 %v613_v63, %v1280_v12  ;;  %v529_v2 = vadd.f32 %v528_v0, %v1267_v5  ;;  %v557_v3 = vpop.f32.mrf.mxu1  ;;  %v672_v5 = vld [vmem:[%s1274_s21] sm:$0xff] (%p1101_p5)  ;;  %v716_v31 = vld [vmem:[%s1274_s21 + $0xb0] sm:$0xff] (%p1101_p5)  ;;  %715 = vst [vmem:[%s1350_s25 + $0x148] sm:$0xff] (%p1101_p5), %v714_v30 }
 0x115   : > { %644 = vst [vmem:[%s1274_s21 + $0xd0] sm:$0xff] %v585_v62  ;;  %v558_v4 = vadd.f32 %v557_v3, %v1269_v6  ;;  %v674_v6 = vld [vmem:[%s1274_s21 + $0x8] sm:$0xff] (%p1101_p5)  ;;  %v718_v32 = vld [vmem:[%s1274_s21 + $0xb8] sm:$0xff] (%p1101_p5) }
 0x116   : > { %645 = vst [vmem:[%s1274_s21 + $0xd8] sm:$0xff] %v614_v1  ;;  %v720_v33 = vld [vmem:[%s1274_s21 + $0xc0] sm:$0xff] (%p1101_p5) }
 0x117   : > { %646 = vst [vmem:[%s1274_s21 + $0xe0] sm:$0xff] %v529_v2  ;;  %v722_v34 = vld [vmem:[%s1274_s21 + $0xc8] sm:$0xff] (%p1101_p5) }
 0x118   : > { %647 = vst [vmem:[%s1274_s21 + $0xe8] sm:$0xff] %v558_v4 }
 0x119   : > { %673 = vst [vmem:[%s1350_s25] sm:$0xff] (%p1101_p5), %v672_v5 }
 0x11a   : > { %v586_v7 = vpop.f32.mrf.mxu2  ;;  %656 = sbr.rel (!%p1101_p5) target bundleno = 297 (0x129), region = 59  ;;  %675 = vst [vmem:[%s1350_s25 + $0x8] sm:$0xff] (%p1101_p5), %v674_v6 }
 0x11b   : > { %v587_v8 = vadd.f32 %v586_v7, %v1278_v11  ;;  %v615_v9 = vpop.f32.mrf.mxu3  ;;  %v676_v11 = vld [vmem:[%s1274_s21 + $0x10] sm:$0xff] (%p1101_p5)  ;;  %717 = vst [vmem:[%s1350_s25 + $0x150] sm:$0xff] (%p1101_p5), %v716_v31 }
 0x11c   : > { %v616_v10 = vadd.f32 %v615_v9, %v1280_v12  ;;  %v678_v12 = vld [vmem:[%s1274_s21 + $0x18] sm:$0xff] (%p1101_p5)  ;;  %677 = vst [vmem:[%s1350_s25 + $0x10] sm:$0xff] (%p1101_p5), %v676_v11  ;;  %v724_v35 = vld [vmem:[%s1274_s21 + $0xd0] sm:$0xff] (%p1101_p5) }
 0x11d   : > { %648 = vst [vmem:[%s1274_s21 + $0xf0] sm:$0xff] %v587_v8  ;;  %v726_v36 = vld [vmem:[%s1274_s21 + $0xd8] sm:$0xff] (%p1101_p5) }
 0x11e   : > { %649 = vst [vmem:[%s1274_s21 + $0xf8] sm:$0xff] %v616_v10  ;;  %v728_v37 = vld [vmem:[%s1274_s21 + $0xe0] sm:$0xff] (%p1101_p5) }
 0x11f   : > { %679 = vst [vmem:[%s1350_s25 + $0x18] sm:$0xff] %v678_v12  ;;  %v730_v38 = vld [vmem:[%s1274_s21 + $0xe8] sm:$0xff] }
 0x120   : > { %719 = vst [vmem:[%s1350_s25 + $0x158] sm:$0xff] %v718_v32 }
 0x121   : > { %721 = vst [vmem:[%s1350_s25 + $0x180] sm:$0xff] %v720_v33 }
 0x122   : > { %723 = vst [vmem:[%s1350_s25 + $0x188] sm:$0xff] %v722_v34 }
 0x123   : > { %725 = vst [vmem:[%s1350_s25 + $0x190] sm:$0xff] %v724_v35 }
 0x124   : > { %727 = vst [vmem:[%s1350_s25 + $0x198] sm:$0xff] %v726_v36  ;;  %v732_v39 = vld [vmem:[%s1274_s21 + $0xf0] sm:$0xff] }
 0x125   : > { %729 = vst [vmem:[%s1350_s25 + $0x1c0] sm:$0xff] %v728_v37  ;;  %v734_v40 = vld [vmem:[%s1274_s21 + $0xf8] sm:$0xff] }
 0x126   : > { %731 = vst [vmem:[%s1350_s25 + $0x1c8] sm:$0xff] %v730_v38 }
 0x127   : > { %733 = vst [vmem:[%s1350_s25 + $0x1d0] sm:$0xff] %v732_v39 }
 0x128   : > { %735 = vst [vmem:[%s1350_s25 + $0x1d8] sm:$0xff] %v734_v40 }
 0x129 PF: > { %p10_p11 = scmp.ge.s32.totalorder %s1089_s16, 4   ;;  %s1429_s12 = smov %s1044_s13 }
 0x12a   : > { %s1430_s13 = smov %s1099_s19  ;;  %s1431_s14 = smov %s1089_s16 }
 0x12b   :  { %12 = sbr.rel (!%p10_p11) target bundleno = 2 (0x2), region = 116 }

// kernel: forward.6
= control target key start
LH: loop header
LB: loop body
LE: loop exit
PB: predicated region body
PF: predicated region fallthrough
CT: control target
= control target key end

     0   :  { %s1765_s2 = inlined_call_operand.vmem [shape: bf16[128,384], index: 2, kind: input, shape index: {}]   ;;  %s1766_s1 = inlined_call_operand.vmem [shape: f32[8,128], index: 1, kind: input, shape index: {}]   ;;  %s1767_s3 = inlined_call_operand.vmem [shape: f32[1,128], index: 3, kind: input, shape index: {}]   ;;  %s1768_s0 = inlined_call_operand.vmem [shape: bf16[8,8,384], index: 0, kind: input, shape index: {}]   ;;  %s1769_s4 = inlined_call_operand.vmem [shape: bf16[8,8,128], index: 4, kind: output, shape index: {}]  }
   0x1   :  { %v1070_v0 = vld [vmem:[%s1765_s2 + $0xa8] sm:$0xf]  ;;  %v1139_v1 = vld [vmem:[%s1765_s2 + $0xb0] sm:$0xf0]  ;;  %v1138_v2 = vld [vmem:[%s1765_s2 + $0xac] sm:$0xf] }
   0x2   :  { %v1257_v3 = vor.u32 %v1139_v1, %v1070_v0  ;;  %v1072_v4 = vld [vmem:[%s1765_s2 + $0xb4] sm:$0xf0]  ;;  %v1058_v5 = vld [vmem:[%s1765_s2 + $0x90] sm:$0xf]  ;;  %v1136_v6 = vld [vmem:[%s1765_s2 + $0x98] sm:$0xf0] }
   0x3   :  { %v1268_v7 = vor.u32 %v1138_v2, %v1072_v4  ;;  %v1135_v8 = vld [vmem:[%s1765_s2 + $0x94] sm:$0xf]  ;;  %v1060_v9 = vld [vmem:[%s1765_s2 + $0x9c] sm:$0xf0]  ;;  %v1277_v10 = vor.u32 %v1136_v6, %v1058_v5  ;;  %v1046_v12 = vld [vmem:[%s1765_s2 + $0x78] sm:$0xf] }
   0x4   :  { %188 = vmatpush.bf16.msra.mxu0 %v1257_v3  ;;  %289 = vmatpush.bf16.msra.mxu3 %v1257_v3  ;;  %v1281_v11 = vor.u32 %v1135_v8, %v1060_v9  ;;  %v1133_v13 = vld [vmem:[%s1765_s2 + $0x80] sm:$0xf0]  ;;  %v1132_v14 = vld [vmem:[%s1765_s2 + $0x7c] sm:$0xf]  ;;  %v1048_v15 = vld [vmem:[%s1765_s2 + $0x84] sm:$0xf0] }
   0x5   :  { %201 = vmatpush.bf16.msra.mxu1 %v1268_v7  ;;  %v1078_v16 = vld [vmem:[%s1765_s2 + $0xb0] sm:$0xf]  ;;  %v1140_v17 = vld [vmem:[%s1765_s2 + $0xb8] sm:$0xf0]  ;;  %v1304_v19 = vor.u32 %v1133_v13, %v1046_v12  ;;  %v1066_v20 = vld [vmem:[%s1765_s2 + $0x98] sm:$0xf]  ;;  %v1314_v22 = vor.u32 %v1132_v14, %v1048_v15 }
   0x6   :  { %v1301_v18 = vor.u32 %v1140_v17, %v1078_v16  ;;  %v1137_v21 = vld [vmem:[%s1765_s2 + $0xa0] sm:$0xf0]  ;;  %v1034_v23 = vld [vmem:[%s1765_s2 + $0x60] sm:$0xf]  ;;  %v1130_v24 = vld [vmem:[%s1765_s2 + $0x68] sm:$0xf0] }
   0x7   :  { %v1129_v25 = vld [vmem:[%s1765_s2 + $0x64] sm:$0xf]  ;;  %v1326_v26 = vor.u32 %v1137_v21, %v1066_v20  ;;  %v1036_v27 = vld [vmem:[%s1765_s2 + $0x6c] sm:$0xf0]  ;;  %v1054_v28 = vld [vmem:[%s1765_s2 + $0x80] sm:$0xf]  ;;  %v1338_v30 = vor.u32 %v1130_v24, %v1034_v23 }
   0x8   :  { %189 = vmatpush.bf16.msra.mxu0 %v1277_v10  ;;  %290 = vmatpush.bf16.msra.mxu3 %v1277_v10  ;;  %v1134_v29 = vld [vmem:[%s1765_s2 + $0x88] sm:$0xf0]  ;;  %v1342_v31 = vor.u32 %v1129_v25, %v1036_v27  ;;  %v1022_v32 = vld [vmem:[%s1765_s2 + $0x48] sm:$0xf]  ;;  %v1127_v33 = vld [vmem:[%s1765_s2 + $0x50] sm:$0xf0] }
   0x9   :  { %202 = vmatpush.bf16.msra.mxu1 %v1281_v11  ;;  %214 = vmatpush.bf16.msra.mxu2 %v1301_v18  ;;  %v1126_v34 = vld [vmem:[%s1765_s2 + $0x4c] sm:$0xf]  ;;  %v1354_v35 = vor.u32 %v1134_v29, %v1054_v28  ;;  %v1024_v36 = vld [vmem:[%s1765_s2 + $0x54] sm:$0xf0]  ;;  %v1042_v37 = vld [vmem:[%s1765_s2 + $0x68] sm:$0xf]  ;;  %v1366_v39 = vor.u32 %v1127_v33, %v1022_v32 }
   0xa   :  { %v1131_v38 = vld [vmem:[%s1765_s2 + $0x70] sm:$0xf0]  ;;  %v1370_v40 = vor.u32 %v1126_v34, %v1024_v36  ;;  %v1010_v41 = vld [vmem:[%s1765_s2 + $0x30] sm:$0xf]  ;;  %v1124_v42 = vld [vmem:[%s1765_s2 + $0x38] sm:$0xf0] }
   0xb   :  { %v1123_v43 = vld [vmem:[%s1765_s2 + $0x34] sm:$0xf]  ;;  %v1382_v44 = vor.u32 %v1131_v38, %v1042_v37  ;;  %v1012_v45 = vld [vmem:[%s1765_s2 + $0x3c] sm:$0xf0]  ;;  %v1030_v46 = vld [vmem:[%s1765_s2 + $0x50] sm:$0xf]  ;;  %v1394_v48 = vor.u32 %v1124_v42, %v1010_v41 }
   0xc   :  { %190 = vmatpush.bf16.msra.mxu0 %v1304_v19  ;;  %291 = vmatpush.bf16.msra.mxu3 %v1304_v19  ;;  %v1128_v47 = vld [vmem:[%s1765_s2 + $0x58] sm:$0xf0]  ;;  %v1398_v49 = vor.u32 %v1123_v43, %v1012_v45  ;;  %v998_v50 = vld [vmem:[%s1765_s2 + $0x18] sm:$0xf]  ;;  %v1121_v51 = vld [vmem:[%s1765_s2 + $0x20] sm:$0xf0] }
   0xd   :  { %203 = vmatpush.bf16.msra.mxu1 %v1314_v22  ;;  %215 = vmatpush.bf16.msra.mxu2 %v1326_v26  ;;  %v1120_v52 = vld [vmem:[%s1765_s2 + $0x1c] sm:$0xf]  ;;  %v1410_v53 = vor.u32 %v1128_v47, %v1030_v46  ;;  %v1000_v54 = vld [vmem:[%s1765_s2 + $0x24] sm:$0xf0]  ;;  %v1018_v55 = vld [vmem:[%s1765_s2 + $0x38] sm:$0xf]  ;;  %v1422_v57 = vor.u32 %v1121_v51, %v998_v50 }
   0xe   :  { %v1125_v56 = vld [vmem:[%s1765_s2 + $0x40] sm:$0xf0]  ;;  %v1426_v58 = vor.u32 %v1120_v52, %v1000_v54  ;;  %v986_v59 = vld [vmem:[%s1765_s2] sm:$0xf]  ;;  %v1118_v60 = vld [vmem:[%s1765_s2 + $0x8] sm:$0xf0] }
   0xf   :  { %v1117_v61 = vld [vmem:[%s1765_s2 + $0x4] sm:$0xf]  ;;  %v1438_v62 = vor.u32 %v1125_v56, %v1018_v55  ;;  %v988_v63 = vld [vmem:[%s1765_s2 + $0xc] sm:$0xf0]  ;;  %v1006_v0 = vld [vmem:[%s1765_s2 + $0x20] sm:$0xf]  ;;  %v1450_v2 = vor.u32 %v1118_v60, %v986_v59 }
  0x10   :  { %191 = vmatpush.bf16.msra.mxu0 %v1338_v30  ;;  %292 = vmatpush.bf16.msra.mxu3 %v1338_v30  ;;  %v1122_v1 = vld [vmem:[%s1765_s2 + $0x28] sm:$0xf0]  ;;  %v1455_v4 = vld [vmem:[%s1766_s1] sm:$0xff]  ;;  %v1459_v5 = vor.u32 %v1117_v61, %v988_v63  ;;  %v994_v8 = vld [vmem:[%s1765_s2 + $0x8] sm:$0xf] }
  0x11   :  { %204 = vmatpush.bf16.msra.mxu1 %v1342_v31  ;;  %216 = vmatpush.bf16.msra.mxu2 %v1354_v35  ;;  %v1462_v6 = vor.u32 %v1122_v1, %v1006_v0  ;;  %v1119_v9 = vld [vmem:[%s1765_s2 + $0x10] sm:$0xf0]  ;;  %v59_v12 = vpack.c.bf16 %v1455_v4, %v1455_v4  ;;  %v57_v14 = vld [vmem:[%s1768_s0] sm:$0xff]  ;;  %v58_v56 = vld [vmem:[%s1768_s0 + $0x8] sm:$0xf] }
  0x12   :  { %v1476_v13 = vor.u32 %v1119_v9, %v994_v8  ;;  %v249_v15 = vrot.slane %v57_v14, 4  ;;  %v227_v16 = vunpack.c.l.bf16 %v57_v14  ;;  %v1541_v47 = vld [vmem:[%s1767_s3] ss:$0 sm:$0xff]  ;;  %v272_v0 = vunpack.c.l.bf16 %v58_v56 }
  0x14   :  { %192 = vmatpush.bf16.msra.mxu0 %v1366_v39  ;;  %293 = vmatpush.bf16.msra.mxu3 %v1366_v39  ;;  %v251_v17 = vunpack.c.l.bf16 %v249_v15 }
  0x15   :  { %205 = vmatpush.bf16.msra.mxu1 %v1370_v40  ;;  %217 = vmatpush.bf16.msra.mxu2 %v1382_v44 }
  0x18   :  { %193 = vmatpush.bf16.msra.mxu0 %v1394_v48  ;;  %294 = vmatpush.bf16.msra.mxu3 %v1394_v48 }
  0x19   :  { %206 = vmatpush.bf16.msra.mxu1 %v1398_v49  ;;  %218 = vmatpush.bf16.msra.mxu2 %v1410_v53 }
  0x1c   :  { %194 = vmatpush.bf16.msra.mxu0 %v1422_v57  ;;  %295 = vmatpush.bf16.msra.mxu3 %v1422_v57 }
  0x1d   :  { %207 = vmatpush.bf16.msra.mxu1 %v1426_v58  ;;  %219 = vmatpush.bf16.msra.mxu2 %v1438_v62 }
  0x20   :  { %195 = vmatpush.bf16.msra.mxu0 %v1450_v2  ;;  %296 = vmatpush.bf16.msra.mxu3 %v1450_v2 }
  0x21   :  { %208 = vmatpush.bf16.msra.mxu1 %v1459_v5  ;;  %220 = vmatpush.bf16.msra.mxu2 %v1462_v6 }
  0x23   :  { %196 = vmatmul.bf16.vlgmr.msra.gmra.mxu0 %v59_v12 }
  0x24   :  { %302 = vmatpush.bf16.msrb.mxu0 %v1268_v7  ;;  %401 = vmatpush.bf16.msrb.mxu3 %v1268_v7 }
  0x25   :  { %315 = vmatpush.bf16.msrb.mxu1 %v1301_v18  ;;  %221 = vmatpush.bf16.msra.mxu2 %v1476_v13 }
  0x26   :  { %209 = vmatmul.bf16.vlgmr.msra.gmra.mxu1 %v59_v12 }
  0x28   :  { %303 = vmatpush.bf16.msrb.mxu0 %v1281_v11  ;;  %402 = vmatpush.bf16.msrb.mxu3 %v1281_v11 }
  0x29   :  { %316 = vmatpush.bf16.msrb.mxu1 %v1326_v26  ;;  %388 = vmatpush.bf16.msrb.mxu2 %v1257_v3 }
  0x2a   :  { %222 = vmatmul.bf16.vlgmr.msra.gmra.mxu2 %v59_v12 }
  0x2c   :  { %304 = vmatpush.bf16.msrb.mxu0 %v1314_v22  ;;  %403 = vmatpush.bf16.msrb.mxu3 %v1314_v22 }
  0x2d   :  { %317 = vmatpush.bf16.msrb.mxu1 %v1354_v35  ;;  %389 = vmatpush.bf16.msrb.mxu2 %v1277_v10 }
  0x30   :  { %305 = vmatpush.bf16.msrb.mxu0 %v1342_v31  ;;  %404 = vmatpush.bf16.msrb.mxu3 %v1342_v31 }
  0x31   :  { %318 = vmatpush.bf16.msrb.mxu1 %v1382_v44  ;;  %390 = vmatpush.bf16.msrb.mxu2 %v1304_v19 }
  0x34   :  { %306 = vmatpush.bf16.msrb.mxu0 %v1370_v40  ;;  %405 = vmatpush.bf16.msrb.mxu3 %v1370_v40 }
  0x35   :  { %319 = vmatpush.bf16.msrb.mxu1 %v1410_v53  ;;  %391 = vmatpush.bf16.msrb.mxu2 %v1338_v30 }
  0x38   :  { %307 = vmatpush.bf16.msrb.mxu0 %v1398_v49  ;;  %406 = vmatpush.bf16.msrb.mxu3 %v1398_v49 }
  0x39   :  { %320 = vmatpush.bf16.msrb.mxu1 %v1438_v62  ;;  %392 = vmatpush.bf16.msrb.mxu2 %v1366_v39 }
  0x3c   :  { %308 = vmatpush.bf16.msrb.mxu0 %v1426_v58  ;;  %407 = vmatpush.bf16.msrb.mxu3 %v1426_v58 }
  0x3d   :  { %321 = vmatpush.bf16.msrb.mxu1 %v1462_v6  ;;  %393 = vmatpush.bf16.msrb.mxu2 %v1394_v48 }
  0x40   :  { %309 = vmatpush.bf16.msrb.mxu0 %v1459_v5  ;;  %408 = vmatpush.bf16.msrb.mxu3 %v1459_v5 }
  0x41   :  { %322 = vmatpush.bf16.msrb.mxu1 %v1476_v13  ;;  %394 = vmatpush.bf16.msrb.mxu2 %v1422_v57 }
  0x44   :  { %414 = vmatpush.bf16.msra.mxu0 %v1301_v18 }
  0x45   :  { %487 = vmatpush.bf16.msra.mxu1 %v1257_v3  ;;  %395 = vmatpush.bf16.msrb.mxu2 %v1450_v2 }
  0x48   :  { %415 = vmatpush.bf16.msra.mxu0 %v1326_v26 }
  0x49   :  { %500 = vmatpush.bf16.msra.mxu2 %v1268_v7  ;;  %488 = vmatpush.bf16.msra.mxu1 %v1277_v10 }
  0x4c   :  { %416 = vmatpush.bf16.msra.mxu0 %v1354_v35 }
  0x4d   :  { %501 = vmatpush.bf16.msra.mxu2 %v1281_v11  ;;  %489 = vmatpush.bf16.msra.mxu1 %v1304_v19 }
  0x50   :  { %417 = vmatpush.bf16.msra.mxu0 %v1382_v44 }
  0x51   :  { %502 = vmatpush.bf16.msra.mxu2 %v1314_v22  ;;  %490 = vmatpush.bf16.msra.mxu1 %v1338_v30 }
  0x54   :  { %418 = vmatpush.bf16.msra.mxu0 %v1410_v53 }
  0x55   :  { %503 = vmatpush.bf16.msra.mxu2 %v1342_v31  ;;  %491 = vmatpush.bf16.msra.mxu1 %v1366_v39 }
  0x58   :  { %419 = vmatpush.bf16.msra.mxu0 %v1438_v62 }
  0x59   :  { %504 = vmatpush.bf16.msra.mxu2 %v1370_v40  ;;  %492 = vmatpush.bf16.msra.mxu1 %v1394_v48 }
  0x5c   :  { %420 = vmatpush.bf16.msra.mxu0 %v1462_v6 }
  0x5d   :  { %505 = vmatpush.bf16.msra.mxu2 %v1398_v49  ;;  %493 = vmatpush.bf16.msra.mxu1 %v1422_v57 }
  0x60   :  { %421 = vmatpush.bf16.msra.mxu0 %v1476_v13 }
  0x61   :  { %506 = vmatpush.bf16.msra.mxu2 %v1426_v58  ;;  %494 = vmatpush.bf16.msra.mxu1 %v1450_v2 }
  0x65   :  { %507 = vmatpush.bf16.msra.mxu2 %v1459_v5 }
  0xa0   :  { %v197_v20 = vpop.f32.mrf.mxu0 }
  0xa1   :  { %v228_v21 = vadd.f32 %v227_v16, %v197_v20 }
  0xa3   :  { %v210_v23 = vpop.f32.mrf.mxu1  ;;  %v1080_v25 = vmul.f32 -1.442695, %v228_v21 }
  0xa4   :  { %v252_v24 = vadd.f32 %v251_v17, %v210_v23 }
  0xa5   :  { %1142 = vpow2.f32 %v1080_v25 }
  0xa6   :  { %v1081_v27 = vmul.f32 -1.442695, %v252_v24 }
  0xa8   :  { %1144 = vpow2.f32 %v1081_v27  ;;  %v199_v28 = vpop.f32.mrf.mxu0 }
  0xab   :  { %v212_v29 = vpop.f32.mrf.mxu1  ;;  %v1143_v32 = vpop.eup %1142 }
  0xac   :  { %v232_v36 = vadd.f32 1.0, %v1143_v32 }
  0xad   :  { %v223_v33 = vpop.f32.mrf.mxu2 }
  0xae   :  { %v1145_v34 = vpop.eup %1144  ;;  %1146 = vrcp.f32 %v232_v36  ;;  %v244_v51 = vand.u32 2147483648, %v232_v36  ;;  %v242_v54 = vand.u32 2147483647, %v232_v36  ;;  %vm238_vm1 = vweird.f32 %v232_v36 }
  0xaf   :  { %v256_v37 = vadd.f32 1.0, %v1145_v34  ;;  %v276_v60 = vadd.f32 %v1541_v47, %v223_v33 }
  0xb0   :  { %v245_v61 = vor.u32 1.1754944e-38, %v244_v51  ;;  %vm243_vm3 = vcmp.eq.f32.partialorder %v242_v54, 8.507059e+37 }
  0xb1   :  { %1148 = vrcp.f32 %v256_v37  ;;  %vm262_vm4 = vweird.f32 %v256_v37  ;;  %v268_v9 = vand.u32 2147483648, %v256_v37  ;;  %v266_v14 = vand.u32 2147483647, %v256_v37 }
  0xb3   :  { %v269_v17 = vor.u32 1.1754944e-38, %v268_v9  ;;  %vm267_vm7 = vcmp.eq.f32.partialorder %v266_v14, 8.507059e+37  ;;  %v1083_v14 = vld [vmem:[%s1768_s0 + $0x14] sm:$0xf] }
  0xb4   :  { %v1147_v41 = vpop.eup %1146 }
  0xb5   :  { %v225_v38 = vpop.f32.mrf.mxu2  ;;  %v234_v43 = vmul.f32 %v1147_v41, %v232_v36  ;;  %vm239_vm0 = vweird.f32 %v1147_v41 }
  0xb6   :  { %vm240_vm2 = vmor %vm238_vm1, %vm239_vm0 }
  0xb7   :  { %v1149_v42 = vpop.eup %1148  ;;  %v235_v46 = vsub.f32 1.0, %v234_v43 }
  0xb8   :  { %v258_v45 = vmul.f32 %v1149_v42, %v256_v37  ;;  %vm263_vm5 = vweird.f32 %v1149_v42 }
  0xb9   :  { %v236_v52 = vmul.f32 %v1147_v41, %v235_v46  ;;  %vm264_vm6 = vmor %vm262_vm4, %vm263_vm5 }
  0xba   :  { %v259_v50 = vsub.f32 1.0, %v258_v45 }
  0xbb   :  { %v237_v59 = vadd.f32 %v1147_v41, %v236_v52 }
  0xbc   :  { %v260_v55 = vmul.f32 %v1149_v42, %v259_v50 }
  0xbd   :  { %v241_v63 = vsel %vm240_vm2, %v1147_v41, %v237_v59 }
  0xbe   :  { %v246_v1 = vsel %vm243_vm3, %v245_v61, %v241_v63  ;;  %v261_v8 = vadd.f32 %v1149_v42, %v260_v55 }
  0xbf   :  { %v277_v12 = vmul.f32 %v276_v60, %v246_v1 }
  0xc0   :  { %v265_v16 = vsel %vm264_vm6, %v1149_v42, %v261_v8 }
  0xc1   :  { %v278_v15 = vadd.f32 %v277_v12, %v272_v0  ;;  %v270_v20 = vsel %vm267_vm7, %v269_v17, %v265_v16 }
  0xc2   :  { %v280_v21 = vsub.f32 1.0, %v270_v20  ;;  %v282_v25 = vmul.f32 %v270_v20, %v1455_v4  ;;  %v1082_v4 = vld [vmem:[%s1768_s0 + $0xc] sm:$0xff] }
  0xc3   :  { %1150 = vtanh.f32 %v278_v15  ;;  %v350_v29 = vrot.slane %v1082_v4, 4  ;;  %v328_v38 = vunpack.c.l.bf16 %v1082_v4 }
  0xc5   :  { %v352_v32 = vunpack.c.l.bf16 %v350_v29 }
  0xc9   :  { %v1151_v23 = vpop.eup %1150 }
  0xca   :  { %v281_v24 = vmul.f32 %v1151_v23, %v280_v21  ;;  %v373_v21 = vunpack.c.l.bf16 %v1083_v14 }
  0xcc   :  { %v1548_v27 = vadd.f32 %v282_v25, %v281_v24 }
  0xce   :  { %v284_v28 = vpack.c.bf16 %v1548_v27, %v1548_v27 }
  0xd0   :  { %285 = vst [vmem:[%s1769_s4] sm:$0xf] %v284_v28  ;;  %297 = vmatmul.bf16.vlgmr.msra.gmra.mxu3 %v284_v28  ;;  %310 = vmatmul.bf16.vlgmr.msrb.gmra.mxu0 %v284_v28 }
  0xd1   :  { %323 = vmatmul.bf16.vlgmr.msrb.gmra.mxu1 %v284_v28  ;;  %513 = vmatpush.bf16.msra.mxu3 %v1301_v18 }
  0xd2   :  { %586 = vmatpush.bf16.msrb.mxu0 %v1257_v3  ;;  %599 = vmatpush.bf16.msrb.mxu1 %v1268_v7 }
  0xd5   :  { %514 = vmatpush.bf16.msra.mxu3 %v1326_v26 }
  0xd6   :  { %587 = vmatpush.bf16.msrb.mxu0 %v1277_v10  ;;  %600 = vmatpush.bf16.msrb.mxu1 %v1281_v11 }
  0xd9   :  { %515 = vmatpush.bf16.msra.mxu3 %v1354_v35 }
  0xda   :  { %588 = vmatpush.bf16.msrb.mxu0 %v1304_v19  ;;  %601 = vmatpush.bf16.msrb.mxu1 %v1314_v22 }
  0xdd   :  { %516 = vmatpush.bf16.msra.mxu3 %v1382_v44 }
  0xde   :  { %589 = vmatpush.bf16.msrb.mxu0 %v1338_v30  ;;  %602 = vmatpush.bf16.msrb.mxu1 %v1342_v31 }
  0xe1   :  { %517 = vmatpush.bf16.msra.mxu3 %v1410_v53 }
  0xe2   :  { %590 = vmatpush.bf16.msrb.mxu0 %v1366_v39  ;;  %603 = vmatpush.bf16.msrb.mxu1 %v1370_v40 }
  0xe5   :  { %518 = vmatpush.bf16.msra.mxu3 %v1438_v62 }
  0xe6   :  { %591 = vmatpush.bf16.msrb.mxu0 %v1394_v48  ;;  %604 = vmatpush.bf16.msrb.mxu1 %v1398_v49 }
  0xe9   :  { %519 = vmatpush.bf16.msra.mxu3 %v1462_v6 }
  0xea   :  { %592 = vmatpush.bf16.msrb.mxu0 %v1422_v57  ;;  %605 = vmatpush.bf16.msrb.mxu1 %v1426_v58 }
  0xed   :  { %520 = vmatpush.bf16.msra.mxu3 %v1476_v13 }
  0xee   :  { %593 = vmatpush.bf16.msrb.mxu0 %v1450_v2  ;;  %606 = vmatpush.bf16.msrb.mxu1 %v1459_v5 }
 0x14d   :  { %v311_v33 = vpop.f32.mrf.mxu0 }
 0x14e   :  { %v353_v34 = vadd.f32 %v352_v32, %v311_v33  ;;  %v324_v36 = vpop.f32.mrf.mxu1 }
 0x14f   :  { %v374_v17 = vadd.f32 %v1541_v47, %v324_v36 }
 0x150   :  { %v1085_v37 = vmul.f32 -1.442695, %v353_v34 }
 0x152   :  { %1152 = vpow2.f32 %v1085_v37 }
 0x153   :  { %v298_v41 = vpop.f32.mrf.mxu3 }
 0x154   :  { %v329_v42 = vadd.f32 %v328_v38, %v298_v41 }
 0x155   :  { %v313_v43 = vpop.f32.mrf.mxu0 }
 0x156   :  { %v1084_v45 = vmul.f32 -1.442695, %v329_v42  ;;  %v326_v46 = vpop.f32.mrf.mxu1 }
 0x158   :  { %v1153_v50 = vpop.eup %1152  ;;  %1154 = vpow2.f32 %v1084_v45 }
 0x159   :  { %v357_v51 = vadd.f32 1.0, %v1153_v50 }
 0x15b   :  { %v300_v52 = vpop.f32.mrf.mxu3  ;;  %1156 = vrcp.f32 %v357_v51  ;;  %v369_v25 = vand.u32 2147483648, %v357_v51  ;;  %vm363_vm13 = vweird.f32 %v357_v51  ;;  %v367_v4 = vand.u32 2147483647, %v357_v51 }
 0x15d   :  { %v370_v33 = vor.u32 1.1754944e-38, %v369_v25  ;;  %vm368_vm15 = vcmp.eq.f32.partialorder %v367_v4, 8.507059e+37  ;;  %v1088_v4 = vld [vmem:[%s1768_s0 + $0x20] sm:$0xf] }
 0x15e   :  { %v1155_v54 = vpop.eup %1154 }
 0x15f   :  { %v333_v55 = vadd.f32 1.0, %v1155_v54 }
 0x161   :  { %1158 = vrcp.f32 %v333_v55  ;;  %v1157_v56 = vpop.eup %1156  ;;  %v345_v1 = vand.u32 2147483648, %v333_v55  ;;  %v343_v9 = vand.u32 2147483647, %v333_v55  ;;  %vm339_vm9 = vweird.f32 %v333_v55 }
 0x162   :  { %v359_v59 = vmul.f32 %v1157_v56, %v357_v51  ;;  %vm364_vm12 = vweird.f32 %v1157_v56 }
 0x163   :  { %v346_v16 = vor.u32 1.1754944e-38, %v345_v1  ;;  %vm344_vm11 = vcmp.eq.f32.partialorder %v343_v9, 8.507059e+37  ;;  %vm365_vm14 = vmor %vm363_vm13, %vm364_vm12 }
 0x164   :  { %v360_v63 = vsub.f32 1.0, %v359_v59 }
 0x166   :  { %v361_v12 = vmul.f32 %v1157_v56, %v360_v63 }
 0x167   :  { %v1159_v60 = vpop.eup %1158 }
 0x168   :  { %v335_v61 = vmul.f32 %v1159_v60, %v333_v55  ;;  %vm340_vm8 = vweird.f32 %v1159_v60  ;;  %v362_v24 = vadd.f32 %v1157_v56, %v361_v12 }
 0x169   :  { %vm341_vm10 = vmor %vm339_vm9, %vm340_vm8 }
 0x16a   :  { %v336_v0 = vsub.f32 1.0, %v335_v61  ;;  %v366_v32 = vsel %vm365_vm14, %v1157_v56, %v362_v24 }
 0x16b   :  { %v371_v34 = vsel %vm368_vm15, %v370_v33, %v366_v32 }
 0x16c   :  { %v337_v8 = vmul.f32 %v1159_v60, %v336_v0  ;;  %v378_v37 = vsub.f32 1.0, %v371_v34  ;;  %v380_v41 = vmul.f32 %v371_v34, %v1548_v27  ;;  %v1087_v27 = vld [vmem:[%s1768_s0 + $0x18] sm:$0xff] }
 0x16d   :  { %v449_v45 = vrot.slane %v1087_v27, 4  ;;  %v427_v50 = vunpack.c.l.bf16 %v1087_v27 }
 0x16e   :  { %v338_v15 = vadd.f32 %v1159_v60, %v337_v8 }
 0x16f   :  { %v451_v51 = vunpack.c.l.bf16 %v449_v45 }
 0x170   :  { %v342_v20 = vsel %vm341_vm10, %v1159_v60, %v338_v15 }
 0x171   :  { %v347_v23 = vsel %vm344_vm11, %v346_v16, %v342_v20 }
 0x172   :  { %v375_v28 = vmul.f32 %v374_v17, %v347_v23 }
 0x174   :  { %v376_v29 = vadd.f32 %v375_v28, %v373_v21 }
 0x176   :  { %1160 = vtanh.f32 %v376_v29 }
 0x17c   :  { %v1161_v38 = vpop.eup %1160 }
 0x17d   :  { %v379_v36 = vmul.f32 %v1161_v38, %v378_v37  ;;  %v472_v37 = vunpack.c.l.bf16 %v1088_v4 }
 0x17f   :  { %v1587_v42 = vadd.f32 %v380_v41, %v379_v36 }
 0x181   :  { %v382_v43 = vpack.c.bf16 %v1587_v42, %v1587_v42 }
 0x183   :  { %1086 = vst [vmem:[%s1769_s4 + $0x4] sm:$0xf] %v382_v43  ;;  %396 = vmatmul.bf16.vlgmr.msrb.gmra.mxu2 %v382_v43  ;;  %409 = vmatmul.bf16.vlgmr.msrb.gmra.mxu3 %v382_v43 }
 0x184   :  { %422 = vmatmul.bf16.vlgmr.msra.gmra.mxu0 %v382_v43  ;;  %612 = vmatpush.bf16.msrb.mxu2 %v1301_v18 }
 0x185   :  { %685 = vmatpush.bf16.msrb.mxu3 %v1257_v3  ;;  %698 = vmatpush.bf16.msra.mxu0 %v1268_v7 }
 0x188   :  { %613 = vmatpush.bf16.msrb.mxu2 %v1326_v26 }
 0x189   :  { %686 = vmatpush.bf16.msrb.mxu3 %v1277_v10  ;;  %699 = vmatpush.bf16.msra.mxu0 %v1281_v11 }
 0x18c   :  { %614 = vmatpush.bf16.msrb.mxu2 %v1354_v35 }
 0x18d   :  { %687 = vmatpush.bf16.msrb.mxu3 %v1304_v19  ;;  %700 = vmatpush.bf16.msra.mxu0 %v1314_v22 }
 0x190   :  { %615 = vmatpush.bf16.msrb.mxu2 %v1382_v44 }
 0x191   :  { %688 = vmatpush.bf16.msrb.mxu3 %v1338_v30  ;;  %701 = vmatpush.bf16.msra.mxu0 %v1342_v31 }
 0x194   :  { %616 = vmatpush.bf16.msrb.mxu2 %v1410_v53 }
 0x195   :  { %689 = vmatpush.bf16.msrb.mxu3 %v1366_v39  ;;  %702 = vmatpush.bf16.msra.mxu0 %v1370_v40 }
 0x198   :  { %617 = vmatpush.bf16.msrb.mxu2 %v1438_v62 }
 0x199   :  { %690 = vmatpush.bf16.msrb.mxu3 %v1394_v48  ;;  %703 = vmatpush.bf16.msra.mxu0 %v1398_v49 }
 0x19c   :  { %618 = vmatpush.bf16.msrb.mxu2 %v1462_v6 }
 0x19d   :  { %691 = vmatpush.bf16.msrb.mxu3 %v1422_v57  ;;  %704 = vmatpush.bf16.msra.mxu0 %v1426_v58 }
 0x1a0   :  { %619 = vmatpush.bf16.msrb.mxu2 %v1476_v13 }
 0x1a1   :  { %692 = vmatpush.bf16.msrb.mxu3 %v1450_v2  ;;  %705 = vmatpush.bf16.msra.mxu0 %v1459_v5 }
 0x201   :  { %v423_v46 = vpop.f32.mrf.mxu0 }
 0x202   :  { %v473_v33 = vadd.f32 %v1541_v47, %v423_v46 }
 0x206   :  { %v397_v52 = vpop.f32.mrf.mxu2  ;;  %v410_v54 = vpop.f32.mrf.mxu3 }
 0x207   :  { %v428_v55 = vadd.f32 %v427_v50, %v397_v52  ;;  %v452_v56 = vadd.f32 %v451_v51, %v410_v54 }
 0x209   :  { %v1089_v59 = vmul.f32 -1.442695, %v428_v55  ;;  %v1090_v60 = vmul.f32 -1.442695, %v452_v56  ;;  %v425_v61 = vpop.f32.mrf.mxu0 }
 0x20b   :  { %1162 = vpow2.f32 %v1089_v59 }
 0x20c   :  { %1164 = vpow2.f32 %v1090_v60 }
 0x20e   :  { %v399_v63 = vpop.f32.mrf.mxu2  ;;  %v412_v0 = vpop.f32.mrf.mxu3 }
 0x211   :  { %v1163_v1 = vpop.eup %1162 }
 0x212   :  { %v1165_v8 = vpop.eup %1164  ;;  %v432_v9 = vadd.f32 1.0, %v1163_v1 }
 0x213   :  { %v456_v12 = vadd.f32 1.0, %v1165_v8 }
 0x214   :  { %1166 = vrcp.f32 %v432_v9  ;;  %v444_v21 = vand.u32 2147483648, %v432_v9  ;;  %v442_v25 = vand.u32 2147483647, %v432_v9  ;;  %vm438_vm1 = vweird.f32 %v432_v9 }
 0x215   :  { %1168 = vrcp.f32 %v456_v12  ;;  %v468_v43 = vand.u32 2147483648, %v456_v12  ;;  %vm462_vm5 = vweird.f32 %v456_v12  ;;  %v466_v27 = vand.u32 2147483647, %v456_v12 }
 0x216   :  { %v445_v32 = vor.u32 1.1754944e-38, %v444_v21  ;;  %vm443_vm3 = vcmp.eq.f32.partialorder %v442_v25, 8.507059e+37 }
 0x217   :  { %v469_v51 = vor.u32 1.1754944e-38, %v468_v43  ;;  %vm467_vm7 = vcmp.eq.f32.partialorder %v466_v27, 8.507059e+37 }
 0x21a   :  { %v1167_v14 = vpop.eup %1166 }
 0x21b   :  { %v1169_v15 = vpop.eup %1168  ;;  %v434_v16 = vmul.f32 %v1167_v14, %v432_v9  ;;  %vm439_vm0 = vweird.f32 %v1167_v14 }
 0x21c   :  { %v458_v17 = vmul.f32 %v1169_v15, %v456_v12  ;;  %vm440_vm2 = vmor %vm438_vm1, %vm439_vm0  ;;  %vm463_vm4 = vweird.f32 %v1169_v15 }
 0x21d   :  { %v435_v20 = vsub.f32 1.0, %v434_v16  ;;  %vm464_vm6 = vmor %vm462_vm5, %vm463_vm4 }
 0x21e   :  { %v459_v23 = vsub.f32 1.0, %v458_v17 }
 0x21f   :  { %v436_v24 = vmul.f32 %v1167_v14, %v435_v20 }
 0x220   :  { %v460_v28 = vmul.f32 %v1169_v15, %v459_v23 }
 0x221   :  { %v437_v29 = vadd.f32 %v1167_v14, %v436_v24 }
 0x222   :  { %v461_v36 = vadd.f32 %v1169_v15, %v460_v28 }
 0x223   :  { %v441_v34 = vsel %vm440_vm2, %v1167_v14, %v437_v29 }
 0x224   :  { %v446_v38 = vsel %vm443_vm3, %v445_v32, %v441_v34  ;;  %v465_v50 = vsel %vm464_vm6, %v1169_v15, %v461_v36  ;;  %v1093_v34 = vld [vmem:[%s1768_s0 + $0x2c] sm:$0xf] }
 0x225   :  { %v474_v41 = vmul.f32 %v473_v33, %v446_v38  ;;  %v470_v52 = vsel %vm467_vm7, %v469_v51, %v465_v50 }
 0x226   :  { %v477_v54 = vsub.f32 1.0, %v470_v52  ;;  %v479_v56 = vmul.f32 %v470_v52, %v1587_v42  ;;  %v1092_v42 = vld [vmem:[%s1768_s0 + $0x24] sm:$0xff] }
 0x227   :  { %v475_v45 = vadd.f32 %v474_v41, %v472_v37  ;;  %v526_v61 = vunpack.c.l.bf16 %v1092_v42  ;;  %v548_v63 = vrot.slane %v1092_v42, 4 }
 0x229   :  { %1170 = vtanh.f32 %v475_v45  ;;  %v550_v9 = vunpack.c.l.bf16 %v548_v63  ;;  %v571_v45 = vunpack.c.l.bf16 %v1093_v34  ;;  %v1098_v34 = vld [vmem:[%s1768_s0 + $0x38] sm:$0xf] }
 0x22f   :  { %v1171_v55 = vpop.eup %1170 }
 0x230   :  { %v478_v46 = vmul.f32 %v1171_v55, %v477_v54 }
 0x232   :  { %v1626_v59 = vadd.f32 %v479_v56, %v478_v46 }
 0x234   :  { %v481_v60 = vpack.c.bf16 %v1626_v59, %v1626_v59 }
 0x236   :  { %1091 = vst [vmem:[%s1769_s4 + $0x8] sm:$0xf] %v481_v60  ;;  %495 = vmatmul.bf16.vlgmr.msra.gmra.mxu1 %v481_v60  ;;  %508 = vmatmul.bf16.vlgmr.msra.gmra.mxu2 %v481_v60 }
 0x237   :  { %521 = vmatmul.bf16.vlgmr.msra.gmra.mxu3 %v481_v60  ;;  %711 = vmatpush.bf16.msra.mxu1 %v1301_v18 }
 0x238   :  { %784 = vmatpush.bf16.msra.mxu2 %v1257_v3  ;;  %797 = vmatpush.bf16.msra.mxu3 %v1268_v7 }
 0x23b   :  { %712 = vmatpush.bf16.msra.mxu1 %v1326_v26 }
 0x23c   :  { %785 = vmatpush.bf16.msra.mxu2 %v1277_v10  ;;  %798 = vmatpush.bf16.msra.mxu3 %v1281_v11 }
 0x23f   :  { %713 = vmatpush.bf16.msra.mxu1 %v1354_v35 }
 0x240   :  { %786 = vmatpush.bf16.msra.mxu2 %v1304_v19  ;;  %799 = vmatpush.bf16.msra.mxu3 %v1314_v22 }
 0x243   :  { %714 = vmatpush.bf16.msra.mxu1 %v1382_v44 }
 0x244   :  { %787 = vmatpush.bf16.msra.mxu2 %v1338_v30  ;;  %800 = vmatpush.bf16.msra.mxu3 %v1342_v31 }
 0x247   :  { %715 = vmatpush.bf16.msra.mxu1 %v1410_v53 }
 0x248   :  { %788 = vmatpush.bf16.msra.mxu2 %v1366_v39  ;;  %801 = vmatpush.bf16.msra.mxu3 %v1370_v40 }
 0x24b   :  { %716 = vmatpush.bf16.msra.mxu1 %v1438_v62 }
 0x24c   :  { %789 = vmatpush.bf16.msra.mxu2 %v1394_v48  ;;  %802 = vmatpush.bf16.msra.mxu3 %v1398_v49 }
 0x24f   :  { %717 = vmatpush.bf16.msra.mxu1 %v1462_v6 }
 0x250   :  { %790 = vmatpush.bf16.msra.mxu2 %v1422_v57  ;;  %803 = vmatpush.bf16.msra.mxu3 %v1426_v58 }
 0x253   :  { %718 = vmatpush.bf16.msra.mxu1 %v1476_v13 }
 0x254   :  { %791 = vmatpush.bf16.msra.mxu2 %v1450_v2  ;;  %804 = vmatpush.bf16.msra.mxu3 %v1459_v5 }
 0x2b3   :  { %v496_v0 = vpop.f32.mrf.mxu1 }
 0x2b4   :  { %v527_v1 = vadd.f32 %v526_v61, %v496_v0 }
 0x2b6   :  { %v1094_v8 = vmul.f32 -1.442695, %v527_v1 }
 0x2b8   :  { %1172 = vpow2.f32 %v1094_v8 }
 0x2b9   :  { %v509_v12 = vpop.f32.mrf.mxu2 }
 0x2ba   :  { %v551_v14 = vadd.f32 %v550_v9, %v509_v12  ;;  %v522_v15 = vpop.f32.mrf.mxu3 }
 0x2bb   :  { %v498_v16 = vpop.f32.mrf.mxu1  ;;  %v572_v52 = vadd.f32 %v1541_v47, %v522_v15 }
 0x2bc   :  { %v1095_v17 = vmul.f32 -1.442695, %v551_v14 }
 0x2be   :  { %v1173_v20 = vpop.eup %1172  ;;  %1174 = vpow2.f32 %v1095_v17 }
 0x2bf   :  { %v531_v21 = vadd.f32 1.0, %v1173_v20 }
 0x2c1   :  { %1176 = vrcp.f32 %v531_v21  ;;  %v511_v23 = vpop.f32.mrf.mxu2  ;;  %v543_v33 = vand.u32 2147483648, %v531_v21  ;;  %v541_v38 = vand.u32 2147483647, %v531_v21  ;;  %vm537_vm9 = vweird.f32 %v531_v21 }
 0x2c2   :  { %v524_v24 = vpop.f32.mrf.mxu3 }
 0x2c3   :  { %v544_v27 = vor.u32 1.1754944e-38, %v543_v33  ;;  %vm542_vm11 = vcmp.eq.f32.partialorder %v541_v38, 8.507059e+37 }
 0x2c4   :  { %v1175_v25 = vpop.eup %1174 }
 0x2c5   :  { %v555_v28 = vadd.f32 1.0, %v1175_v25 }
 0x2c7   :  { %v1177_v4 = vpop.eup %1176  ;;  %1178 = vrcp.f32 %v555_v28  ;;  %v567_v46 = vand.u32 2147483648, %v555_v28  ;;  %v565_v60 = vand.u32 2147483647, %v555_v28  ;;  %vm561_vm13 = vweird.f32 %v555_v28 }
 0x2c8   :  { %v533_v29 = vmul.f32 %v1177_v4, %v531_v21  ;;  %vm538_vm8 = vweird.f32 %v1177_v4 }
 0x2c9   :  { %vm539_vm10 = vmor %vm537_vm9, %vm538_vm8  ;;  %v568_v63 = vor.u32 1.1754944e-38, %v567_v46  ;;  %vm566_vm15 = vcmp.eq.f32.partialorder %v565_v60, 8.507059e+37 }
 0x2ca   :  { %v534_v32 = vsub.f32 1.0, %v533_v29 }
 0x2cc   :  { %v535_v37 = vmul.f32 %v1177_v4, %v534_v32 }
 0x2cd   :  { %v1179_v36 = vpop.eup %1178 }
 0x2ce   :  { %v557_v41 = vmul.f32 %v1179_v36, %v555_v28  ;;  %v536_v43 = vadd.f32 %v1177_v4, %v535_v37  ;;  %vm562_vm12 = vweird.f32 %v1179_v36 }
 0x2cf   :  { %vm563_vm14 = vmor %vm561_vm13, %vm562_vm12 }
 0x2d0   :  { %v558_v50 = vsub.f32 1.0, %v557_v41  ;;  %v540_v51 = vsel %vm539_vm10, %v1177_v4, %v536_v43  ;;  %v670_v41 = vunpack.c.l.bf16 %v1098_v34 }
 0x2d1   :  { %v545_v54 = vsel %vm542_vm11, %v544_v27, %v540_v51 }
 0x2d2   :  { %v559_v55 = vmul.f32 %v1179_v36, %v558_v50  ;;  %v573_v56 = vmul.f32 %v572_v52, %v545_v54 }
 0x2d4   :  { %v574_v42 = vadd.f32 %v573_v56, %v571_v45  ;;  %v560_v61 = vadd.f32 %v1179_v36, %v559_v55 }
 0x2d6   :  { %1180 = vtanh.f32 %v574_v42  ;;  %v564_v0 = vsel %vm563_vm14, %v1179_v36, %v560_v61 }
 0x2d7   :  { %v569_v1 = vsel %vm566_vm15, %v568_v63, %v564_v0 }
 0x2d8   :  { %v576_v8 = vsub.f32 1.0, %v569_v1  ;;  %v578_v14 = vmul.f32 %v569_v1, %v1626_v59 }
 0x2dc   :  { %v1181_v9 = vpop.eup %1180 }
 0x2dd   :  { %v577_v12 = vmul.f32 %v1181_v9, %v576_v8  ;;  %v1102_v8 = vld [vmem:[%s1768_s0 + $0x3c] sm:$0xff] }
 0x2de   :  { %v746_v9 = vrot.slane %v1102_v8, 4 }
 0x2df   :  { %v1665_v15 = vadd.f32 %v578_v14, %v577_v12 }
 0x2e1   :  { %v580_v16 = vpack.c.bf16 %v1665_v15, %v1665_v15 }
 0x2e3   :  { %1096 = vst [vmem:[%s1769_s4 + $0xc] sm:$0xf] %v580_v16  ;;  %594 = vmatmul.bf16.vlgmr.msrb.gmra.mxu0 %v580_v16  ;;  %607 = vmatmul.bf16.vlgmr.msrb.gmra.mxu1 %v580_v16 }
 0x2e4   :  { %620 = vmatmul.bf16.vlgmr.msrb.gmra.mxu2 %v580_v16  ;;  %810 = vmatpush.bf16.msrb.mxu0 %v1301_v18 }
 0x2e5   :  { %883 = vmatpush.bf16.msrb.mxu1 %v1257_v3  ;;  %896 = vmatpush.bf16.msrb.mxu2 %v1268_v7  ;;  %v1097_v3 = vld [vmem:[%s1768_s0 + $0x30] sm:$0xff] }
 0x2e6   :  { %v647_v7 = vrot.slane %v1097_v3, 4 }
 0x2e8   :  { %811 = vmatpush.bf16.msrb.mxu0 %v1326_v26 }
 0x2e9   :  { %884 = vmatpush.bf16.msrb.mxu1 %v1277_v10  ;;  %897 = vmatpush.bf16.msrb.mxu2 %v1281_v11  ;;  %v625_v10 = vunpack.c.l.bf16 %v1097_v3  ;;  %v649_v11 = vunpack.c.l.bf16 %v647_v7 }
 0x2ec   :  { %812 = vmatpush.bf16.msrb.mxu0 %v1354_v35 }
 0x2ed   :  { %885 = vmatpush.bf16.msrb.mxu1 %v1304_v19  ;;  %898 = vmatpush.bf16.msrb.mxu2 %v1314_v22 }
 0x2f0   :  { %813 = vmatpush.bf16.msrb.mxu0 %v1382_v44 }
 0x2f1   :  { %886 = vmatpush.bf16.msrb.mxu1 %v1338_v30  ;;  %899 = vmatpush.bf16.msrb.mxu2 %v1342_v31 }
 0x2f4   :  { %814 = vmatpush.bf16.msrb.mxu0 %v1410_v53 }
 0x2f5   :  { %887 = vmatpush.bf16.msrb.mxu1 %v1366_v39  ;;  %900 = vmatpush.bf16.msrb.mxu2 %v1370_v40 }
 0x2f8   :  { %815 = vmatpush.bf16.msrb.mxu0 %v1438_v62 }
 0x2f9   :  { %888 = vmatpush.bf16.msrb.mxu1 %v1394_v48  ;;  %901 = vmatpush.bf16.msrb.mxu2 %v1398_v49 }
 0x2fc   :  { %816 = vmatpush.bf16.msrb.mxu0 %v1462_v6 }
 0x2fd   :  { %889 = vmatpush.bf16.msrb.mxu1 %v1422_v57  ;;  %902 = vmatpush.bf16.msrb.mxu2 %v1426_v58 }
 0x300   :  { %817 = vmatpush.bf16.msrb.mxu0 %v1476_v13 }
 0x301   :  { %890 = vmatpush.bf16.msrb.mxu1 %v1450_v2  ;;  %903 = vmatpush.bf16.msrb.mxu2 %v1459_v5 }
 0x360   :  { %v595_v19 = vpop.f32.mrf.mxu0  ;;  %v608_v22 = vpop.f32.mrf.mxu1 }
 0x361   :  { %v626_v30 = vadd.f32 %v625_v10, %v595_v19  ;;  %v650_v31 = vadd.f32 %v649_v11, %v608_v22 }
 0x363   :  { %v1099_v39 = vmul.f32 -1.442695, %v626_v30  ;;  %v1100_v40 = vmul.f32 -1.442695, %v650_v31 }
 0x365   :  { %1182 = vpow2.f32 %v1099_v39 }
 0x366   :  { %1184 = vpow2.f32 %v1100_v40 }
 0x367   :  { %v621_v48 = vpop.f32.mrf.mxu2 }
 0x368   :  { %v597_v49 = vpop.f32.mrf.mxu0  ;;  %v610_v57 = vpop.f32.mrf.mxu1  ;;  %v671_v43 = vadd.f32 %v1541_v47, %v621_v48 }
 0x36b   :  { %v1183_v58 = vpop.eup %1182 }
 0x36c   :  { %v1185_v2 = vpop.eup %1184  ;;  %v630_v5 = vadd.f32 1.0, %v1183_v58 }
 0x36d   :  { %v654_v59 = vadd.f32 1.0, %v1185_v2  ;;  %v1103_v2 = vld [vmem:[%s1768_s0 + $0x44] sm:$0xf] }
 0x36e   :  { %1186 = vrcp.f32 %v630_v5  ;;  %v642_v4 = vand.u32 2147483648, %v630_v5  ;;  %v640_v32 = vand.u32 2147483647, %v630_v5  ;;  %vm636_vm1 = vweird.f32 %v630_v5 }
 0x36f   :  { %1188 = vrcp.f32 %v654_v59  ;;  %v623_v17 = vpop.f32.mrf.mxu2  ;;  %v666_v50 = vand.u32 2147483648, %v654_v59  ;;  %vm660_vm5 = vweird.f32 %v654_v59  ;;  %v664_v52 = vand.u32 2147483647, %v654_v59 }
 0x370   :  { %v643_v38 = vor.u32 1.1754944e-38, %v642_v4  ;;  %vm641_vm3 = vcmp.eq.f32.partialorder %v640_v32, 8.507059e+37 }
 0x371   :  { %v667_v46 = vor.u32 1.1754944e-38, %v666_v50  ;;  %vm665_vm7 = vcmp.eq.f32.partialorder %v664_v52, 8.507059e+37 }
 0x374   :  { %v1187_v20 = vpop.eup %1186 }
 0x375   :  { %v1189_v21 = vpop.eup %1188  ;;  %v632_v23 = vmul.f32 %v1187_v20, %v630_v5  ;;  %vm637_vm0 = vweird.f32 %v1187_v20 }
 0x376   :  { %v656_v24 = vmul.f32 %v1189_v21, %v654_v59  ;;  %vm638_vm2 = vmor %vm636_vm1, %vm637_vm0  ;;  %vm661_vm4 = vweird.f32 %v1189_v21 }
 0x377   :  { %v633_v25 = vsub.f32 1.0, %v632_v23  ;;  %vm662_vm6 = vmor %vm660_vm5, %vm661_vm4 }
 0x378   :  { %v657_v28 = vsub.f32 1.0, %v656_v24 }
 0x379   :  { %v634_v29 = vmul.f32 %v1187_v20, %v633_v25 }
 0x37a   :  { %v658_v33 = vmul.f32 %v1189_v21, %v657_v28 }
 0x37b   :  { %v635_v37 = vadd.f32 %v1187_v20, %v634_v29 }
 0x37c   :  { %v659_v45 = vadd.f32 %v1189_v21, %v658_v33 }
 0x37d   :  { %v639_v36 = vsel %vm638_vm2, %v1187_v20, %v635_v37 }
 0x37e   :  { %v644_v27 = vsel %vm641_vm3, %v643_v38, %v639_v36  ;;  %v663_v55 = vsel %vm662_vm6, %v1189_v21, %v659_v45  ;;  %v769_v21 = vunpack.c.l.bf16 %v1103_v2 }
 0x37f   :  { %v672_v51 = vmul.f32 %v671_v43, %v644_v27  ;;  %v668_v56 = vsel %vm665_vm7, %v667_v46, %v663_v55  ;;  %v1107_v27 = vld [vmem:[%s1768_s0 + $0x48] sm:$0xff] }
 0x380   :  { %v675_v60 = vsub.f32 1.0, %v668_v56  ;;  %v677_v63 = vmul.f32 %v668_v56, %v1665_v15  ;;  %v724_v15 = vunpack.c.l.bf16 %v1102_v8  ;;  %v845_v45 = vrot.slane %v1107_v27, 4 }
 0x381   :  { %v673_v54 = vadd.f32 %v672_v51, %v670_v41  ;;  %v823_v51 = vunpack.c.l.bf16 %v1107_v27 }
 0x382   :  { %v847_v52 = vunpack.c.l.bf16 %v845_v45 }
 0x383   :  { %1190 = vtanh.f32 %v673_v54 }
 0x389   :  { %v1191_v42 = vpop.eup %1190 }
 0x38a   :  { %v676_v61 = vmul.f32 %v1191_v42, %v675_v60 }
 0x38c   :  { %v1704_v0 = vadd.f32 %v677_v63, %v676_v61 }
 0x38e   :  { %v679_v1 = vpack.c.bf16 %v1704_v0, %v1704_v0 }
 0x390   :  { %1101 = vst [vmem:[%s1769_s4 + $0x10] sm:$0xf] %v679_v1  ;;  %693 = vmatmul.bf16.vlgmr.msrb.gmra.mxu3 %v679_v1  ;;  %706 = vmatmul.bf16.vlgmr.msra.gmra.mxu0 %v679_v1 }
 0x391   :  { %719 = vmatmul.bf16.vlgmr.msra.gmra.mxu1 %v679_v1  ;;  %909 = vmatpush.bf16.msrb.mxu3 %v1301_v18  ;;  %v748_v18 = vunpack.c.l.bf16 %v746_v9 }
 0x395   :  { %910 = vmatpush.bf16.msrb.mxu3 %v1326_v26 }
 0x399   :  { %911 = vmatpush.bf16.msrb.mxu3 %v1354_v35 }
 0x39d   :  { %912 = vmatpush.bf16.msrb.mxu3 %v1382_v44 }
 0x3a1   :  { %913 = vmatpush.bf16.msrb.mxu3 %v1410_v53 }
 0x3a5   :  { %914 = vmatpush.bf16.msrb.mxu3 %v1438_v62 }
 0x3a9   :  { %915 = vmatpush.bf16.msrb.mxu3 %v1462_v6 }
 0x3ad   :  { %916 = vmatpush.bf16.msrb.mxu3 %v1476_v13 }
 0x40d   :  { %v707_v12 = vpop.f32.mrf.mxu0 }
 0x40e   :  { %v749_v26 = vadd.f32 %v748_v18, %v707_v12  ;;  %v720_v14 = vpop.f32.mrf.mxu1 }
 0x40f   :  { %v770_v17 = vadd.f32 %v1541_v47, %v720_v14 }
 0x410   :  { %v1105_v35 = vmul.f32 -1.442695, %v749_v26 }
 0x412   :  { %1192 = vpow2.f32 %v1105_v35 }
 0x413   :  { %v694_v44 = vpop.f32.mrf.mxu3 }
 0x414   :  { %v725_v53 = vadd.f32 %v724_v15, %v694_v44 }
 0x415   :  { %v709_v16 = vpop.f32.mrf.mxu0 }
 0x416   :  { %v1104_v62 = vmul.f32 -1.442695, %v725_v53  ;;  %v722_v3 = vpop.f32.mrf.mxu1 }
 0x418   :  { %v1193_v6 = vpop.eup %1192  ;;  %1194 = vpow2.f32 %v1104_v62 }
 0x419   :  { %v753_v13 = vadd.f32 1.0, %v1193_v6  ;;  %v1108_v6 = vld [vmem:[%s1768_s0 + $0x50] sm:$0xf] }
 0x41b   :  { %v696_v7 = vpop.f32.mrf.mxu3  ;;  %1196 = vrcp.f32 %v753_v13  ;;  %v765_v25 = vand.u32 2147483648, %v753_v13  ;;  %vm759_vm13 = vweird.f32 %v753_v13  ;;  %v763_v4 = vand.u32 2147483647, %v753_v13 }
 0x41d   :  { %v766_v33 = vor.u32 1.1754944e-38, %v765_v25  ;;  %vm764_vm15 = vcmp.eq.f32.partialorder %v763_v4, 8.507059e+37 }
 0x41e   :  { %v1195_v10 = vpop.eup %1194 }
 0x41f   :  { %v729_v11 = vadd.f32 1.0, %v1195_v10  ;;  %v1743_v10 = vld [vmem:[%s1767_s3] ss:$0 sm:$0xff] }
 0x421   :  { %1198 = vrcp.f32 %v729_v11  ;;  %v1197_v19 = vpop.eup %1196  ;;  %v741_v48 = vand.u32 2147483648, %v729_v11  ;;  %v739_v57 = vand.u32 2147483647, %v729_v11  ;;  %vm735_vm9 = vweird.f32 %v729_v11 }
 0x422   :  { %v755_v22 = vmul.f32 %v1197_v19, %v753_v13  ;;  %vm760_vm12 = vweird.f32 %v1197_v19 }
 0x423   :  { %v742_v59 = vor.u32 1.1754944e-38, %v741_v48  ;;  %vm740_vm11 = vcmp.eq.f32.partialorder %v739_v57, 8.507059e+37  ;;  %vm761_vm14 = vmor %vm759_vm13, %vm760_vm12 }
 0x424   :  { %v756_v39 = vsub.f32 1.0, %v755_v22  ;;  %v868_v22 = vunpack.c.l.bf16 %v1108_v6 }
 0x426   :  { %v757_v58 = vmul.f32 %v1197_v19, %v756_v39 }
 0x427   :  { %v1199_v30 = vpop.eup %1198 }
 0x428   :  { %v731_v31 = vmul.f32 %v1199_v30, %v729_v11  ;;  %vm736_vm8 = vweird.f32 %v1199_v30  ;;  %v758_v24 = vadd.f32 %v1197_v19, %v757_v58 }
 0x429   :  { %vm737_vm10 = vmor %vm735_vm9, %vm736_vm8 }
 0x42a   :  { %v732_v40 = vsub.f32 1.0, %v731_v31  ;;  %v762_v32 = vsel %vm761_vm14, %v1197_v19, %v758_v24  ;;  %v1112_v24 = vld [vmem:[%s1768_s0 + $0x54] sm:$0xff] }
 0x42b   :  { %v767_v34 = vsel %vm764_vm15, %v766_v33, %v762_v32  ;;  %v922_v25 = vunpack.c.l.bf16 %v1112_v24 }
 0x42c   :  { %v733_v49 = vmul.f32 %v1199_v30, %v732_v40  ;;  %v774_v37 = vsub.f32 1.0, %v767_v34  ;;  %v776_v36 = vmul.f32 %v767_v34, %v1704_v0 }
 0x42e   :  { %v734_v5 = vadd.f32 %v1199_v30, %v733_v49 }
 0x430   :  { %v738_v20 = vsel %vm737_vm10, %v1199_v30, %v734_v5 }
 0x431   :  { %v743_v23 = vsel %vm740_vm11, %v742_v59, %v738_v20 }
 0x432   :  { %v771_v28 = vmul.f32 %v770_v17, %v743_v23 }
 0x434   :  { %v772_v29 = vadd.f32 %v771_v28, %v769_v21  ;;  %v944_v28 = vrot.slane %v1112_v24, 4 }
 0x436   :  { %1200 = vtanh.f32 %v772_v29  ;;  %v946_v33 = vunpack.c.l.bf16 %v944_v28 }
 0x43c   :  { %v1201_v38 = vpop.eup %1200 }
 0x43d   :  { %v775_v47 = vmul.f32 %v1201_v38, %v774_v37 }
 0x43f   :  { %v1727_v41 = vadd.f32 %v776_v36, %v775_v47 }
 0x441   :  { %v778_v43 = vpack.c.bf16 %v1727_v41, %v1727_v41 }
 0x443   :  { %1106 = vst [vmem:[%s1769_s4 + $0x14] sm:$0xf] %v778_v43  ;;  %792 = vmatmul.bf16.vlgmr.msra.gmra.mxu2 %v778_v43  ;;  %805 = vmatmul.bf16.vlgmr.msra.gmra.mxu3 %v778_v43 }
 0x444   :  { %818 = vmatmul.bf16.vlgmr.msrb.gmra.mxu0 %v778_v43 }
 0x4c1   :  { %v819_v50 = vpop.f32.mrf.mxu0 }
 0x4c2   :  { %v869_v11 = vadd.f32 %v1743_v10, %v819_v50 }
 0x4c6   :  { %v793_v54 = vpop.f32.mrf.mxu2  ;;  %v806_v55 = vpop.f32.mrf.mxu3 }
 0x4c7   :  { %v824_v46 = vadd.f32 %v823_v51, %v793_v54  ;;  %v848_v56 = vadd.f32 %v847_v52, %v806_v55 }
 0x4c9   :  { %v1109_v60 = vmul.f32 -1.442695, %v824_v46  ;;  %v1110_v42 = vmul.f32 -1.442695, %v848_v56  ;;  %v821_v61 = vpop.f32.mrf.mxu0  ;;  %v1113_v56 = vld [vmem:[%s1768_s0 + $0x5c] sm:$0xf] }
 0x4cb   :  { %1202 = vpow2.f32 %v1109_v60 }
 0x4cc   :  { %1204 = vpow2.f32 %v1110_v42 }
 0x4ce   :  { %v795_v63 = vpop.f32.mrf.mxu2  ;;  %v808_v0 = vpop.f32.mrf.mxu3 }
 0x4d1   :  { %v1203_v1 = vpop.eup %1202 }
 0x4d2   :  { %v1205_v8 = vpop.eup %1204  ;;  %v828_v9 = vadd.f32 1.0, %v1203_v1 }
 0x4d3   :  { %v852_v18 = vadd.f32 1.0, %v1205_v8  ;;  %v967_v8 = vunpack.c.l.bf16 %v1113_v56 }
 0x4d4   :  { %1206 = vrcp.f32 %v828_v9  ;;  %v840_v44 = vand.u32 2147483648, %v828_v9  ;;  %v838_v62 = vand.u32 2147483647, %v828_v9  ;;  %vm834_vm1 = vweird.f32 %v828_v9 }
 0x4d5   :  { %1208 = vrcp.f32 %v852_v18  ;;  %v864_v40 = vand.u32 2147483648, %v852_v18  ;;  %vm858_vm5 = vweird.f32 %v852_v18  ;;  %v862_v48 = vand.u32 2147483647, %v852_v18 }
 0x4d6   :  { %v841_v7 = vor.u32 1.1754944e-38, %v840_v44  ;;  %vm839_vm3 = vcmp.eq.f32.partialorder %v838_v62, 8.507059e+37 }
 0x4d7   :  { %v865_v58 = vor.u32 1.1754944e-38, %v864_v40  ;;  %vm863_vm7 = vcmp.eq.f32.partialorder %v862_v48, 8.507059e+37 }
 0x4da   :  { %v1207_v12 = vpop.eup %1206 }
 0x4db   :  { %v1209_v26 = vpop.eup %1208  ;;  %v830_v14 = vmul.f32 %v1207_v12, %v828_v9  ;;  %vm835_vm0 = vweird.f32 %v1207_v12 }
 0x4dc   :  { %v854_v35 = vmul.f32 %v1209_v26, %v852_v18  ;;  %vm836_vm2 = vmor %vm834_vm1, %vm835_vm0  ;;  %vm859_vm4 = vweird.f32 %v1209_v26 }
 0x4dd   :  { %v831_v15 = vsub.f32 1.0, %v830_v14  ;;  %vm860_vm6 = vmor %vm858_vm5, %vm859_vm4 }
 0x4de   :  { %v855_v53 = vsub.f32 1.0, %v854_v35 }
 0x4df   :  { %v832_v16 = vmul.f32 %v1207_v12, %v831_v15 }
 0x4e0   :  { %v856_v3 = vmul.f32 %v1209_v26, %v855_v53 }
 0x4e1   :  { %v833_v13 = vadd.f32 %v1207_v12, %v832_v16 }
 0x4e2   :  { %v857_v31 = vadd.f32 %v1209_v26, %v856_v3 }
 0x4e3   :  { %v837_v19 = vsel %vm836_vm2, %v1207_v12, %v833_v13 }
 0x4e4   :  { %v842_v30 = vsel %vm839_vm3, %v841_v7, %v837_v19  ;;  %v861_v57 = vsel %vm860_vm6, %v1209_v26, %v857_v31 }
 0x4e5   :  { %v870_v39 = vmul.f32 %v869_v11, %v842_v30  ;;  %v866_v2 = vsel %vm863_vm7, %v865_v58, %v861_v57 }
 0x4e6   :  { %v873_v5 = vsub.f32 1.0, %v866_v2  ;;  %v875_v20 = vmul.f32 %v866_v2, %v1727_v41 }
 0x4e7   :  { %v871_v49 = vadd.f32 %v870_v39, %v868_v22 }
 0x4e9   :  { %1210 = vtanh.f32 %v871_v49 }
 0x4ef   :  { %v1211_v59 = vpop.eup %1210 }
 0x4f0   :  { %v874_v17 = vmul.f32 %v1211_v59, %v873_v5 }
 0x4f2   :  { %v1747_v21 = vadd.f32 %v875_v20, %v874_v17 }
 0x4f4   :  { %v877_v23 = vpack.c.bf16 %v1747_v21, %v1747_v21 }
 0x4f6   :  { %1111 = vst [vmem:[%s1769_s4 + $0x18] sm:$0xf] %v877_v23  ;;  %891 = vmatmul.bf16.vlgmr.msrb.gmra.mxu1 %v877_v23  ;;  %904 = vmatmul.bf16.vlgmr.msrb.gmra.mxu2 %v877_v23 }
 0x4f7   :  { %917 = vmatmul.bf16.vlgmr.msrb.gmra.mxu3 %v877_v23 }
 0x573   :  { %v892_v4 = vpop.f32.mrf.mxu1 }
 0x574   :  { %v923_v29 = vadd.f32 %v922_v25, %v892_v4 }
 0x576   :  { %v1114_v32 = vmul.f32 -1.442695, %v923_v29 }
 0x578   :  { %1212 = vpow2.f32 %v1114_v32 }
 0x579   :  { %v905_v34 = vpop.f32.mrf.mxu2 }
 0x57a   :  { %v947_v37 = vadd.f32 %v946_v33, %v905_v34  ;;  %v918_v38 = vpop.f32.mrf.mxu3 }
 0x57b   :  { %v894_v47 = vpop.f32.mrf.mxu1  ;;  %v968_v12 = vadd.f32 %v1743_v10, %v918_v38 }
 0x57c   :  { %v1115_v36 = vmul.f32 -1.442695, %v947_v37 }
 0x57e   :  { %v1213_v41 = vpop.eup %1212  ;;  %1214 = vpow2.f32 %v1115_v36 }
 0x57f   :  { %v927_v43 = vadd.f32 1.0, %v1213_v41 }
 0x581   :  { %1216 = vrcp.f32 %v927_v43  ;;  %v907_v27 = vpop.f32.mrf.mxu2  ;;  %v939_v46 = vand.u32 2147483648, %v927_v43  ;;  %v937_v42 = vand.u32 2147483647, %v927_v43  ;;  %vm933_vm9 = vweird.f32 %v927_v43 }
 0x582   :  { %v920_v45 = vpop.f32.mrf.mxu3 }
 0x583   :  { %v940_v1 = vor.u32 1.1754944e-38, %v939_v46  ;;  %vm938_vm11 = vcmp.eq.f32.partialorder %v937_v42, 8.507059e+37 }
 0x584   :  { %v1215_v50 = vpop.eup %1214 }
 0x585   :  { %v951_v51 = vadd.f32 1.0, %v1215_v50 }
 0x587   :  { %v1217_v52 = vpop.eup %1216  ;;  %1218 = vrcp.f32 %v951_v51  ;;  %v963_v35 = vand.u32 2147483648, %v951_v51  ;;  %v961_v44 = vand.u32 2147483647, %v951_v51  ;;  %vm957_vm13 = vweird.f32 %v951_v51 }
 0x588   :  { %v929_v54 = vmul.f32 %v1217_v52, %v927_v43  ;;  %vm934_vm8 = vweird.f32 %v1217_v52 }
 0x589   :  { %vm935_vm10 = vmor %vm933_vm9, %vm934_vm8  ;;  %v964_v62 = vor.u32 1.1754944e-38, %v963_v35  ;;  %vm962_vm15 = vcmp.eq.f32.partialorder %v961_v44, 8.507059e+37 }
 0x58a   :  { %v930_v55 = vsub.f32 1.0, %v929_v54 }
 0x58c   :  { %v931_v60 = vmul.f32 %v1217_v52, %v930_v55 }
 0x58d   :  { %v1219_v61 = vpop.eup %1218 }
 0x58e   :  { %v953_v63 = vmul.f32 %v1219_v61, %v951_v51  ;;  %v932_v0 = vadd.f32 %v1217_v52, %v931_v60  ;;  %vm958_vm12 = vweird.f32 %v1219_v61 }
 0x58f   :  { %vm959_vm14 = vmor %vm957_vm13, %vm958_vm12 }
 0x590   :  { %v954_v9 = vsub.f32 1.0, %v953_v63  ;;  %v936_v18 = vsel %vm935_vm10, %v1217_v52, %v932_v0 }
 0x591   :  { %v941_v26 = vsel %vm938_vm11, %v940_v1, %v936_v18 }
 0x592   :  { %v955_v14 = vmul.f32 %v1219_v61, %v954_v9  ;;  %v969_v15 = vmul.f32 %v968_v12, %v941_v26 }
 0x594   :  { %v956_v53 = vadd.f32 %v1219_v61, %v955_v14  ;;  %v970_v16 = vadd.f32 %v969_v15, %v967_v8 }
 0x596   :  { %v960_v3 = vsel %vm959_vm14, %v1219_v61, %v956_v53  ;;  %1220 = vtanh.f32 %v970_v16 }
 0x597   :  { %v965_v6 = vsel %vm962_vm15, %v964_v62, %v960_v3 }
 0x598   :  { %v972_v13 = vsub.f32 1.0, %v965_v6  ;;  %v974_v10 = vmul.f32 %v965_v6, %v1747_v21 }
 0x59c   :  { %v1221_v7 = vpop.eup %1220 }
 0x59d   :  { %v973_v11 = vmul.f32 %v1221_v7, %v972_v13 }
 0x59f   :  { %v975_v19 = vadd.f32 %v974_v10, %v973_v11 }
 0x5a1   :  { %v976_v22 = vpack.c.bf16 %v975_v19, %v975_v19 }
 0x5a3   :  { %1116 = vst [vmem:[%s1769_s4 + $0x1c] sm:$0xf] %v976_v22 }

</bundles_post_ra>
